<compile_context>
chip_gen: v6e
topology: v6e:2x2x1
jax: 0.10.0
libtpu: 0.0.40
codegen_flags: <defaults>
</compile_context>

<pallas_src>
import functools
import math

import jax
import jax.numpy as jnp
from jax.experimental import pallas as pl
from jax.experimental.pallas import tpu as pltpu

LN_EPS = 1e-5      # PyTorch nn.LayerNorm default
NEG_INF = -1e9


# ----------------------------------------------------------------------------
# Fused Pallas kernel: all layers + final norm for one batch tile
# ----------------------------------------------------------------------------
def _fused_decoder_kernel(nhead, num_layers, has_norm, return_intermediate,
                          tgt_ref, pos_ref, causal_ref, kpad_ref,
                          wqk_ref, bqk_ref, wv_ref, bv_ref, wo_ref, bo_ref,
                          w1_ref, b1_ref, w2_ref, b2_ref,
                          g1_ref, be1_ref, g2_ref, be2_ref,
                          ng_ref, nb_ref,
                          *out_and_scratch):
    if return_intermediate:
        out_ref, inter_ref, ctx_ref = out_and_scratch
    else:
        (out_ref, ctx_ref), inter_ref = out_and_scratch, None

    f32 = jnp.float32
    x3 = tgt_ref[...].astype(f32)                       # (Bt, S, D)
    pos3 = pos_ref[...].astype(f32)                     # (Bt, S, D)
    Bt, S, D = x3.shape
    dh = D // nhead
    M = Bt * S
    w_dt = wqk_ref.dtype                                # MXU compute dtype (bf16/f32)

    # additive attention bias, computed ONCE for all layers/heads: (Bt, S, S)
    bias = causal_ref[...].astype(f32)[None, :, :] + kpad_ref[...].astype(f32)

    def layernorm(v, g, b):                             # v: (M, D) f32
        mu = jnp.mean(v, axis=-1, keepdims=True)
        var = jnp.mean((v - mu) ** 2, axis=-1, keepdims=True)
        return (v - mu) * jax.lax.rsqrt(var + LN_EPS) * g + b

    pos2 = pos3.reshape(M, D)
    x2 = x3.reshape(M, D)                               # resident activations (M, D) f32

    for l in range(num_layers):                         # static layer loop (fused)
        # ---- fused q/k projection (single (D, 2D) MXU pass) + v projection ----
        # NOTE: 1/sqrt(dh) is already folded into the q half of wqk / bqk.
        qk_in = (x2 + pos2).astype(w_dt)
        qk = jnp.dot(qk_in, wqk_ref[l],
                     preferred_element_type=f32) + bqk_ref[l].astype(f32)    # (M, 2D)
        v = jnp.dot(x2.astype(w_dt), wv_ref[l],
                    preferred_element_type=f32) + bv_ref[l].astype(f32)      # (M, D)
        q3 = qk[:, :D].reshape(Bt, S, D).astype(w_dt)
        k3 = qk[:, D:].reshape(Bt, S, D).astype(w_dt)
        v3 = v.reshape(Bt, S, D).astype(w_dt)

        # ---- multi-head attention ----
        # Each head's context goes into its lane slice of the (M, D) scratch so
        # the output projection is ONE K=D matmul (full MXU contraction fill).
        for h in range(nhead):                          # static head loop
            sl = slice(h * dh, (h + 1) * dh)
            s = jnp.einsum("bqd,bkd->bqk", q3[:, :, sl], k3[:, :, sl],
                           preferred_element_type=f32) + bias
            s = s - jnp.max(s, axis=-1, keepdims=True)
            p = jnp.exp(s)
            p = p * pl.reciprocal(jnp.sum(p, axis=-1, keepdims=True), approx=True)
            oh = jnp.einsum("bqk,bkd->bqd", p.astype(w_dt), v3[:, :, sl],
                            preferred_element_type=f32)                      # (Bt, S, dh)
            ctx_ref[:, sl] = oh.reshape(M, dh)

        attn = jnp.dot(ctx_ref[...].astype(w_dt), wo_ref[l],
                       preferred_element_type=f32) + bo_ref[l].astype(f32)   # (M, D)

        # ---- residual + LayerNorm1 ----
        y = layernorm(x2 + attn, g1_ref[l].astype(f32), be1_ref[l].astype(f32))

        # ---- feed-forward (ReLU) ----
        h1 = jnp.maximum(
            jnp.dot(y.astype(w_dt), w1_ref[l], preferred_element_type=f32)
            + b1_ref[l].astype(f32), 0.0)
        ff = jnp.dot(h1.astype(w_dt), w2_ref[l], preferred_element_type=f32) \
            + b2_ref[l].astype(f32)

        # ---- residual + LayerNorm2 ----
        x2 = layernorm(y + ff, g2_ref[l].astype(f32), be2_ref[l].astype(f32))

        if return_intermediate:
            xn = layernorm(x2, ng_ref[...].astype(f32), nb_ref[...].astype(f32))
            inter_ref[l] = xn.reshape(Bt, S, D).astype(inter_ref.dtype)

    if has_norm:
        x2 = layernorm(x2, ng_ref[...].astype(f32), nb_ref[...].astype(f32))
    out_ref[...] = x2.reshape(Bt, S, D).astype(out_ref.dtype)


# ----------------------------------------------------------------------------
# Wrapper
# ----------------------------------------------------------------------------
def _pick_batch_tile(B, S):
    """Batch-tile size: ~512 MXU rows/step, bounded by the (Bt,S,S) score
    footprint, and kept to >=2 grid steps so both v7x TensorCores get work."""
    cap = max(1, 512 // S)                               # target Bt*S ~ 512 rows
    cap = min(cap, max(1, (8 << 20) // (2 * S * S * 4)))  # s + p temporaries <= ~8 MiB
    if B >= 2:
        cap = min(cap, B // 2)                           # >=2 grid steps (megacore)
    cap = max(cap, 1)
    best = 1
    for t in range(1, min(B, cap) + 1):
        if B % t == 0:
            best = t
    return best


def transformer_decoder(tgt_sbd, layer_params, norm, *, nhead,
                        tgt_mask=None, tgt_key_padding_mask=None,
                        pos=None, return_intermediate=False,
                        weight_dtype=jnp.bfloat16):
    """Pallas equivalent of TransformerDecoder.forward.

    tgt_sbd / pos        : (S, B, D)  (PyTorch seq-first convention)
    tgt_mask             : (S, S) additive float mask (or None)
    tgt_key_padding_mask : (B, S) bool, True = masked key position (or None)
    weight_dtype         : MXU compute dtype for the stacked weights (bf16 default).
    """
    S, B, D = tgt_sbd.shape
    L = len(layer_params)
    if D % nhead != 0:
        raise ValueError("d_model must be divisible by nhead")
    if return_intermediate and norm is None:
        raise ValueError("return_intermediate requires a final norm (as in PyTorch)")
    dh = D // nhead
    scale = 1.0 / math.sqrt(dh)

    x = jnp.transpose(tgt_sbd, (1, 0, 2))                     # (B, S, D)
    pos_b = (jnp.zeros_like(x) if pos is None
             else jnp.transpose(pos, (1, 0, 2)))

    causal = (jnp.zeros((S, S), jnp.float32) if tgt_mask is None
              else tgt_mask.astype(jnp.float32))              # shared (S, S)
    if tgt_key_padding_mask is None:
        kpad = jnp.zeros((B, 1, S), jnp.float32)
    else:
        kpad = jnp.where(tgt_key_padding_mask, NEG_INF, 0.0) \
                  .astype(jnp.float32)[:, None, :]            # (B, 1, S)

    # Stack per-layer weights as (L, ...); fuse Wq/Wk into one (D, 2D) weight and
    # fold 1/sqrt(dh) into the q half.  Weights go to `weight_dtype` (bf16 MXU
    # path); biases and LN params stay f32.  (Done once at parameter-load time
    # in production.)
    w_dt = jnp.dtype(weight_dtype)

    def stk(name, dt):
        return jnp.stack([p[name] for p in layer_params]).astype(dt)

    wqk = jnp.stack([jnp.concatenate([p["wq"] * scale, p["wk"]], axis=1)
                     for p in layer_params]).astype(w_dt)
    bqk = jnp.stack([jnp.concatenate([p["bq"] * scale, p["bk"]], axis=1)
                     for p in layer_params]).astype(jnp.float32)
    wv, bv = stk("wv", w_dt), stk("bv", jnp.float32)
    wo, bo = stk("wo", w_dt), stk("bo", jnp.float32)
    w1, b1 = stk("w1", w_dt), stk("b1", jnp.float32)
    w2, b2 = stk("w2", w_dt), stk("b2", jnp.float32)
    g1, be1 = stk("ln1_g", jnp.float32), stk("ln1_b", jnp.float32)
    g2, be2 = stk("ln2_g", jnp.float32), stk("ln2_b", jnp.float32)

    has_norm = norm is not None
    ng = (norm["g"] if has_norm else jnp.ones((1, D))).astype(jnp.float32)
    nb = (norm["b"] if has_norm else jnp.zeros((1, D))).astype(jnp.float32)

    Fdim = w1.shape[-1]
    B_tile = _pick_batch_tile(B, S)
    grid = (B // B_tile,)

    weights = (wqk, bqk, wv, bv, wo, bo, w1, b1, w2, b2,
               g1, be1, g2, be2, ng, nb)

    kernel = functools.partial(_fused_decoder_kernel, nhead, L, has_norm,
                               return_intermediate)

    if return_intermediate:
        out_shape = (jax.ShapeDtypeStruct((B, S, D), x.dtype),
                     jax.ShapeDtypeStruct((L, B, S, D), x.dtype))
        out_specs = [pl.BlockSpec((B_tile, S, D), lambda b: (b, 0, 0)),
                     pl.BlockSpec((L, B_tile, S, D), lambda b: (0, b, 0, 0))]
    else:
        out_shape = jax.ShapeDtypeStruct((B, S, D), x.dtype)
        out_specs = pl.BlockSpec((B_tile, S, D), lambda b: (b, 0, 0))

    def vmem_limit(resident):
        # stacked weights (+causal), grid I/O blocks (double-buffered) and the
        # f32 in-kernel working set; 30% headroom; floor = 32 MiB default,
        # cap = 64 MiB (v7x physical VMEM per TensorCore).
        wf = 1 if resident else 2
        wbytes = sum(int(a.size) * a.dtype.itemsize for a in weights)
        wbytes += int(causal.size) * causal.dtype.itemsize
        it = jnp.dtype(x.dtype).itemsize
        slab = B_tile * S * D
        io = 2 * slab * it * (2 + 1 + (L if return_intermediate else 0)) \
            + 2 * B_tile * S * 4
        work = 4 * (10 * slab + 2 * B_tile * S * Fdim + 3 * B_tile * S * S)
        est = int((wf * wbytes + io + work) * 1.3)
        return int(min(max(est, 32 << 20), 64 << 20))

    def build_in_specs(resident):
        if resident:
            # grid-invariant operands: whole array resident in VMEM, single copy
            def const(a):
                return pl.BlockSpec(memory_space=pltpu.MemorySpace.VMEM)
        else:
            # fallback: blocked full-array specs (double-buffered but always works)
            def const(a):
                return pl.BlockSpec(a.shape, lambda b, _n=a.ndim: (0,) * _n)
        specs = [
            pl.BlockSpec((B_tile, S, D), lambda b: (b, 0, 0)),    # tgt
            pl.BlockSpec((B_tile, S, D), lambda b: (b, 0, 0)),    # pos
            const(causal),                                        # causal mask
            pl.BlockSpec((B_tile, 1, S), lambda b: (b, 0, 0)),    # key-padding bias
        ]
        specs += [const(a) for a in weights]
        return specs

    def run(resident):
        return pl.pallas_call(
            kernel,
            out_shape=out_shape,
            grid=grid,
            in_specs=build_in_specs(resident),
            out_specs=out_specs,
            scratch_shapes=[pltpu.VMEM((B_tile * S, D), jnp.float32)],  # ctx buffer
            compiler_params=pltpu.CompilerParams(
                dimension_semantics=("parallel",),
                vmem_limit_bytes=vmem_limit(resident)),
        )(x, pos_b, causal, kpad, *weights)

    try:
        result = run(resident=True)
    except Exception:
        # Older jax versions may reject full-array VMEM operands; fall back to
        # blocked (double-buffered) weight specs — semantics are identical.
        result = run(resident=False)

    if return_intermediate:
        _, inter = result
        return jnp.transpose(inter, (0, 2, 1, 3))             # (L, S, B, D)
    return jnp.transpose(result, (1, 0, 2))                   # (S, B, D)


# ----------------------------------------------------------------------------
# Deterministic parameter initialization (synthetic; no checkpoint load)
# ----------------------------------------------------------------------------
def _init_layer_params(key, d_model, dim_feedforward):
    ks = jax.random.split(key, 6)
    s = 0.02
    f32 = jnp.float32
    return dict(
        wq=s * jax.random.normal(ks[0], (d_model, d_model), f32),
        wk=s * jax.random.normal(ks[1], (d_model, d_model), f32),
        wv=s * jax.random.normal(ks[2], (d_model, d_model), f32),
        bq=jnp.zeros((1, d_model), f32),
        bk=jnp.zeros((1, d_model), f32),
        bv=jnp.zeros((1, d_model), f32),
        wo=s * jax.random.normal(ks[3], (d_model, d_model), f32),
        bo=jnp.zeros((1, d_model), f32),
        w1=s * jax.random.normal(ks[4], (d_model, dim_feedforward), f32),
        b1=jnp.zeros((1, dim_feedforward), f32),
        w2=s * jax.random.normal(ks[5], (dim_feedforward, d_model), f32),
        b2=jnp.zeros((1, d_model), f32),
        ln1_g=jnp.ones((1, d_model), f32), ln1_b=jnp.zeros((1, d_model), f32),
        ln2_g=jnp.ones((1, d_model), f32), ln2_b=jnp.zeros((1, d_model), f32),
    )


# ----------------------------------------------------------------------------
# Pure-JAX reference (mirrors the PyTorch semantics) for verification
# ----------------------------------------------------------------------------
def _reference_decoder(tgt_sbd, pos_sbd, mask_bss, layer_params, norm, nhead):
    x = jnp.transpose(tgt_sbd, (1, 0, 2))
    pos = jnp.transpose(pos_sbd, (1, 0, 2))
    B, S, D = x.shape
    dh = D // nhead

    def ln(v, g, b):
        mu = v.mean(-1, keepdims=True)
        var = ((v - mu) ** 2).mean(-1, keepdims=True)
        return (v - mu) * jax.lax.rsqrt(var + LN_EPS) * g + b

    def split(a):
        return a.reshape(B, S, nhead, dh).transpose(0, 2, 1, 3)

    def layer(xb, p):
        qk = xb + pos
        q = qk @ p["wq"] + p["bq"]
        k = qk @ p["wk"] + p["bk"]
        v = xb @ p["wv"] + p["bv"]
        s = jnp.einsum("bhqd,bhkd->bhqk", split(q), split(k)) / math.sqrt(dh)
        s = s + mask_bss[:, None]
        a = jax.nn.softmax(s, axis=-1)
        o = jnp.einsum("bhqk,bhkd->bhqd", a, split(v)).transpose(0, 2, 1, 3).reshape(B, S, D)
        o = o @ p["wo"] + p["bo"]
        x1 = ln(xb + o, p["ln1_g"], p["ln1_b"])
        ff = jnp.maximum(x1 @ p["w1"] + p["b1"], 0.0) @ p["w2"] + p["b2"]
        return ln(x1 + ff, p["ln2_g"], p["ln2_b"])

    out = x
    for p in layer_params:
        out = layer(out, p)
    if norm is not None:
        out = ln(out, norm["g"], norm["b"])
    return jnp.transpose(out, (1, 0, 2))


# ----------------------------------------------------------------------------
if __name__ == "__main__":
    S, B, D, H, FF, L = 8, 2, 32, 4, 64, 2

    key = jax.random.PRNGKey(0)
    k_tgt, k_pos, k_par = jax.random.split(key, 3)

    tgt = jax.random.normal(k_tgt, (S, B, D), jnp.float32)
    pos = jax.random.normal(k_pos, (S, B, D), jnp.float32)

    # causal additive mask (like generate_square_subsequent_mask) + key padding
    causal = jnp.where(jnp.triu(jnp.ones((S, S), bool), k=1), NEG_INF, 0.0).astype(jnp.float32)
    key_pad = jnp.zeros((B, S), bool).at[1, S - 2:].set(True)

    # _get_clones deep-copies the layer, so all layers share the same init params
    base_params = _init_layer_params(k_par, D, FF)
    layer_params = [base_params for _ in range(L)]
    final_norm = dict(g=jnp.ones((1, D), jnp.float32), b=jnp.zeros((1, D), jnp.float32))

    # combined additive mask for the reference
    mask_bss = jnp.broadcast_to(causal[None], (B, S, S)) + \
        jnp.where(key_pad, NEG_INF, 0.0)[:, None, :]
    ref = _reference_decoder(tgt, pos, mask_bss, layer_params, final_norm, H)

    # 1) exact-precision run (f32 MXU path): tight check vs the pure-JAX reference
    out_f32 = transformer_decoder(
        tgt, layer_params, final_norm, nhead=H,
        tgt_mask=causal, tgt_key_padding_mask=key_pad, pos=pos,
        return_intermediate=False, weight_dtype=jnp.float32)
    out_f32 = jax.block_until_ready(out_f32)
    assert out_f32.shape == (S, B, D) and out_f32.dtype == jnp.float32
    # tolerance slightly relaxed vs exact-f32 because softmax normalization uses
    # the EUP approximate reciprocal (pl.reciprocal(approx=True)).
    assert jnp.allclose(out_f32, ref, atol=2e-3, rtol=2e-3), "f32 mismatch vs reference"

    # 2) production path: bf16 stacked weights on the MXU, f32 accumulate/LN/softmax
    out_bf16 = transformer_decoder(
        tgt, layer_params, final_norm, nhead=H,
        tgt_mask=causal, tgt_key_padding_mask=key_pad, pos=pos,
        return_intermediate=False)                 # weight_dtype defaults to bf16
    out_bf16 = jax.block_until_ready(out_bf16)
    assert out_bf16.shape == (S, B, D)
    assert jnp.allclose(out_bf16, ref, atol=5e-2, rtol=5e-2), "bf16 drifted too far"

    # 3) return_intermediate path
    inter = transformer_decoder(
        tgt, layer_params, final_norm, nhead=H,
        tgt_mask=causal, tgt_key_padding_mask=key_pad, pos=pos,
        return_intermediate=True, weight_dtype=jnp.float32)
    inter = jax.block_until_ready(inter)
    assert inter.shape == (L, S, B, D)
    assert jnp.allclose(inter[-1], out_f32, atol=2e-3, rtol=2e-3)

    print("KERNEL_OK")
</pallas_src>

<mosaic_0001>
module attributes {stable_mosaic.version = 11 : i64} {
  func.func @_fused_decoder_kernel(%arg0: i32, %arg1: memref<1x8x32xf32, #tpu.memory_space<vmem>>, %arg2: memref<1x8x32xf32, #tpu.memory_space<vmem>>, %arg3: memref<8x8xf32, #tpu.memory_space<vmem>>, %arg4: memref<1x1x8xf32, #tpu.memory_space<vmem>>, %arg5: memref<2x32x64xf32, #tpu.memory_space<vmem>>, %arg6: memref<2x1x64xf32, #tpu.memory_space<vmem>>, %arg7: memref<2x32x32xf32, #tpu.memory_space<vmem>>, %arg8: memref<2x1x32xf32, #tpu.memory_space<vmem>>, %arg9: memref<2x32x32xf32, #tpu.memory_space<vmem>>, %arg10: memref<2x1x32xf32, #tpu.memory_space<vmem>>, %arg11: memref<2x32x64xf32, #tpu.memory_space<vmem>>, %arg12: memref<2x1x64xf32, #tpu.memory_space<vmem>>, %arg13: memref<2x64x32xf32, #tpu.memory_space<vmem>>, %arg14: memref<2x1x32xf32, #tpu.memory_space<vmem>>, %arg15: memref<2x1x32xf32, #tpu.memory_space<vmem>>, %arg16: memref<2x1x32xf32, #tpu.memory_space<vmem>>, %arg17: memref<2x1x32xf32, #tpu.memory_space<vmem>>, %arg18: memref<2x1x32xf32, #tpu.memory_space<vmem>>, %arg19: memref<1x32xf32, #tpu.memory_space<vmem>>, %arg20: memref<1x32xf32, #tpu.memory_space<vmem>>, %arg21: memref<1x8x32xf32, #tpu.memory_space<vmem>>, %arg22: memref<8x32xf32, #tpu.memory_space<vmem>>) attributes {dimension_semantics = [#tpu.dimension_semantics<parallel>], iteration_bounds = array<i64: 2>, scalar_prefetch = 0 : i64, scratch_operands = 1 : i64, tpu.core_type = #tpu.core_type<tc>, window_params = [{transform_indices = @transform_0, window_bounds = array<i64: 1, 8, 32>}, {transform_indices = @transform_1, window_bounds = array<i64: 1, 8, 32>}, {pipeline_mode = #tpu.pipeline_mode<synchronous>, transform_indices = @transform_2, window_bounds = array<i64: 8, 8>}, {transform_indices = @transform_3, window_bounds = array<i64: 1, 1, 8>}, {pipeline_mode = #tpu.pipeline_mode<synchronous>, transform_indices = @transform_4, window_bounds = array<i64: 2, 32, 64>}, {pipeline_mode = #tpu.pipeline_mode<synchronous>, transform_indices = @transform_5, window_bounds = array<i64: 2, 1, 64>}, {pipeline_mode = #tpu.pipeline_mode<synchronous>, transform_indices = @transform_6, window_bounds = array<i64: 2, 32, 32>}, {pipeline_mode = #tpu.pipeline_mode<synchronous>, transform_indices = @transform_7, window_bounds = array<i64: 2, 1, 32>}, {pipeline_mode = #tpu.pipeline_mode<synchronous>, transform_indices = @transform_8, window_bounds = array<i64: 2, 32, 32>}, {pipeline_mode = #tpu.pipeline_mode<synchronous>, transform_indices = @transform_9, window_bounds = array<i64: 2, 1, 32>}, {pipeline_mode = #tpu.pipeline_mode<synchronous>, transform_indices = @transform_10, window_bounds = array<i64: 2, 32, 64>}, {pipeline_mode = #tpu.pipeline_mode<synchronous>, transform_indices = @transform_11, window_bounds = array<i64: 2, 1, 64>}, {pipeline_mode = #tpu.pipeline_mode<synchronous>, transform_indices = @transform_12, window_bounds = array<i64: 2, 64, 32>}, {pipeline_mode = #tpu.pipeline_mode<synchronous>, transform_indices = @transform_13, window_bounds = array<i64: 2, 1, 32>}, {pipeline_mode = #tpu.pipeline_mode<synchronous>, transform_indices = @transform_14, window_bounds = array<i64: 2, 1, 32>}, {pipeline_mode = #tpu.pipeline_mode<synchronous>, transform_indices = @transform_15, window_bounds = array<i64: 2, 1, 32>}, {pipeline_mode = #tpu.pipeline_mode<synchronous>, transform_indices = @transform_16, window_bounds = array<i64: 2, 1, 32>}, {pipeline_mode = #tpu.pipeline_mode<synchronous>, transform_indices = @transform_17, window_bounds = array<i64: 2, 1, 32>}, {pipeline_mode = #tpu.pipeline_mode<synchronous>, transform_indices = @transform_18, window_bounds = array<i64: 1, 32>}, {pipeline_mode = #tpu.pipeline_mode<synchronous>, transform_indices = @transform_19, window_bounds = array<i64: 1, 32>}, {transform_indices = @transform_20, window_bounds = array<i64: 1, 8, 32>}]} {
    %c0 = arith.constant 0 : index
    %c0_0 = arith.constant 0 : index
    %c0_1 = arith.constant 0 : index
    %0 = vector.load %arg1[%c0, %c0_0, %c0_1] : memref<1x8x32xf32, #tpu.memory_space<vmem>>, vector<1x8x32xf32>
    %c0_2 = arith.constant 0 : index
    %c0_3 = arith.constant 0 : index
    %c0_4 = arith.constant 0 : index
    %1 = vector.load %arg2[%c0_2, %c0_3, %c0_4] : memref<1x8x32xf32, #tpu.memory_space<vmem>>, vector<1x8x32xf32>
    %c0_5 = arith.constant 0 : index
    %c0_6 = arith.constant 0 : index
    %2 = vector.load %arg3[%c0_5, %c0_6] : memref<8x8xf32, #tpu.memory_space<vmem>>, vector<8x8xf32>
    %3 = vector.shape_cast %2 : vector<8x8xf32> to vector<1x8x8xf32>
    %c0_7 = arith.constant 0 : index
    %c0_8 = arith.constant 0 : index
    %c0_9 = arith.constant 0 : index
    %4 = vector.load %arg4[%c0_7, %c0_8, %c0_9] : memref<1x1x8xf32, #tpu.memory_space<vmem>>, vector<1x1x8xf32>
    %5 = vector.broadcast %4 : vector<1x1x8xf32> to vector<1x8x8xf32>
    %6 = arith.addf %3, %5 : vector<1x8x8xf32>
    %7 = vector.shape_cast %1 : vector<1x8x32xf32> to vector<8x32xf32>
    %8 = vector.shape_cast %0 : vector<1x8x32xf32> to vector<8x32xf32>
    %9 = arith.addf %8, %7 : vector<8x32xf32>
    %c0_10 = arith.constant 0 : index
    %c0_11 = arith.constant 0 : index
    %c0_12 = arith.constant 0 : index
    %10 = vector.load %arg5[%c0_10, %c0_11, %c0_12] : memref<2x32x64xf32, #tpu.memory_space<vmem>>, vector<1x32x64xf32>
    %11 = vector.shape_cast %10 : vector<1x32x64xf32> to vector<32x64xf32>
    %cst = arith.constant dense<0.000000e+00> : vector<8x64xf32>
    %12 = tpu.matmul %9, %11, %cst {dimension_numbers = #tpu.dot_dimension_numbers<[1], [0], [0], [1], [0, 0, 1, 1], [], []>} : vector<8x32xf32>, vector<32x64xf32>, vector<8x64xf32> -> vector<8x64xf32>
    %c0_13 = arith.constant 0 : index
    %c0_14 = arith.constant 0 : index
    %c0_15 = arith.constant 0 : index
    %13 = vector.load %arg6[%c0_13, %c0_14, %c0_15] : memref<2x1x64xf32, #tpu.memory_space<vmem>>, vector<1x1x64xf32>
    %14 = vector.shape_cast %13 : vector<1x1x64xf32> to vector<1x64xf32>
    %15 = vector.broadcast %14 : vector<1x64xf32> to vector<8x64xf32>
    %16 = arith.addf %12, %15 : vector<8x64xf32>
    %c0_16 = arith.constant 0 : index
    %c0_17 = arith.constant 0 : index
    %c0_18 = arith.constant 0 : index
    %17 = vector.load %arg7[%c0_16, %c0_17, %c0_18] : memref<2x32x32xf32, #tpu.memory_space<vmem>>, vector<1x32x32xf32>
    %18 = vector.shape_cast %17 : vector<1x32x32xf32> to vector<32x32xf32>
    %cst_19 = arith.constant dense<0.000000e+00> : vector<8x32xf32>
    %19 = tpu.matmul %8, %18, %cst_19 {dimension_numbers = #tpu.dot_dimension_numbers<[1], [0], [0], [1], [0, 0, 1, 1], [], []>} : vector<8x32xf32>, vector<32x32xf32>, vector<8x32xf32> -> vector<8x32xf32>
    %c0_20 = arith.constant 0 : index
    %c0_21 = arith.constant 0 : index
    %c0_22 = arith.constant 0 : index
    %20 = vector.load %arg8[%c0_20, %c0_21, %c0_22] : memref<2x1x32xf32, #tpu.memory_space<vmem>>, vector<1x1x32xf32>
    %21 = vector.shape_cast %20 : vector<1x1x32xf32> to vector<1x32xf32>
    %22 = vector.broadcast %21 : vector<1x32xf32> to vector<8x32xf32>
    %23 = arith.addf %19, %22 : vector<8x32xf32>
    %24 = vector.extract_strided_slice %16 {offsets = [0, 0], sizes = [8, 32], strides = [1, 1]} : vector<8x64xf32> to vector<8x32xf32>
    %25 = vector.shape_cast %24 : vector<8x32xf32> to vector<1x8x32xf32>
    %26 = vector.extract_strided_slice %16 {offsets = [0, 32], sizes = [8, 32], strides = [1, 1]} : vector<8x64xf32> to vector<8x32xf32>
    %27 = vector.shape_cast %26 : vector<8x32xf32> to vector<1x8x32xf32>
    %28 = vector.shape_cast %23 : vector<8x32xf32> to vector<1x8x32xf32>
    %29 = vector.extract_strided_slice %25 {offsets = [0, 0, 0], sizes = [1, 8, 8], strides = [1, 1, 1]} : vector<1x8x32xf32> to vector<1x8x8xf32>
    %30 = vector.extract_strided_slice %27 {offsets = [0, 0, 0], sizes = [1, 8, 8], strides = [1, 1, 1]} : vector<1x8x32xf32> to vector<1x8x8xf32>
    "tpu.trace_start"() <{level = 10 : i32, message = "bqd,bkd->bqk"}> : () -> ()
    %cst_23 = arith.constant dense<0.000000e+00> : vector<1x8x8xf32>
    %31 = tpu.matmul %29, %30, %cst_23 {dimension_numbers = #tpu.dot_dimension_numbers<[2], [2], [1], [1], [0, 0, 0, 1, 1, 1], [0], [0]>} : vector<1x8x8xf32>, vector<1x8x8xf32>, vector<1x8x8xf32> -> vector<1x8x8xf32>
    "tpu.trace_stop"() : () -> ()
    %32 = arith.addf %31, %6 : vector<1x8x8xf32>
    %cst_24 = arith.constant dense<0xFF800000> : vector<1x8xf32>
    %33 = vector.multi_reduction <maximumf>, %32, %cst_24 [2] : vector<1x8x8xf32> to vector<1x8xf32>
    %34 = vector.shape_cast %33 : vector<1x8xf32> to vector<1x8x1xf32>
    %35 = vector.broadcast %34 : vector<1x8x1xf32> to vector<1x8x8xf32>
    %36 = arith.subf %32, %35 : vector<1x8x8xf32>
    %37 = math.exp %36 : vector<1x8x8xf32>
    %cst_25 = arith.constant dense<0.000000e+00> : vector<1x8xf32>
    %38 = vector.multi_reduction <add>, %37, %cst_25 [2] : vector<1x8x8xf32> to vector<1x8xf32>
    %39 = vector.shape_cast %38 : vector<1x8xf32> to vector<1x8x1xf32>
    %40 = tpu.reciprocal %39 {approx = true} : vector<1x8x1xf32> -> vector<1x8x1xf32>
    %41 = vector.broadcast %40 : vector<1x8x1xf32> to vector<1x8x8xf32>
    %42 = arith.mulf %37, %41 : vector<1x8x8xf32>
    %43 = vector.extract_strided_slice %28 {offsets = [0, 0, 0], sizes = [1, 8, 8], strides = [1, 1, 1]} : vector<1x8x32xf32> to vector<1x8x8xf32>
    "tpu.trace_start"() <{level = 10 : i32, message = "bqk,bkd->bqd"}> : () -> ()
    %cst_26 = arith.constant dense<0.000000e+00> : vector<1x8x8xf32>
    %44 = tpu.matmul %42, %43, %cst_26 {dimension_numbers = #tpu.dot_dimension_numbers<[2], [1], [1], [2], [0, 0, 0, 1, 1, 2], [0], [0]>} : vector<1x8x8xf32>, vector<1x8x8xf32>, vector<1x8x8xf32> -> vector<1x8x8xf32>
    "tpu.trace_stop"() : () -> ()
    %45 = vector.shape_cast %44 : vector<1x8x8xf32> to vector<8x8xf32>
    %c0_27 = arith.constant 0 : index
    %c0_28 = arith.constant 0 : index
    %46 = vector.load %arg22[%c0_27, %c0_28] : memref<8x32xf32, #tpu.memory_space<vmem>>, vector<8x8xf32>
    tpu.vector_store %arg22[%c0_27, %c0_28], %45 {strides = array<i32>} : memref<8x32xf32, #tpu.memory_space<vmem>>, vector<8x8xf32>,
    %47 = vector.extract_strided_slice %25 {offsets = [0, 0, 8], sizes = [1, 8, 8], strides = [1, 1, 1]} : vector<1x8x32xf32> to vector<1x8x8xf32>
    %48 = vector.extract_strided_slice %27 {offsets = [0, 0, 8], sizes = [1, 8, 8], strides = [1, 1, 1]} : vector<1x8x32xf32> to vector<1x8x8xf32>
    "tpu.trace_start"() <{level = 10 : i32, message = "bqd,bkd->bqk"}> : () -> ()
    %cst_29 = arith.constant dense<0.000000e+00> : vector<1x8x8xf32>
    %49 = tpu.matmul %47, %48, %cst_29 {dimension_numbers = #tpu.dot_dimension_numbers<[2], [2], [1], [1], [0, 0, 0, 1, 1, 1], [0], [0]>} : vector<1x8x8xf32>, vector<1x8x8xf32>, vector<1x8x8xf32> -> vector<1x8x8xf32>
    "tpu.trace_stop"() : () -> ()
    %50 = arith.addf %49, %6 : vector<1x8x8xf32>
    %cst_30 = arith.constant dense<0xFF800000> : vector<1x8xf32>
    %51 = vector.multi_reduction <maximumf>, %50, %cst_30 [2] : vector<1x8x8xf32> to vector<1x8xf32>
    %52 = vector.shape_cast %51 : vector<1x8xf32> to vector<1x8x1xf32>
    %53 = vector.broadcast %52 : vector<1x8x1xf32> to vector<1x8x8xf32>
    %54 = arith.subf %50, %53 : vector<1x8x8xf32>
    %55 = math.exp %54 : vector<1x8x8xf32>
    %cst_31 = arith.constant dense<0.000000e+00> : vector<1x8xf32>
    %56 = vector.multi_reduction <add>, %55, %cst_31 [2] : vector<1x8x8xf32> to vector<1x8xf32>
    %57 = vector.shape_cast %56 : vector<1x8xf32> to vector<1x8x1xf32>
    %58 = tpu.reciprocal %57 {approx = true} : vector<1x8x1xf32> -> vector<1x8x1xf32>
    %59 = vector.broadcast %58 : vector<1x8x1xf32> to vector<1x8x8xf32>
    %60 = arith.mulf %55, %59 : vector<1x8x8xf32>
    %61 = vector.extract_strided_slice %28 {offsets = [0, 0, 8], sizes = [1, 8, 8], strides = [1, 1, 1]} : vector<1x8x32xf32> to vector<1x8x8xf32>
    "tpu.trace_start"() <{level = 10 : i32, message = "bqk,bkd->bqd"}> : () -> ()
    %cst_32 = arith.constant dense<0.000000e+00> : vector<1x8x8xf32>
    %62 = tpu.matmul %60, %61, %cst_32 {dimension_numbers = #tpu.dot_dimension_numbers<[2], [1], [1], [2], [0, 0, 0, 1, 1, 2], [0], [0]>} : vector<1x8x8xf32>, vector<1x8x8xf32>, vector<1x8x8xf32> -> vector<1x8x8xf32>
    "tpu.trace_stop"() : () -> ()
    %63 = vector.shape_cast %62 : vector<1x8x8xf32> to vector<8x8xf32>
    %c0_33 = arith.constant 0 : index
    %c8 = arith.constant 8 : index
    %64 = vector.load %arg22[%c0_33, %c8] : memref<8x32xf32, #tpu.memory_space<vmem>>, vector<8x8xf32>
    tpu.vector_store %arg22[%c0_33, %c8], %63 {strides = array<i32>} : memref<8x32xf32, #tpu.memory_space<vmem>>, vector<8x8xf32>,
    %65 = vector.extract_strided_slice %25 {offsets = [0, 0, 16], sizes = [1, 8, 8], strides = [1, 1, 1]} : vector<1x8x32xf32> to vector<1x8x8xf32>
    %66 = vector.extract_strided_slice %27 {offsets = [0, 0, 16], sizes = [1, 8, 8], strides = [1, 1, 1]} : vector<1x8x32xf32> to vector<1x8x8xf32>
    "tpu.trace_start"() <{level = 10 : i32, message = "bqd,bkd->bqk"}> : () -> ()
    %cst_34 = arith.constant dense<0.000000e+00> : vector<1x8x8xf32>
    %67 = tpu.matmul %65, %66, %cst_34 {dimension_numbers = #tpu.dot_dimension_numbers<[2], [2], [1], [1], [0, 0, 0, 1, 1, 1], [0], [0]>} : vector<1x8x8xf32>, vector<1x8x8xf32>, vector<1x8x8xf32> -> vector<1x8x8xf32>
    "tpu.trace_stop"() : () -> ()
    %68 = arith.addf %67, %6 : vector<1x8x8xf32>
    %cst_35 = arith.constant dense<0xFF800000> : vector<1x8xf32>
    %69 = vector.multi_reduction <maximumf>, %68, %cst_35 [2] : vector<1x8x8xf32> to vector<1x8xf32>
    %70 = vector.shape_cast %69 : vector<1x8xf32> to vector<1x8x1xf32>
    %71 = vector.broadcast %70 : vector<1x8x1xf32> to vector<1x8x8xf32>
    %72 = arith.subf %68, %71 : vector<1x8x8xf32>
    %73 = math.exp %72 : vector<1x8x8xf32>
    %cst_36 = arith.constant dense<0.000000e+00> : vector<1x8xf32>
    %74 = vector.multi_reduction <add>, %73, %cst_36 [2] : vector<1x8x8xf32> to vector<1x8xf32>
    %75 = vector.shape_cast %74 : vector<1x8xf32> to vector<1x8x1xf32>
    %76 = tpu.reciprocal %75 {approx = true} : vector<1x8x1xf32> -> vector<1x8x1xf32>
    %77 = vector.broadcast %76 : vector<1x8x1xf32> to vector<1x8x8xf32>
    %78 = arith.mulf %73, %77 : vector<1x8x8xf32>
    %79 = vector.extract_strided_slice %28 {offsets = [0, 0, 16], sizes = [1, 8, 8], strides = [1, 1, 1]} : vector<1x8x32xf32> to vector<1x8x8xf32>
    "tpu.trace_start"() <{level = 10 : i32, message = "bqk,bkd->bqd"}> : () -> ()
    %cst_37 = arith.constant dense<0.000000e+00> : vector<1x8x8xf32>
    %80 = tpu.matmul %78, %79, %cst_37 {dimension_numbers = #tpu.dot_dimension_numbers<[2], [1], [1], [2], [0, 0, 0, 1, 1, 2], [0], [0]>} : vector<1x8x8xf32>, vector<1x8x8xf32>, vector<1x8x8xf32> -> vector<1x8x8xf32>
    "tpu.trace_stop"() : () -> ()
    %81 = vector.shape_cast %80 : vector<1x8x8xf32> to vector<8x8xf32>
    %c0_38 = arith.constant 0 : index
    %c16 = arith.constant 16 : index
    %82 = vector.load %arg22[%c0_38, %c16] : memref<8x32xf32, #tpu.memory_space<vmem>>, vector<8x8xf32>
    tpu.vector_store %arg22[%c0_38, %c16], %81 {strides = array<i32>} : memref<8x32xf32, #tpu.memory_space<vmem>>, vector<8x8xf32>,
    %83 = vector.extract_strided_slice %25 {offsets = [0, 0, 24], sizes = [1, 8, 8], strides = [1, 1, 1]} : vector<1x8x32xf32> to vector<1x8x8xf32>
    %84 = vector.extract_strided_slice %27 {offsets = [0, 0, 24], sizes = [1, 8, 8], strides = [1, 1, 1]} : vector<1x8x32xf32> to vector<1x8x8xf32>
    "tpu.trace_start"() <{level = 10 : i32, message = "bqd,bkd->bqk"}> : () -> ()
    %cst_39 = arith.constant dense<0.000000e+00> : vector<1x8x8xf32>
    %85 = tpu.matmul %83, %84, %cst_39 {dimension_numbers = #tpu.dot_dimension_numbers<[2], [2], [1], [1], [0, 0, 0, 1, 1, 1], [0], [0]>} : vector<1x8x8xf32>, vector<1x8x8xf32>, vector<1x8x8xf32> -> vector<1x8x8xf32>
    "tpu.trace_stop"() : () -> ()
    %86 = arith.addf %85, %6 : vector<1x8x8xf32>
    %cst_40 = arith.constant dense<0xFF800000> : vector<1x8xf32>
    %87 = vector.multi_reduction <maximumf>, %86, %cst_40 [2] : vector<1x8x8xf32> to vector<1x8xf32>
    %88 = vector.shape_cast %87 : vector<1x8xf32> to vector<1x8x1xf32>
    %89 = vector.broadcast %88 : vector<1x8x1xf32> to vector<1x8x8xf32>
    %90 = arith.subf %86, %89 : vector<1x8x8xf32>
    %91 = math.exp %90 : vector<1x8x8xf32>
    %cst_41 = arith.constant dense<0.000000e+00> : vector<1x8xf32>
    %92 = vector.multi_reduction <add>, %91, %cst_41 [2] : vector<1x8x8xf32> to vector<1x8xf32>
    %93 = vector.shape_cast %92 : vector<1x8xf32> to vector<1x8x1xf32>
    %94 = tpu.reciprocal %93 {approx = true} : vector<1x8x1xf32> -> vector<1x8x1xf32>
    %95 = vector.broadcast %94 : vector<1x8x1xf32> to vector<1x8x8xf32>
    %96 = arith.mulf %91, %95 : vector<1x8x8xf32>
    %97 = vector.extract_strided_slice %28 {offsets = [0, 0, 24], sizes = [1, 8, 8], strides = [1, 1, 1]} : vector<1x8x32xf32> to vector<1x8x8xf32>
    "tpu.trace_start"() <{level = 10 : i32, message = "bqk,bkd->bqd"}> : () -> ()
    %cst_42 = arith.constant dense<0.000000e+00> : vector<1x8x8xf32>
    %98 = tpu.matmul %96, %97, %cst_42 {dimension_numbers = #tpu.dot_dimension_numbers<[2], [1], [1], [2], [0, 0, 0, 1, 1, 2], [0], [0]>} : vector<1x8x8xf32>, vector<1x8x8xf32>, vector<1x8x8xf32> -> vector<1x8x8xf32>
    "tpu.trace_stop"() : () -> ()
    %99 = vector.shape_cast %98 : vector<1x8x8xf32> to vector<8x8xf32>
    %c0_43 = arith.constant 0 : index
    %c24 = arith.constant 24 : index
    %100 = vector.load %arg22[%c0_43, %c24] : memref<8x32xf32, #tpu.memory_space<vmem>>, vector<8x8xf32>
    tpu.vector_store %arg22[%c0_43, %c24], %99 {strides = array<i32>} : memref<8x32xf32, #tpu.memory_space<vmem>>, vector<8x8xf32>,
    %c0_44 = arith.constant 0 : index
    %c0_45 = arith.constant 0 : index
    %101 = vector.load %arg22[%c0_44, %c0_45] : memref<8x32xf32, #tpu.memory_space<vmem>>, vector<8x32xf32>
    %c0_46 = arith.constant 0 : index
    %c0_47 = arith.constant 0 : index
    %c0_48 = arith.constant 0 : index
    %102 = vector.load %arg9[%c0_46, %c0_47, %c0_48] : memref<2x32x32xf32, #tpu.memory_space<vmem>>, vector<1x32x32xf32>
    %103 = vector.shape_cast %102 : vector<1x32x32xf32> to vector<32x32xf32>
    %cst_49 = arith.constant dense<0.000000e+00> : vector<8x32xf32>
    %104 = tpu.matmul %101, %103, %cst_49 {dimension_numbers = #tpu.dot_dimension_numbers<[1], [0], [0], [1], [0, 0, 1, 1], [], []>} : vector<8x32xf32>, vector<32x32xf32>, vector<8x32xf32> -> vector<8x32xf32>
    %c0_50 = arith.constant 0 : index
    %c0_51 = arith.constant 0 : index
    %c0_52 = arith.constant 0 : index
    %105 = vector.load %arg10[%c0_50, %c0_51, %c0_52] : memref<2x1x32xf32, #tpu.memory_space<vmem>>, vector<1x1x32xf32>
    %106 = vector.shape_cast %105 : vector<1x1x32xf32> to vector<1x32xf32>
    %107 = vector.broadcast %106 : vector<1x32xf32> to vector<8x32xf32>
    %108 = arith.addf %104, %107 : vector<8x32xf32>
    %109 = arith.addf %8, %108 : vector<8x32xf32>
    %c0_53 = arith.constant 0 : index
    %c0_54 = arith.constant 0 : index
    %c0_55 = arith.constant 0 : index
    %110 = vector.load %arg15[%c0_53, %c0_54, %c0_55] : memref<2x1x32xf32, #tpu.memory_space<vmem>>, vector<1x1x32xf32>
    %111 = vector.shape_cast %110 : vector<1x1x32xf32> to vector<1x32xf32>
    %c0_56 = arith.constant 0 : index
    %c0_57 = arith.constant 0 : index
    %c0_58 = arith.constant 0 : index
    %112 = vector.load %arg16[%c0_56, %c0_57, %c0_58] : memref<2x1x32xf32, #tpu.memory_space<vmem>>, vector<1x1x32xf32>
    %113 = vector.shape_cast %112 : vector<1x1x32xf32> to vector<1x32xf32>
    %cst_59 = arith.constant dense<0.000000e+00> : vector<8xf32>
    %114 = vector.multi_reduction <add>, %109, %cst_59 [1] : vector<8x32xf32> to vector<8xf32>
    %115 = vector.shape_cast %114 : vector<8xf32> to vector<8x1xf32>
    %cst_60 = arith.constant 3.200000e+01 : f32
    %116 = vector.broadcast %cst_60 : f32 to vector<8x1xf32>
    %117 = arith.divf %115, %116 : vector<8x1xf32>
    %118 = vector.broadcast %117 : vector<8x1xf32> to vector<8x32xf32>
    %119 = arith.subf %109, %118 : vector<8x32xf32>
    %120 = arith.mulf %119, %119 : vector<8x32xf32>
    %cst_61 = arith.constant dense<0.000000e+00> : vector<8xf32>
    %121 = vector.multi_reduction <add>, %120, %cst_61 [1] : vector<8x32xf32> to vector<8xf32>
    %122 = vector.shape_cast %121 : vector<8xf32> to vector<8x1xf32>
    %cst_62 = arith.constant 3.200000e+01 : f32
    %123 = vector.broadcast %cst_62 : f32 to vector<8x1xf32>
    %124 = arith.divf %122, %123 : vector<8x1xf32>
    %125 = vector.broadcast %117 : vector<8x1xf32> to vector<8x32xf32>
    %126 = arith.subf %109, %125 : vector<8x32xf32>
    %cst_63 = arith.constant 9.99999974E-6 : f32
    %127 = vector.broadcast %cst_63 : f32 to vector<8x1xf32>
    %128 = arith.addf %124, %127 : vector<8x1xf32>
    %129 = math.rsqrt %128 : vector<8x1xf32>
    %130 = vector.broadcast %129 : vector<8x1xf32> to vector<8x32xf32>
    %131 = arith.mulf %126, %130 : vector<8x32xf32>
    %132 = vector.broadcast %111 : vector<1x32xf32> to vector<8x32xf32>
    %133 = arith.mulf %131, %132 : vector<8x32xf32>
    %134 = vector.broadcast %113 : vector<1x32xf32> to vector<8x32xf32>
    %135 = arith.addf %133, %134 : vector<8x32xf32>
    %c0_64 = arith.constant 0 : index
    %c0_65 = arith.constant 0 : index
    %c0_66 = arith.constant 0 : index
    %136 = vector.load %arg11[%c0_64, %c0_65, %c0_66] : memref<2x32x64xf32, #tpu.memory_space<vmem>>, vector<1x32x64xf32>
    %137 = vector.shape_cast %136 : vector<1x32x64xf32> to vector<32x64xf32>
    %cst_67 = arith.constant dense<0.000000e+00> : vector<8x64xf32>
    %138 = tpu.matmul %135, %137, %cst_67 {dimension_numbers = #tpu.dot_dimension_numbers<[1], [0], [0], [1], [0, 0, 1, 1], [], []>} : vector<8x32xf32>, vector<32x64xf32>, vector<8x64xf32> -> vector<8x64xf32>
    %c0_68 = arith.constant 0 : index
    %c0_69 = arith.constant 0 : index
    %c0_70 = arith.constant 0 : index
    %139 = vector.load %arg12[%c0_68, %c0_69, %c0_70] : memref<2x1x64xf32, #tpu.memory_space<vmem>>, vector<1x1x64xf32>
    %140 = vector.shape_cast %139 : vector<1x1x64xf32> to vector<1x64xf32>
    %141 = vector.broadcast %140 : vector<1x64xf32> to vector<8x64xf32>
    %142 = arith.addf %138, %141 : vector<8x64xf32>
    %cst_71 = arith.constant 0.000000e+00 : f32
    %143 = vector.broadcast %cst_71 : f32 to vector<8x64xf32>
    %144 = arith.maximumf %142, %143 : vector<8x64xf32>
    %c0_72 = arith.constant 0 : index
    %c0_73 = arith.constant 0 : index
    %c0_74 = arith.constant 0 : index
    %145 = vector.load %arg13[%c0_72, %c0_73, %c0_74] : memref<2x64x32xf32, #tpu.memory_space<vmem>>, vector<1x64x32xf32>
    %146 = vector.shape_cast %145 : vector<1x64x32xf32> to vector<64x32xf32>
    %cst_75 = arith.constant dense<0.000000e+00> : vector<8x32xf32>
    %147 = tpu.matmul %144, %146, %cst_75 {dimension_numbers = #tpu.dot_dimension_numbers<[1], [0], [0], [1], [0, 0, 1, 1], [], []>} : vector<8x64xf32>, vector<64x32xf32>, vector<8x32xf32> -> vector<8x32xf32>
    %c0_76 = arith.constant 0 : index
    %c0_77 = arith.constant 0 : index
    %c0_78 = arith.constant 0 : index
    %148 = vector.load %arg14[%c0_76, %c0_77, %c0_78] : memref<2x1x32xf32, #tpu.memory_space<vmem>>, vector<1x1x32xf32>
    %149 = vector.shape_cast %148 : vector<1x1x32xf32> to vector<1x32xf32>
    %150 = vector.broadcast %149 : vector<1x32xf32> to vector<8x32xf32>
    %151 = arith.addf %147, %150 : vector<8x32xf32>
    %152 = arith.addf %135, %151 : vector<8x32xf32>
    %c0_79 = arith.constant 0 : index
    %c0_80 = arith.constant 0 : index
    %c0_81 = arith.constant 0 : index
    %153 = vector.load %arg17[%c0_79, %c0_80, %c0_81] : memref<2x1x32xf32, #tpu.memory_space<vmem>>, vector<1x1x32xf32>
    %154 = vector.shape_cast %153 : vector<1x1x32xf32> to vector<1x32xf32>
    %c0_82 = arith.constant 0 : index
    %c0_83 = arith.constant 0 : index
    %c0_84 = arith.constant 0 : index
    %155 = vector.load %arg18[%c0_82, %c0_83, %c0_84] : memref<2x1x32xf32, #tpu.memory_space<vmem>>, vector<1x1x32xf32>
    %156 = vector.shape_cast %155 : vector<1x1x32xf32> to vector<1x32xf32>
    %cst_85 = arith.constant dense<0.000000e+00> : vector<8xf32>
    %157 = vector.multi_reduction <add>, %152, %cst_85 [1] : vector<8x32xf32> to vector<8xf32>
    %158 = vector.shape_cast %157 : vector<8xf32> to vector<8x1xf32>
    %cst_86 = arith.constant 3.200000e+01 : f32
    %159 = vector.broadcast %cst_86 : f32 to vector<8x1xf32>
    %160 = arith.divf %158, %159 : vector<8x1xf32>
    %161 = vector.broadcast %160 : vector<8x1xf32> to vector<8x32xf32>
    %162 = arith.subf %152, %161 : vector<8x32xf32>
    %163 = arith.mulf %162, %162 : vector<8x32xf32>
    %cst_87 = arith.constant dense<0.000000e+00> : vector<8xf32>
    %164 = vector.multi_reduction <add>, %163, %cst_87 [1] : vector<8x32xf32> to vector<8xf32>
    %165 = vector.shape_cast %164 : vector<8xf32> to vector<8x1xf32>
    %cst_88 = arith.constant 3.200000e+01 : f32
    %166 = vector.broadcast %cst_88 : f32 to vector<8x1xf32>
    %167 = arith.divf %165, %166 : vector<8x1xf32>
    %168 = vector.broadcast %160 : vector<8x1xf32> to vector<8x32xf32>
    %169 = arith.subf %152, %168 : vector<8x32xf32>
    %cst_89 = arith.constant 9.99999974E-6 : f32
    %170 = vector.broadcast %cst_89 : f32 to vector<8x1xf32>
    %171 = arith.addf %167, %170 : vector<8x1xf32>
    %172 = math.rsqrt %171 : vector<8x1xf32>
    %173 = vector.broadcast %172 : vector<8x1xf32> to vector<8x32xf32>
    %174 = arith.mulf %169, %173 : vector<8x32xf32>
    %175 = vector.broadcast %154 : vector<1x32xf32> to vector<8x32xf32>
    %176 = arith.mulf %174, %175 : vector<8x32xf32>
    %177 = vector.broadcast %156 : vector<1x32xf32> to vector<8x32xf32>
    %178 = arith.addf %176, %177 : vector<8x32xf32>
    %179 = arith.addf %178, %7 : vector<8x32xf32>
    %c1 = arith.constant 1 : index
    %c0_90 = arith.constant 0 : index
    %c0_91 = arith.constant 0 : index
    %180 = vector.load %arg5[%c1, %c0_90, %c0_91] : memref<2x32x64xf32, #tpu.memory_space<vmem>>, vector<1x32x64xf32>
    %181 = vector.shape_cast %180 : vector<1x32x64xf32> to vector<32x64xf32>
    %cst_92 = arith.constant dense<0.000000e+00> : vector<8x64xf32>
    %182 = tpu.matmul %179, %181, %cst_92 {dimension_numbers = #tpu.dot_dimension_numbers<[1], [0], [0], [1], [0, 0, 1, 1], [], []>} : vector<8x32xf32>, vector<32x64xf32>, vector<8x64xf32> -> vector<8x64xf32>
    %c1_93 = arith.constant 1 : index
    %c0_94 = arith.constant 0 : index
    %c0_95 = arith.constant 0 : index
    %183 = vector.load %arg6[%c1_93, %c0_94, %c0_95] : memref<2x1x64xf32, #tpu.memory_space<vmem>>, vector<1x1x64xf32>
    %184 = vector.shape_cast %183 : vector<1x1x64xf32> to vector<1x64xf32>
    %185 = vector.broadcast %184 : vector<1x64xf32> to vector<8x64xf32>
    %186 = arith.addf %182, %185 : vector<8x64xf32>
    %c1_96 = arith.constant 1 : index
    %c0_97 = arith.constant 0 : index
    %c0_98 = arith.constant 0 : index
    %187 = vector.load %arg7[%c1_96, %c0_97, %c0_98] : memref<2x32x32xf32, #tpu.memory_space<vmem>>, vector<1x32x32xf32>
    %188 = vector.shape_cast %187 : vector<1x32x32xf32> to vector<32x32xf32>
    %cst_99 = arith.constant dense<0.000000e+00> : vector<8x32xf32>
    %189 = tpu.matmul %178, %188, %cst_99 {dimension_numbers = #tpu.dot_dimension_numbers<[1], [0], [0], [1], [0, 0, 1, 1], [], []>} : vector<8x32xf32>, vector<32x32xf32>, vector<8x32xf32> -> vector<8x32xf32>
    %c1_100 = arith.constant 1 : index
    %c0_101 = arith.constant 0 : index
    %c0_102 = arith.constant 0 : index
    %190 = vector.load %arg8[%c1_100, %c0_101, %c0_102] : memref<2x1x32xf32, #tpu.memory_space<vmem>>, vector<1x1x32xf32>
    %191 = vector.shape_cast %190 : vector<1x1x32xf32> to vector<1x32xf32>
    %192 = vector.broadcast %191 : vector<1x32xf32> to vector<8x32xf32>
    %193 = arith.addf %189, %192 : vector<8x32xf32>
    %194 = vector.extract_strided_slice %186 {offsets = [0, 0], sizes = [8, 32], strides = [1, 1]} : vector<8x64xf32> to vector<8x32xf32>
    %195 = vector.shape_cast %194 : vector<8x32xf32> to vector<1x8x32xf32>
    %196 = vector.extract_strided_slice %186 {offsets = [0, 32], sizes = [8, 32], strides = [1, 1]} : vector<8x64xf32> to vector<8x32xf32>
    %197 = vector.shape_cast %196 : vector<8x32xf32> to vector<1x8x32xf32>
    %198 = vector.shape_cast %193 : vector<8x32xf32> to vector<1x8x32xf32>
    %199 = vector.extract_strided_slice %195 {offsets = [0, 0, 0], sizes = [1, 8, 8], strides = [1, 1, 1]} : vector<1x8x32xf32> to vector<1x8x8xf32>
    %200 = vector.extract_strided_slice %197 {offsets = [0, 0, 0], sizes = [1, 8, 8], strides = [1, 1, 1]} : vector<1x8x32xf32> to vector<1x8x8xf32>
    "tpu.trace_start"() <{level = 10 : i32, message = "bqd,bkd->bqk"}> : () -> ()
    %cst_103 = arith.constant dense<0.000000e+00> : vector<1x8x8xf32>
    %201 = tpu.matmul %199, %200, %cst_103 {dimension_numbers = #tpu.dot_dimension_numbers<[2], [2], [1], [1], [0, 0, 0, 1, 1, 1], [0], [0]>} : vector<1x8x8xf32>, vector<1x8x8xf32>, vector<1x8x8xf32> -> vector<1x8x8xf32>
    "tpu.trace_stop"() : () -> ()
    %202 = arith.addf %201, %6 : vector<1x8x8xf32>
    %cst_104 = arith.constant dense<0xFF800000> : vector<1x8xf32>
    %203 = vector.multi_reduction <maximumf>, %202, %cst_104 [2] : vector<1x8x8xf32> to vector<1x8xf32>
    %204 = vector.shape_cast %203 : vector<1x8xf32> to vector<1x8x1xf32>
    %205 = vector.broadcast %204 : vector<1x8x1xf32> to vector<1x8x8xf32>
    %206 = arith.subf %202, %205 : vector<1x8x8xf32>
    %207 = math.exp %206 : vector<1x8x8xf32>
    %cst_105 = arith.constant dense<0.000000e+00> : vector<1x8xf32>
    %208 = vector.multi_reduction <add>, %207, %cst_105 [2] : vector<1x8x8xf32> to vector<1x8xf32>
    %209 = vector.shape_cast %208 : vector<1x8xf32> to vector<1x8x1xf32>
    %210 = tpu.reciprocal %209 {approx = true} : vector<1x8x1xf32> -> vector<1x8x1xf32>
    %211 = vector.broadcast %210 : vector<1x8x1xf32> to vector<1x8x8xf32>
    %212 = arith.mulf %207, %211 : vector<1x8x8xf32>
    %213 = vector.extract_strided_slice %198 {offsets = [0, 0, 0], sizes = [1, 8, 8], strides = [1, 1, 1]} : vector<1x8x32xf32> to vector<1x8x8xf32>
    "tpu.trace_start"() <{level = 10 : i32, message = "bqk,bkd->bqd"}> : () -> ()
    %cst_106 = arith.constant dense<0.000000e+00> : vector<1x8x8xf32>
    %214 = tpu.matmul %212, %213, %cst_106 {dimension_numbers = #tpu.dot_dimension_numbers<[2], [1], [1], [2], [0, 0, 0, 1, 1, 2], [0], [0]>} : vector<1x8x8xf32>, vector<1x8x8xf32>, vector<1x8x8xf32> -> vector<1x8x8xf32>
    "tpu.trace_stop"() : () -> ()
    %215 = vector.shape_cast %214 : vector<1x8x8xf32> to vector<8x8xf32>
    %c0_107 = arith.constant 0 : index
    %c0_108 = arith.constant 0 : index
    %216 = vector.load %arg22[%c0_107, %c0_108] : memref<8x32xf32, #tpu.memory_space<vmem>>, vector<8x8xf32>
    tpu.vector_store %arg22[%c0_107, %c0_108], %215 {strides = array<i32>} : memref<8x32xf32, #tpu.memory_space<vmem>>, vector<8x8xf32>,
    %217 = vector.extract_strided_slice %195 {offsets = [0, 0, 8], sizes = [1, 8, 8], strides = [1, 1, 1]} : vector<1x8x32xf32> to vector<1x8x8xf32>
    %218 = vector.extract_strided_slice %197 {offsets = [0, 0, 8], sizes = [1, 8, 8], strides = [1, 1, 1]} : vector<1x8x32xf32> to vector<1x8x8xf32>
    "tpu.trace_start"() <{level = 10 : i32, message = "bqd,bkd->bqk"}> : () -> ()
    %cst_109 = arith.constant dense<0.000000e+00> : vector<1x8x8xf32>
    %219 = tpu.matmul %217, %218, %cst_109 {dimension_numbers = #tpu.dot_dimension_numbers<[2], [2], [1], [1], [0, 0, 0, 1, 1, 1], [0], [0]>} : vector<1x8x8xf32>, vector<1x8x8xf32>, vector<1x8x8xf32> -> vector<1x8x8xf32>
    "tpu.trace_stop"() : () -> ()
    %220 = arith.addf %219, %6 : vector<1x8x8xf32>
    %cst_110 = arith.constant dense<0xFF800000> : vector<1x8xf32>
    %221 = vector.multi_reduction <maximumf>, %220, %cst_110 [2] : vector<1x8x8xf32> to vector<1x8xf32>
    %222 = vector.shape_cast %221 : vector<1x8xf32> to vector<1x8x1xf32>
    %223 = vector.broadcast %222 : vector<1x8x1xf32> to vector<1x8x8xf32>
    %224 = arith.subf %220, %223 : vector<1x8x8xf32>
    %225 = math.exp %224 : vector<1x8x8xf32>
    %cst_111 = arith.constant dense<0.000000e+00> : vector<1x8xf32>
    %226 = vector.multi_reduction <add>, %225, %cst_111 [2] : vector<1x8x8xf32> to vector<1x8xf32>
    %227 = vector.shape_cast %226 : vector<1x8xf32> to vector<1x8x1xf32>
    %228 = tpu.reciprocal %227 {approx = true} : vector<1x8x1xf32> -> vector<1x8x1xf32>
    %229 = vector.broadcast %228 : vector<1x8x1xf32> to vector<1x8x8xf32>
    %230 = arith.mulf %225, %229 : vector<1x8x8xf32>
    %231 = vector.extract_strided_slice %198 {offsets = [0, 0, 8], sizes = [1, 8, 8], strides = [1, 1, 1]} : vector<1x8x32xf32> to vector<1x8x8xf32>
    "tpu.trace_start"() <{level = 10 : i32, message = "bqk,bkd->bqd"}> : () -> ()
    %cst_112 = arith.constant dense<0.000000e+00> : vector<1x8x8xf32>
    %232 = tpu.matmul %230, %231, %cst_112 {dimension_numbers = #tpu.dot_dimension_numbers<[2], [1], [1], [2], [0, 0, 0, 1, 1, 2], [0], [0]>} : vector<1x8x8xf32>, vector<1x8x8xf32>, vector<1x8x8xf32> -> vector<1x8x8xf32>
    "tpu.trace_stop"() : () -> ()
    %233 = vector.shape_cast %232 : vector<1x8x8xf32> to vector<8x8xf32>
    %c0_113 = arith.constant 0 : index
    %c8_114 = arith.constant 8 : index
    %234 = vector.load %arg22[%c0_113, %c8_114] : memref<8x32xf32, #tpu.memory_space<vmem>>, vector<8x8xf32>
    tpu.vector_store %arg22[%c0_113, %c8_114], %233 {strides = array<i32>} : memref<8x32xf32, #tpu.memory_space<vmem>>, vector<8x8xf32>,
    %235 = vector.extract_strided_slice %195 {offsets = [0, 0, 16], sizes = [1, 8, 8], strides = [1, 1, 1]} : vector<1x8x32xf32> to vector<1x8x8xf32>
    %236 = vector.extract_strided_slice %197 {offsets = [0, 0, 16], sizes = [1, 8, 8], strides = [1, 1, 1]} : vector<1x8x32xf32> to vector<1x8x8xf32>
    "tpu.trace_start"() <{level = 10 : i32, message = "bqd,bkd->bqk"}> : () -> ()
    %cst_115 = arith.constant dense<0.000000e+00> : vector<1x8x8xf32>
    %237 = tpu.matmul %235, %236, %cst_115 {dimension_numbers = #tpu.dot_dimension_numbers<[2], [2], [1], [1], [0, 0, 0, 1, 1, 1], [0], [0]>} : vector<1x8x8xf32>, vector<1x8x8xf32>, vector<1x8x8xf32> -> vector<1x8x8xf32>
    "tpu.trace_stop"() : () -> ()
    %238 = arith.addf %237, %6 : vector<1x8x8xf32>
    %cst_116 = arith.constant dense<0xFF800000> : vector<1x8xf32>
    %239 = vector.multi_reduction <maximumf>, %238, %cst_116 [2] : vector<1x8x8xf32> to vector<1x8xf32>
    %240 = vector.shape_cast %239 : vector<1x8xf32> to vector<1x8x1xf32>
    %241 = vector.broadcast %240 : vector<1x8x1xf32> to vector<1x8x8xf32>
    %242 = arith.subf %238, %241 : vector<1x8x8xf32>
    %243 = math.exp %242 : vector<1x8x8xf32>
    %cst_117 = arith.constant dense<0.000000e+00> : vector<1x8xf32>
    %244 = vector.multi_reduction <add>, %243, %cst_117 [2] : vector<1x8x8xf32> to vector<1x8xf32>
    %245 = vector.shape_cast %244 : vector<1x8xf32> to vector<1x8x1xf32>
    %246 = tpu.reciprocal %245 {approx = true} : vector<1x8x1xf32> -> vector<1x8x1xf32>
    %247 = vector.broadcast %246 : vector<1x8x1xf32> to vector<1x8x8xf32>
    %248 = arith.mulf %243, %247 : vector<1x8x8xf32>
    %249 = vector.extract_strided_slice %198 {offsets = [0, 0, 16], sizes = [1, 8, 8], strides = [1, 1, 1]} : vector<1x8x32xf32> to vector<1x8x8xf32>
    "tpu.trace_start"() <{level = 10 : i32, message = "bqk,bkd->bqd"}> : () -> ()
    %cst_118 = arith.constant dense<0.000000e+00> : vector<1x8x8xf32>
    %250 = tpu.matmul %248, %249, %cst_118 {dimension_numbers = #tpu.dot_dimension_numbers<[2], [1], [1], [2], [0, 0, 0, 1, 1, 2], [0], [0]>} : vector<1x8x8xf32>, vector<1x8x8xf32>, vector<1x8x8xf32> -> vector<1x8x8xf32>
    "tpu.trace_stop"() : () -> ()
    %251 = vector.shape_cast %250 : vector<1x8x8xf32> to vector<8x8xf32>
    %c0_119 = arith.constant 0 : index
    %c16_120 = arith.constant 16 : index
    %252 = vector.load %arg22[%c0_119, %c16_120] : memref<8x32xf32, #tpu.memory_space<vmem>>, vector<8x8xf32>
    tpu.vector_store %arg22[%c0_119, %c16_120], %251 {strides = array<i32>} : memref<8x32xf32, #tpu.memory_space<vmem>>, vector<8x8xf32>,
    %253 = vector.extract_strided_slice %195 {offsets = [0, 0, 24], sizes = [1, 8, 8], strides = [1, 1, 1]} : vector<1x8x32xf32> to vector<1x8x8xf32>
    %254 = vector.extract_strided_slice %197 {offsets = [0, 0, 24], sizes = [1, 8, 8], strides = [1, 1, 1]} : vector<1x8x32xf32> to vector<1x8x8xf32>
    "tpu.trace_start"() <{level = 10 : i32, message = "bqd,bkd->bqk"}> : () -> ()
    %cst_121 = arith.constant dense<0.000000e+00> : vector<1x8x8xf32>
    %255 = tpu.matmul %253, %254, %cst_121 {dimension_numbers = #tpu.dot_dimension_numbers<[2], [2], [1], [1], [0, 0, 0, 1, 1, 1], [0], [0]>} : vector<1x8x8xf32>, vector<1x8x8xf32>, vector<1x8x8xf32> -> vector<1x8x8xf32>
    "tpu.trace_stop"() : () -> ()
    %256 = arith.addf %255, %6 : vector<1x8x8xf32>
    %cst_122 = arith.constant dense<0xFF800000> : vector<1x8xf32>
    %257 = vector.multi_reduction <maximumf>, %256, %cst_122 [2] : vector<1x8x8xf32> to vector<1x8xf32>
    %258 = vector.shape_cast %257 : vector<1x8xf32> to vector<1x8x1xf32>
    %259 = vector.broadcast %258 : vector<1x8x1xf32> to vector<1x8x8xf32>
    %260 = arith.subf %256, %259 : vector<1x8x8xf32>
    %261 = math.exp %260 : vector<1x8x8xf32>
    %cst_123 = arith.constant dense<0.000000e+00> : vector<1x8xf32>
    %262 = vector.multi_reduction <add>, %261, %cst_123 [2] : vector<1x8x8xf32> to vector<1x8xf32>
    %263 = vector.shape_cast %262 : vector<1x8xf32> to vector<1x8x1xf32>
    %264 = tpu.reciprocal %263 {approx = true} : vector<1x8x1xf32> -> vector<1x8x1xf32>
    %265 = vector.broadcast %264 : vector<1x8x1xf32> to vector<1x8x8xf32>
    %266 = arith.mulf %261, %265 : vector<1x8x8xf32>
    %267 = vector.extract_strided_slice %198 {offsets = [0, 0, 24], sizes = [1, 8, 8], strides = [1, 1, 1]} : vector<1x8x32xf32> to vector<1x8x8xf32>
    "tpu.trace_start"() <{level = 10 : i32, message = "bqk,bkd->bqd"}> : () -> ()
    %cst_124 = arith.constant dense<0.000000e+00> : vector<1x8x8xf32>
    %268 = tpu.matmul %266, %267, %cst_124 {dimension_numbers = #tpu.dot_dimension_numbers<[2], [1], [1], [2], [0, 0, 0, 1, 1, 2], [0], [0]>} : vector<1x8x8xf32>, vector<1x8x8xf32>, vector<1x8x8xf32> -> vector<1x8x8xf32>
    "tpu.trace_stop"() : () -> ()
    %269 = vector.shape_cast %268 : vector<1x8x8xf32> to vector<8x8xf32>
    %c0_125 = arith.constant 0 : index
    %c24_126 = arith.constant 24 : index
    %270 = vector.load %arg22[%c0_125, %c24_126] : memref<8x32xf32, #tpu.memory_space<vmem>>, vector<8x8xf32>
    tpu.vector_store %arg22[%c0_125, %c24_126], %269 {strides = array<i32>} : memref<8x32xf32, #tpu.memory_space<vmem>>, vector<8x8xf32>,
    %c0_127 = arith.constant 0 : index
    %c0_128 = arith.constant 0 : index
    %271 = vector.load %arg22[%c0_127, %c0_128] : memref<8x32xf32, #tpu.memory_space<vmem>>, vector<8x32xf32>
    %c1_129 = arith.constant 1 : index
    %c0_130 = arith.constant 0 : index
    %c0_131 = arith.constant 0 : index
    %272 = vector.load %arg9[%c1_129, %c0_130, %c0_131] : memref<2x32x32xf32, #tpu.memory_space<vmem>>, vector<1x32x32xf32>
    %273 = vector.shape_cast %272 : vector<1x32x32xf32> to vector<32x32xf32>
    %cst_132 = arith.constant dense<0.000000e+00> : vector<8x32xf32>
    %274 = tpu.matmul %271, %273, %cst_132 {dimension_numbers = #tpu.dot_dimension_numbers<[1], [0], [0], [1], [0, 0, 1, 1], [], []>} : vector<8x32xf32>, vector<32x32xf32>, vector<8x32xf32> -> vector<8x32xf32>
    %c1_133 = arith.constant 1 : index
    %c0_134 = arith.constant 0 : index
    %c0_135 = arith.constant 0 : index
    %275 = vector.load %arg10[%c1_133, %c0_134, %c0_135] : memref<2x1x32xf32, #tpu.memory_space<vmem>>, vector<1x1x32xf32>
    %276 = vector.shape_cast %275 : vector<1x1x32xf32> to vector<1x32xf32>
    %277 = vector.broadcast %276 : vector<1x32xf32> to vector<8x32xf32>
    %278 = arith.addf %274, %277 : vector<8x32xf32>
    %279 = arith.addf %178, %278 : vector<8x32xf32>
    %c1_136 = arith.constant 1 : index
    %c0_137 = arith.constant 0 : index
    %c0_138 = arith.constant 0 : index
    %280 = vector.load %arg15[%c1_136, %c0_137, %c0_138] : memref<2x1x32xf32, #tpu.memory_space<vmem>>, vector<1x1x32xf32>
    %281 = vector.shape_cast %280 : vector<1x1x32xf32> to vector<1x32xf32>
    %c1_139 = arith.constant 1 : index
    %c0_140 = arith.constant 0 : index
    %c0_141 = arith.constant 0 : index
    %282 = vector.load %arg16[%c1_139, %c0_140, %c0_141] : memref<2x1x32xf32, #tpu.memory_space<vmem>>, vector<1x1x32xf32>
    %283 = vector.shape_cast %282 : vector<1x1x32xf32> to vector<1x32xf32>
    %cst_142 = arith.constant dense<0.000000e+00> : vector<8xf32>
    %284 = vector.multi_reduction <add>, %279, %cst_142 [1] : vector<8x32xf32> to vector<8xf32>
    %285 = vector.shape_cast %284 : vector<8xf32> to vector<8x1xf32>
    %cst_143 = arith.constant 3.200000e+01 : f32
    %286 = vector.broadcast %cst_143 : f32 to vector<8x1xf32>
    %287 = arith.divf %285, %286 : vector<8x1xf32>
    %288 = vector.broadcast %287 : vector<8x1xf32> to vector<8x32xf32>
    %289 = arith.subf %279, %288 : vector<8x32xf32>
    %290 = arith.mulf %289, %289 : vector<8x32xf32>
    %cst_144 = arith.constant dense<0.000000e+00> : vector<8xf32>
    %291 = vector.multi_reduction <add>, %290, %cst_144 [1] : vector<8x32xf32> to vector<8xf32>
    %292 = vector.shape_cast %291 : vector<8xf32> to vector<8x1xf32>
    %cst_145 = arith.constant 3.200000e+01 : f32
    %293 = vector.broadcast %cst_145 : f32 to vector<8x1xf32>
    %294 = arith.divf %292, %293 : vector<8x1xf32>
    %295 = vector.broadcast %287 : vector<8x1xf32> to vector<8x32xf32>
    %296 = arith.subf %279, %295 : vector<8x32xf32>
    %cst_146 = arith.constant 9.99999974E-6 : f32
    %297 = vector.broadcast %cst_146 : f32 to vector<8x1xf32>
    %298 = arith.addf %294, %297 : vector<8x1xf32>
    %299 = math.rsqrt %298 : vector<8x1xf32>
    %300 = vector.broadcast %299 : vector<8x1xf32> to vector<8x32xf32>
    %301 = arith.mulf %296, %300 : vector<8x32xf32>
    %302 = vector.broadcast %281 : vector<1x32xf32> to vector<8x32xf32>
    %303 = arith.mulf %301, %302 : vector<8x32xf32>
    %304 = vector.broadcast %283 : vector<1x32xf32> to vector<8x32xf32>
    %305 = arith.addf %303, %304 : vector<8x32xf32>
    %c1_147 = arith.constant 1 : index
    %c0_148 = arith.constant 0 : index
    %c0_149 = arith.constant 0 : index
    %306 = vector.load %arg11[%c1_147, %c0_148, %c0_149] : memref<2x32x64xf32, #tpu.memory_space<vmem>>, vector<1x32x64xf32>
    %307 = vector.shape_cast %306 : vector<1x32x64xf32> to vector<32x64xf32>
    %cst_150 = arith.constant dense<0.000000e+00> : vector<8x64xf32>
    %308 = tpu.matmul %305, %307, %cst_150 {dimension_numbers = #tpu.dot_dimension_numbers<[1], [0], [0], [1], [0, 0, 1, 1], [], []>} : vector<8x32xf32>, vector<32x64xf32>, vector<8x64xf32> -> vector<8x64xf32>
    %c1_151 = arith.constant 1 : index
    %c0_152 = arith.constant 0 : index
    %c0_153 = arith.constant 0 : index
    %309 = vector.load %arg12[%c1_151, %c0_152, %c0_153] : memref<2x1x64xf32, #tpu.memory_space<vmem>>, vector<1x1x64xf32>
    %310 = vector.shape_cast %309 : vector<1x1x64xf32> to vector<1x64xf32>
    %311 = vector.broadcast %310 : vector<1x64xf32> to vector<8x64xf32>
    %312 = arith.addf %308, %311 : vector<8x64xf32>
    %cst_154 = arith.constant 0.000000e+00 : f32
    %313 = vector.broadcast %cst_154 : f32 to vector<8x64xf32>
    %314 = arith.maximumf %312, %313 : vector<8x64xf32>
    %c1_155 = arith.constant 1 : index
    %c0_156 = arith.constant 0 : index
    %c0_157 = arith.constant 0 : index
    %315 = vector.load %arg13[%c1_155, %c0_156, %c0_157] : memref<2x64x32xf32, #tpu.memory_space<vmem>>, vector<1x64x32xf32>
    %316 = vector.shape_cast %315 : vector<1x64x32xf32> to vector<64x32xf32>
    %cst_158 = arith.constant dense<0.000000e+00> : vector<8x32xf32>
    %317 = tpu.matmul %314, %316, %cst_158 {dimension_numbers = #tpu.dot_dimension_numbers<[1], [0], [0], [1], [0, 0, 1, 1], [], []>} : vector<8x64xf32>, vector<64x32xf32>, vector<8x32xf32> -> vector<8x32xf32>
    %c1_159 = arith.constant 1 : index
    %c0_160 = arith.constant 0 : index
    %c0_161 = arith.constant 0 : index
    %318 = vector.load %arg14[%c1_159, %c0_160, %c0_161] : memref<2x1x32xf32, #tpu.memory_space<vmem>>, vector<1x1x32xf32>
    %319 = vector.shape_cast %318 : vector<1x1x32xf32> to vector<1x32xf32>
    %320 = vector.broadcast %319 : vector<1x32xf32> to vector<8x32xf32>
    %321 = arith.addf %317, %320 : vector<8x32xf32>
    %322 = arith.addf %305, %321 : vector<8x32xf32>
    %c1_162 = arith.constant 1 : index
    %c0_163 = arith.constant 0 : index
    %c0_164 = arith.constant 0 : index
    %323 = vector.load %arg17[%c1_162, %c0_163, %c0_164] : memref<2x1x32xf32, #tpu.memory_space<vmem>>, vector<1x1x32xf32>
    %324 = vector.shape_cast %323 : vector<1x1x32xf32> to vector<1x32xf32>
    %c1_165 = arith.constant 1 : index
    %c0_166 = arith.constant 0 : index
    %c0_167 = arith.constant 0 : index
    %325 = vector.load %arg18[%c1_165, %c0_166, %c0_167] : memref<2x1x32xf32, #tpu.memory_space<vmem>>, vector<1x1x32xf32>
    %326 = vector.shape_cast %325 : vector<1x1x32xf32> to vector<1x32xf32>
    %cst_168 = arith.constant dense<0.000000e+00> : vector<8xf32>
    %327 = vector.multi_reduction <add>, %322, %cst_168 [1] : vector<8x32xf32> to vector<8xf32>
    %328 = vector.shape_cast %327 : vector<8xf32> to vector<8x1xf32>
    %cst_169 = arith.constant 3.200000e+01 : f32
    %329 = vector.broadcast %cst_169 : f32 to vector<8x1xf32>
    %330 = arith.divf %328, %329 : vector<8x1xf32>
    %331 = vector.broadcast %330 : vector<8x1xf32> to vector<8x32xf32>
    %332 = arith.subf %322, %331 : vector<8x32xf32>
    %333 = arith.mulf %332, %332 : vector<8x32xf32>
    %cst_170 = arith.constant dense<0.000000e+00> : vector<8xf32>
    %334 = vector.multi_reduction <add>, %333, %cst_170 [1] : vector<8x32xf32> to vector<8xf32>
    %335 = vector.shape_cast %334 : vector<8xf32> to vector<8x1xf32>
    %cst_171 = arith.constant 3.200000e+01 : f32
    %336 = vector.broadcast %cst_171 : f32 to vector<8x1xf32>
    %337 = arith.divf %335, %336 : vector<8x1xf32>
    %338 = vector.broadcast %330 : vector<8x1xf32> to vector<8x32xf32>
    %339 = arith.subf %322, %338 : vector<8x32xf32>
    %cst_172 = arith.constant 9.99999974E-6 : f32
    %340 = vector.broadcast %cst_172 : f32 to vector<8x1xf32>
    %341 = arith.addf %337, %340 : vector<8x1xf32>
    %342 = math.rsqrt %341 : vector<8x1xf32>
    %343 = vector.broadcast %342 : vector<8x1xf32> to vector<8x32xf32>
    %344 = arith.mulf %339, %343 : vector<8x32xf32>
    %345 = vector.broadcast %324 : vector<1x32xf32> to vector<8x32xf32>
    %346 = arith.mulf %344, %345 : vector<8x32xf32>
    %347 = vector.broadcast %326 : vector<1x32xf32> to vector<8x32xf32>
    %348 = arith.addf %346, %347 : vector<8x32xf32>
    %c0_173 = arith.constant 0 : index
    %c0_174 = arith.constant 0 : index
    %349 = vector.load %arg19[%c0_173, %c0_174] : memref<1x32xf32, #tpu.memory_space<vmem>>, vector<1x32xf32>
    %c0_175 = arith.constant 0 : index
    %c0_176 = arith.constant 0 : index
    %350 = vector.load %arg20[%c0_175, %c0_176] : memref<1x32xf32, #tpu.memory_space<vmem>>, vector<1x32xf32>
    %cst_177 = arith.constant dense<0.000000e+00> : vector<8xf32>
    %351 = vector.multi_reduction <add>, %348, %cst_177 [1] : vector<8x32xf32> to vector<8xf32>
    %352 = vector.shape_cast %351 : vector<8xf32> to vector<8x1xf32>
    %cst_178 = arith.constant 3.200000e+01 : f32
    %353 = vector.broadcast %cst_178 : f32 to vector<8x1xf32>
    %354 = arith.divf %352, %353 : vector<8x1xf32>
    %355 = vector.broadcast %354 : vector<8x1xf32> to vector<8x32xf32>
    %356 = arith.subf %348, %355 : vector<8x32xf32>
    %357 = arith.mulf %356, %356 : vector<8x32xf32>
    %cst_179 = arith.constant dense<0.000000e+00> : vector<8xf32>
    %358 = vector.multi_reduction <add>, %357, %cst_179 [1] : vector<8x32xf32> to vector<8xf32>
    %359 = vector.shape_cast %358 : vector<8xf32> to vector<8x1xf32>
    %cst_180 = arith.constant 3.200000e+01 : f32
    %360 = vector.broadcast %cst_180 : f32 to vector<8x1xf32>
    %361 = arith.divf %359, %360 : vector<8x1xf32>
    %362 = vector.broadcast %354 : vector<8x1xf32> to vector<8x32xf32>
    %363 = arith.subf %348, %362 : vector<8x32xf32>
    %cst_181 = arith.constant 9.99999974E-6 : f32
    %364 = vector.broadcast %cst_181 : f32 to vector<8x1xf32>
    %365 = arith.addf %361, %364 : vector<8x1xf32>
    %366 = math.rsqrt %365 : vector<8x1xf32>
    %367 = vector.broadcast %366 : vector<8x1xf32> to vector<8x32xf32>
    %368 = arith.mulf %363, %367 : vector<8x32xf32>
    %369 = vector.broadcast %349 : vector<1x32xf32> to vector<8x32xf32>
    %370 = arith.mulf %368, %369 : vector<8x32xf32>
    %371 = vector.broadcast %350 : vector<1x32xf32> to vector<8x32xf32>
    %372 = arith.addf %370, %371 : vector<8x32xf32>
    %373 = vector.shape_cast %372 : vector<8x32xf32> to vector<1x8x32xf32>
    %c0_182 = arith.constant 0 : index
    %c0_183 = arith.constant 0 : index
    %c0_184 = arith.constant 0 : index
    %374 = vector.load %arg21[%c0_182, %c0_183, %c0_184] : memref<1x8x32xf32, #tpu.memory_space<vmem>>, vector<1x8x32xf32>
    tpu.vector_store %arg21[%c0_182, %c0_183, %c0_184], %373 {strides = array<i32>} : memref<1x8x32xf32, #tpu.memory_space<vmem>>, vector<1x8x32xf32>,
    return
  }
  func.func @transform_0(%arg0: i32) -> (i32, i32, i32) {
    %c0_i32 = arith.constant 0 : i32
    %c0_i32_0 = arith.constant 0 : i32
    %c0_i32_1 = arith.constant 0 : i32
    return %arg0, %c0_i32, %c0_i32_0 : i32, i32, i32
  }
  func.func @transform_1(%arg0: i32) -> (i32, i32, i32) {
    %c0_i32 = arith.constant 0 : i32
    %c0_i32_0 = arith.constant 0 : i32
    %c0_i32_1 = arith.constant 0 : i32
    return %arg0, %c0_i32, %c0_i32_0 : i32, i32, i32
  }
  func.func @transform_2(%arg0: i32) -> (i32, i32) {
    %c0_i32 = arith.constant 0 : i32
    %c0_i32_0 = arith.constant 0 : i32
    %c0_i32_1 = arith.constant 0 : i32
    return %c0_i32, %c0_i32_0 : i32, i32
  }
  func.func @transform_3(%arg0: i32) -> (i32, i32, i32) {
    %c0_i32 = arith.constant 0 : i32
    %c0_i32_0 = arith.constant 0 : i32
    %c0_i32_1 = arith.constant 0 : i32
    return %arg0, %c0_i32, %c0_i32_0 : i32, i32, i32
  }
  func.func @transform_4(%arg0: i32) -> (i32, i32, i32) {
    %c0_i32 = arith.constant 0 : i32
    %c0_i32_0 = arith.constant 0 : i32
    %c0_i32_1 = arith.constant 0 : i32
    %c0_i32_2 = arith.constant 0 : i32
    return %c0_i32, %c0_i32_0, %c0_i32_1 : i32, i32, i32
  }
  func.func @transform_5(%arg0: i32) -> (i32, i32, i32) {
    %c0_i32 = arith.constant 0 : i32
    %c0_i32_0 = arith.constant 0 : i32
    %c0_i32_1 = arith.constant 0 : i32
    %c0_i32_2 = arith.constant 0 : i32
    return %c0_i32, %c0_i32_0, %c0_i32_1 : i32, i32, i32
  }
  func.func @transform_6(%arg0: i32) -> (i32, i32, i32) {
    %c0_i32 = arith.constant 0 : i32
    %c0_i32_0 = arith.constant 0 : i32
    %c0_i32_1 = arith.constant 0 : i32
    %c0_i32_2 = arith.constant 0 : i32
    return %c0_i32, %c0_i32_0, %c0_i32_1 : i32, i32, i32
  }
  func.func @transform_7(%arg0: i32) -> (i32, i32, i32) {
    %c0_i32 = arith.constant 0 : i32
    %c0_i32_0 = arith.constant 0 : i32
    %c0_i32_1 = arith.constant 0 : i32
    %c0_i32_2 = arith.constant 0 : i32
    return %c0_i32, %c0_i32_0, %c0_i32_1 : i32, i32, i32
  }
  func.func @transform_8(%arg0: i32) -> (i32, i32, i32) {
    %c0_i32 = arith.constant 0 : i32
    %c0_i32_0 = arith.constant 0 : i32
    %c0_i32_1 = arith.constant 0 : i32
    %c0_i32_2 = arith.constant 0 : i32
    return %c0_i32, %c0_i32_0, %c0_i32_1 : i32, i32, i32
  }
  func.func @transform_9(%arg0: i32) -> (i32, i32, i32) {
    %c0_i32 = arith.constant 0 : i32
    %c0_i32_0 = arith.constant 0 : i32
    %c0_i32_1 = arith.constant 0 : i32
    %c0_i32_2 = arith.constant 0 : i32
    return %c0_i32, %c0_i32_0, %c0_i32_1 : i32, i32, i32
  }
  func.func @transform_10(%arg0: i32) -> (i32, i32, i32) {
    %c0_i32 = arith.constant 0 : i32
    %c0_i32_0 = arith.constant 0 : i32
    %c0_i32_1 = arith.constant 0 : i32
    %c0_i32_2 = arith.constant 0 : i32
    return %c0_i32, %c0_i32_0, %c0_i32_1 : i32, i32, i32
  }
  func.func @transform_11(%arg0: i32) -> (i32, i32, i32) {
    %c0_i32 = arith.constant 0 : i32
    %c0_i32_0 = arith.constant 0 : i32
    %c0_i32_1 = arith.constant 0 : i32
    %c0_i32_2 = arith.constant 0 : i32
    return %c0_i32, %c0_i32_0, %c0_i32_1 : i32, i32, i32
  }
  func.func @transform_12(%arg0: i32) -> (i32, i32, i32) {
    %c0_i32 = arith.constant 0 : i32
    %c0_i32_0 = arith.constant 0 : i32
    %c0_i32_1 = arith.constant 0 : i32
    %c0_i32_2 = arith.constant 0 : i32
    return %c0_i32, %c0_i32_0, %c0_i32_1 : i32, i32, i32
  }
  func.func @transform_13(%arg0: i32) -> (i32, i32, i32) {
    %c0_i32 = arith.constant 0 : i32
    %c0_i32_0 = arith.constant 0 : i32
    %c0_i32_1 = arith.constant 0 : i32
    %c0_i32_2 = arith.constant 0 : i32
    return %c0_i32, %c0_i32_0, %c0_i32_1 : i32, i32, i32
  }
  func.func @transform_14(%arg0: i32) -> (i32, i32, i32) {
    %c0_i32 = arith.constant 0 : i32
    %c0_i32_0 = arith.constant 0 : i32
    %c0_i32_1 = arith.constant 0 : i32
    %c0_i32_2 = arith.constant 0 : i32
    return %c0_i32, %c0_i32_0, %c0_i32_1 : i32, i32, i32
  }
  func.func @transform_15(%arg0: i32) -> (i32, i32, i32) {
    %c0_i32 = arith.constant 0 : i32
    %c0_i32_0 = arith.constant 0 : i32
    %c0_i32_1 = arith.constant 0 : i32
    %c0_i32_2 = arith.constant 0 : i32
    return %c0_i32, %c0_i32_0, %c0_i32_1 : i32, i32, i32
  }
  func.func @transform_16(%arg0: i32) -> (i32, i32, i32) {
    %c0_i32 = arith.constant 0 : i32
    %c0_i32_0 = arith.constant 0 : i32
    %c0_i32_1 = arith.constant 0 : i32
    %c0_i32_2 = arith.constant 0 : i32
    return %c0_i32, %c0_i32_0, %c0_i32_1 : i32, i32, i32
  }
  func.func @transform_17(%arg0: i32) -> (i32, i32, i32) {
    %c0_i32 = arith.constant 0 : i32
    %c0_i32_0 = arith.constant 0 : i32
    %c0_i32_1 = arith.constant 0 : i32
    %c0_i32_2 = arith.constant 0 : i32
    return %c0_i32, %c0_i32_0, %c0_i32_1 : i32, i32, i32
  }
  func.func @transform_18(%arg0: i32) -> (i32, i32) {
    %c0_i32 = arith.constant 0 : i32
    %c0_i32_0 = arith.constant 0 : i32
    %c0_i32_1 = arith.constant 0 : i32
    return %c0_i32, %c0_i32_0 : i32, i32
  }
  func.func @transform_19(%arg0: i32) -> (i32, i32) {
    %c0_i32 = arith.constant 0 : i32
    %c0_i32_0 = arith.constant 0 : i32
    %c0_i32_1 = arith.constant 0 : i32
    return %c0_i32, %c0_i32_0 : i32, i32
  }
  func.func @transform_20(%arg0: i32) -> (i32, i32, i32) {
    %c0_i32 = arith.constant 0 : i32
    %c0_i32_0 = arith.constant 0 : i32
    %c0_i32_1 = arith.constant 0 : i32
    return %arg0, %c0_i32, %c0_i32_0 : i32, i32, i32
  }
}

module attributes {stable_mosaic.version = 11 : i64} {
  func.func @_fused_decoder_kernel(%arg0: i32, %arg1: memref<1x8x32xf32, #tpu.memory_space<vmem>>, %arg2: memref<1x8x32xf32, #tpu.memory_space<vmem>>, %arg3: memref<8x8xf32, #tpu.memory_space<vmem>>, %arg4: memref<1x1x8xf32, #tpu.memory_space<vmem>>, %arg5: memref<2x32x64xf32, #tpu.memory_space<vmem>>, %arg6: memref<2x1x64xf32, #tpu.memory_space<vmem>>, %arg7: memref<2x32x32xf32, #tpu.memory_space<vmem>>, %arg8: memref<2x1x32xf32, #tpu.memory_space<vmem>>, %arg9: memref<2x32x32xf32, #tpu.memory_space<vmem>>, %arg10: memref<2x1x32xf32, #tpu.memory_space<vmem>>, %arg11: memref<2x32x64xf32, #tpu.memory_space<vmem>>, %arg12: memref<2x1x64xf32, #tpu.memory_space<vmem>>, %arg13: memref<2x64x32xf32, #tpu.memory_space<vmem>>, %arg14: memref<2x1x32xf32, #tpu.memory_space<vmem>>, %arg15: memref<2x1x32xf32, #tpu.memory_space<vmem>>, %arg16: memref<2x1x32xf32, #tpu.memory_space<vmem>>, %arg17: memref<2x1x32xf32, #tpu.memory_space<vmem>>, %arg18: memref<2x1x32xf32, #tpu.memory_space<vmem>>, %arg19: memref<1x32xf32, #tpu.memory_space<vmem>>, %arg20: memref<1x32xf32, #tpu.memory_space<vmem>>, %arg21: memref<1x8x32xf32, #tpu.memory_space<vmem>>, %arg22: memref<8x32xf32, #tpu.memory_space<vmem>>) attributes {dimension_semantics = [#tpu.dimension_semantics<parallel>], iteration_bounds = array<i64: 2>, scalar_prefetch = 0 : i64, scratch_operands = 1 : i64, tpu.core_type = #tpu.core_type<tc>, window_params = [{transform_indices = @transform_0, window_bounds = array<i64: 1, 8, 32>}, {transform_indices = @transform_1, window_bounds = array<i64: 1, 8, 32>}, {pipeline_mode = #tpu.pipeline_mode<synchronous>, transform_indices = @transform_2, window_bounds = array<i64: 8, 8>}, {transform_indices = @transform_3, window_bounds = array<i64: 1, 1, 8>}, {pipeline_mode = #tpu.pipeline_mode<synchronous>, transform_indices = @transform_4, window_bounds = array<i64: 2, 32, 64>}, {pipeline_mode = #tpu.pipeline_mode<synchronous>, transform_indices = @transform_5, window_bounds = array<i64: 2, 1, 64>}, {pipeline_mode = #tpu.pipeline_mode<synchronous>, transform_indices = @transform_6, window_bounds = array<i64: 2, 32, 32>}, {pipeline_mode = #tpu.pipeline_mode<synchronous>, transform_indices = @transform_7, window_bounds = array<i64: 2, 1, 32>}, {pipeline_mode = #tpu.pipeline_mode<synchronous>, transform_indices = @transform_8, window_bounds = array<i64: 2, 32, 32>}, {pipeline_mode = #tpu.pipeline_mode<synchronous>, transform_indices = @transform_9, window_bounds = array<i64: 2, 1, 32>}, {pipeline_mode = #tpu.pipeline_mode<synchronous>, transform_indices = @transform_10, window_bounds = array<i64: 2, 32, 64>}, {pipeline_mode = #tpu.pipeline_mode<synchronous>, transform_indices = @transform_11, window_bounds = array<i64: 2, 1, 64>}, {pipeline_mode = #tpu.pipeline_mode<synchronous>, transform_indices = @transform_12, window_bounds = array<i64: 2, 64, 32>}, {pipeline_mode = #tpu.pipeline_mode<synchronous>, transform_indices = @transform_13, window_bounds = array<i64: 2, 1, 32>}, {pipeline_mode = #tpu.pipeline_mode<synchronous>, transform_indices = @transform_14, window_bounds = array<i64: 2, 1, 32>}, {pipeline_mode = #tpu.pipeline_mode<synchronous>, transform_indices = @transform_15, window_bounds = array<i64: 2, 1, 32>}, {pipeline_mode = #tpu.pipeline_mode<synchronous>, transform_indices = @transform_16, window_bounds = array<i64: 2, 1, 32>}, {pipeline_mode = #tpu.pipeline_mode<synchronous>, transform_indices = @transform_17, window_bounds = array<i64: 2, 1, 32>}, {pipeline_mode = #tpu.pipeline_mode<synchronous>, transform_indices = @transform_18, window_bounds = array<i64: 1, 32>}, {pipeline_mode = #tpu.pipeline_mode<synchronous>, transform_indices = @transform_19, window_bounds = array<i64: 1, 32>}, {transform_indices = @transform_20, window_bounds = array<i64: 1, 8, 32>}]} {
    %c0 = arith.constant 0 : index
    %c0_0 = arith.constant 0 : index
    %c0_1 = arith.constant 0 : index
    %0 = vector.load %arg1[%c0, %c0_0, %c0_1] : memref<1x8x32xf32, #tpu.memory_space<vmem>>, vector<1x8x32xf32>
    %c0_2 = arith.constant 0 : index
    %c0_3 = arith.constant 0 : index
    %c0_4 = arith.constant 0 : index
    %1 = vector.load %arg2[%c0_2, %c0_3, %c0_4] : memref<1x8x32xf32, #tpu.memory_space<vmem>>, vector<1x8x32xf32>
    %c0_5 = arith.constant 0 : index
    %c0_6 = arith.constant 0 : index
    %2 = vector.load %arg3[%c0_5, %c0_6] : memref<8x8xf32, #tpu.memory_space<vmem>>, vector<8x8xf32>
    %3 = vector.shape_cast %2 : vector<8x8xf32> to vector<1x8x8xf32>
    %c0_7 = arith.constant 0 : index
    %c0_8 = arith.constant 0 : index
    %c0_9 = arith.constant 0 : index
    %4 = vector.load %arg4[%c0_7, %c0_8, %c0_9] : memref<1x1x8xf32, #tpu.memory_space<vmem>>, vector<1x1x8xf32>
    %5 = vector.broadcast %4 : vector<1x1x8xf32> to vector<1x8x8xf32>
    %6 = arith.addf %3, %5 : vector<1x8x8xf32>
    %7 = vector.shape_cast %1 : vector<1x8x32xf32> to vector<8x32xf32>
    %8 = vector.shape_cast %0 : vector<1x8x32xf32> to vector<8x32xf32>
    %9 = arith.addf %8, %7 : vector<8x32xf32>
    %c0_10 = arith.constant 0 : index
    %c0_11 = arith.constant 0 : index
    %c0_12 = arith.constant 0 : index
    %10 = vector.load %arg5[%c0_10, %c0_11, %c0_12] : memref<2x32x64xf32, #tpu.memory_space<vmem>>, vector<1x32x64xf32>
    %11 = vector.shape_cast %10 : vector<1x32x64xf32> to vector<32x64xf32>
    %cst = arith.constant dense<0.000000e+00> : vector<8x64xf32>
    %12 = tpu.matmul %9, %11, %cst {dimension_numbers = #tpu.dot_dimension_numbers<[1], [0], [0], [1], [0, 0, 1, 1], [], []>} : vector<8x32xf32>, vector<32x64xf32>, vector<8x64xf32> -> vector<8x64xf32>
    %c0_13 = arith.constant 0 : index
    %c0_14 = arith.constant 0 : index
    %c0_15 = arith.constant 0 : index
    %13 = vector.load %arg6[%c0_13, %c0_14, %c0_15] : memref<2x1x64xf32, #tpu.memory_space<vmem>>, vector<1x1x64xf32>
    %14 = vector.shape_cast %13 : vector<1x1x64xf32> to vector<1x64xf32>
    %15 = vector.broadcast %14 : vector<1x64xf32> to vector<8x64xf32>
    %16 = arith.addf %12, %15 : vector<8x64xf32>
    %c0_16 = arith.constant 0 : index
    %c0_17 = arith.constant 0 : index
    %c0_18 = arith.constant 0 : index
    %17 = vector.load %arg7[%c0_16, %c0_17, %c0_18] : memref<2x32x32xf32, #tpu.memory_space<vmem>>, vector<1x32x32xf32>
    %18 = vector.shape_cast %17 : vector<1x32x32xf32> to vector<32x32xf32>
    %cst_19 = arith.constant dense<0.000000e+00> : vector<8x32xf32>
    %19 = tpu.matmul %8, %18, %cst_19 {dimension_numbers = #tpu.dot_dimension_numbers<[1], [0], [0], [1], [0, 0, 1, 1], [], []>} : vector<8x32xf32>, vector<32x32xf32>, vector<8x32xf32> -> vector<8x32xf32>
    %c0_20 = arith.constant 0 : index
    %c0_21 = arith.constant 0 : index
    %c0_22 = arith.constant 0 : index
    %20 = vector.load %arg8[%c0_20, %c0_21, %c0_22] : memref<2x1x32xf32, #tpu.memory_space<vmem>>, vector<1x1x32xf32>
    %21 = vector.shape_cast %20 : vector<1x1x32xf32> to vector<1x32xf32>
    %22 = vector.broadcast %21 : vector<1x32xf32> to vector<8x32xf32>
    %23 = arith.addf %19, %22 : vector<8x32xf32>
    %24 = vector.extract_strided_slice %16 {offsets = [0, 0], sizes = [8, 32], strides = [1, 1]} : vector<8x64xf32> to vector<8x32xf32>
    %25 = vector.shape_cast %24 : vector<8x32xf32> to vector<1x8x32xf32>
    %26 = vector.extract_strided_slice %16 {offsets = [0, 32], sizes = [8, 32], strides = [1, 1]} : vector<8x64xf32> to vector<8x32xf32>
    %27 = vector.shape_cast %26 : vector<8x32xf32> to vector<1x8x32xf32>
    %28 = vector.shape_cast %23 : vector<8x32xf32> to vector<1x8x32xf32>
    %29 = vector.extract_strided_slice %25 {offsets = [0, 0, 0], sizes = [1, 8, 8], strides = [1, 1, 1]} : vector<1x8x32xf32> to vector<1x8x8xf32>
    %30 = vector.extract_strided_slice %27 {offsets = [0, 0, 0], sizes = [1, 8, 8], strides = [1, 1, 1]} : vector<1x8x32xf32> to vector<1x8x8xf32>
    "tpu.trace_start"() <{level = 10 : i32, message = "bqd,bkd->bqk"}> : () -> ()
    %cst_23 = arith.constant dense<0.000000e+00> : vector<1x8x8xf32>
    %31 = tpu.matmul %29, %30, %cst_23 {dimension_numbers = #tpu.dot_dimension_numbers<[2], [2], [1], [1], [0, 0, 0, 1, 1, 1], [0], [0]>} : vector<1x8x8xf32>, vector<1x8x8xf32>, vector<1x8x8xf32> -> vector<1x8x8xf32>
    "tpu.trace_stop"() : () -> ()
    %32 = arith.addf %31, %6 : vector<1x8x8xf32>
    %cst_24 = arith.constant dense<0xFF800000> : vector<1x8xf32>
    %33 = vector.multi_reduction <maximumf>, %32, %cst_24 [2] : vector<1x8x8xf32> to vector<1x8xf32>
    %34 = vector.shape_cast %33 : vector<1x8xf32> to vector<1x8x1xf32>
    %35 = vector.broadcast %34 : vector<1x8x1xf32> to vector<1x8x8xf32>
    %36 = arith.subf %32, %35 : vector<1x8x8xf32>
    %37 = math.exp %36 : vector<1x8x8xf32>
    %cst_25 = arith.constant dense<0.000000e+00> : vector<1x8xf32>
    %38 = vector.multi_reduction <add>, %37, %cst_25 [2] : vector<1x8x8xf32> to vector<1x8xf32>
    %39 = vector.shape_cast %38 : vector<1x8xf32> to vector<1x8x1xf32>
    %40 = tpu.reciprocal %39 {approx = true} : vector<1x8x1xf32> -> vector<1x8x1xf32>
    %41 = vector.broadcast %40 : vector<1x8x1xf32> to vector<1x8x8xf32>
    %42 = arith.mulf %37, %41 : vector<1x8x8xf32>
    %43 = vector.extract_strided_slice %28 {offsets = [0, 0, 0], sizes = [1, 8, 8], strides = [1, 1, 1]} : vector<1x8x32xf32> to vector<1x8x8xf32>
    "tpu.trace_start"() <{level = 10 : i32, message = "bqk,bkd->bqd"}> : () -> ()
    %cst_26 = arith.constant dense<0.000000e+00> : vector<1x8x8xf32>
    %44 = tpu.matmul %42, %43, %cst_26 {dimension_numbers = #tpu.dot_dimension_numbers<[2], [1], [1], [2], [0, 0, 0, 1, 1, 2], [0], [0]>} : vector<1x8x8xf32>, vector<1x8x8xf32>, vector<1x8x8xf32> -> vector<1x8x8xf32>
    "tpu.trace_stop"() : () -> ()
    %45 = vector.shape_cast %44 : vector<1x8x8xf32> to vector<8x8xf32>
    %c0_27 = arith.constant 0 : index
    %c0_28 = arith.constant 0 : index
    %46 = vector.load %arg22[%c0_27, %c0_28] : memref<8x32xf32, #tpu.memory_space<vmem>>, vector<8x8xf32>
    tpu.vector_store %arg22[%c0_27, %c0_28], %45 {strides = array<i32>} : memref<8x32xf32, #tpu.memory_space<vmem>>, vector<8x8xf32>,
    %47 = vector.extract_strided_slice %25 {offsets = [0, 0, 8], sizes = [1, 8, 8], strides = [1, 1, 1]} : vector<1x8x32xf32> to vector<1x8x8xf32>
    %48 = vector.extract_strided_slice %27 {offsets = [0, 0, 8], sizes = [1, 8, 8], strides = [1, 1, 1]} : vector<1x8x32xf32> to vector<1x8x8xf32>
    "tpu.trace_start"() <{level = 10 : i32, message = "bqd,bkd->bqk"}> : () -> ()
    %cst_29 = arith.constant dense<0.000000e+00> : vector<1x8x8xf32>
    %49 = tpu.matmul %47, %48, %cst_29 {dimension_numbers = #tpu.dot_dimension_numbers<[2], [2], [1], [1], [0, 0, 0, 1, 1, 1], [0], [0]>} : vector<1x8x8xf32>, vector<1x8x8xf32>, vector<1x8x8xf32> -> vector<1x8x8xf32>
    "tpu.trace_stop"() : () -> ()
    %50 = arith.addf %49, %6 : vector<1x8x8xf32>
    %cst_30 = arith.constant dense<0xFF800000> : vector<1x8xf32>
    %51 = vector.multi_reduction <maximumf>, %50, %cst_30 [2] : vector<1x8x8xf32> to vector<1x8xf32>
    %52 = vector.shape_cast %51 : vector<1x8xf32> to vector<1x8x1xf32>
    %53 = vector.broadcast %52 : vector<1x8x1xf32> to vector<1x8x8xf32>
    %54 = arith.subf %50, %53 : vector<1x8x8xf32>
    %55 = math.exp %54 : vector<1x8x8xf32>
    %cst_31 = arith.constant dense<0.000000e+00> : vector<1x8xf32>
    %56 = vector.multi_reduction <add>, %55, %cst_31 [2] : vector<1x8x8xf32> to vector<1x8xf32>
    %57 = vector.shape_cast %56 : vector<1x8xf32> to vector<1x8x1xf32>
    %58 = tpu.reciprocal %57 {approx = true} : vector<1x8x1xf32> -> vector<1x8x1xf32>
    %59 = vector.broadcast %58 : vector<1x8x1xf32> to vector<1x8x8xf32>
    %60 = arith.mulf %55, %59 : vector<1x8x8xf32>
    %61 = vector.extract_strided_slice %28 {offsets = [0, 0, 8], sizes = [1, 8, 8], strides = [1, 1, 1]} : vector<1x8x32xf32> to vector<1x8x8xf32>
    "tpu.trace_start"() <{level = 10 : i32, message = "bqk,bkd->bqd"}> : () -> ()
    %cst_32 = arith.constant dense<0.000000e+00> : vector<1x8x8xf32>
    %62 = tpu.matmul %60, %61, %cst_32 {dimension_numbers = #tpu.dot_dimension_numbers<[2], [1], [1], [2], [0, 0, 0, 1, 1, 2], [0], [0]>} : vector<1x8x8xf32>, vector<1x8x8xf32>, vector<1x8x8xf32> -> vector<1x8x8xf32>
    "tpu.trace_stop"() : () -> ()
    %63 = vector.shape_cast %62 : vector<1x8x8xf32> to vector<8x8xf32>
    %c0_33 = arith.constant 0 : index
    %c8 = arith.constant 8 : index
    %64 = vector.load %arg22[%c0_33, %c8] : memref<8x32xf32, #tpu.memory_space<vmem>>, vector<8x8xf32>
    tpu.vector_store %arg22[%c0_33, %c8], %63 {strides = array<i32>} : memref<8x32xf32, #tpu.memory_space<vmem>>, vector<8x8xf32>,
    %65 = vector.extract_strided_slice %25 {offsets = [0, 0, 16], sizes = [1, 8, 8], strides = [1, 1, 1]} : vector<1x8x32xf32> to vector<1x8x8xf32>
    %66 = vector.extract_strided_slice %27 {offsets = [0, 0, 16], sizes = [1, 8, 8], strides = [1, 1, 1]} : vector<1x8x32xf32> to vector<1x8x8xf32>
    "tpu.trace_start"() <{level = 10 : i32, message = "bqd,bkd->bqk"}> : () -> ()
    %cst_34 = arith.constant dense<0.000000e+00> : vector<1x8x8xf32>
    %67 = tpu.matmul %65, %66, %cst_34 {dimension_numbers = #tpu.dot_dimension_numbers<[2], [2], [1], [1], [0, 0, 0, 1, 1, 1], [0], [0]>} : vector<1x8x8xf32>, vector<1x8x8xf32>, vector<1x8x8xf32> -> vector<1x8x8xf32>
    "tpu.trace_stop"() : () -> ()
    %68 = arith.addf %67, %6 : vector<1x8x8xf32>
    %cst_35 = arith.constant dense<0xFF800000> : vector<1x8xf32>
    %69 = vector.multi_reduction <maximumf>, %68, %cst_35 [2] : vector<1x8x8xf32> to vector<1x8xf32>
    %70 = vector.shape_cast %69 : vector<1x8xf32> to vector<1x8x1xf32>
    %71 = vector.broadcast %70 : vector<1x8x1xf32> to vector<1x8x8xf32>
    %72 = arith.subf %68, %71 : vector<1x8x8xf32>
    %73 = math.exp %72 : vector<1x8x8xf32>
    %cst_36 = arith.constant dense<0.000000e+00> : vector<1x8xf32>
    %74 = vector.multi_reduction <add>, %73, %cst_36 [2] : vector<1x8x8xf32> to vector<1x8xf32>
    %75 = vector.shape_cast %74 : vector<1x8xf32> to vector<1x8x1xf32>
    %76 = tpu.reciprocal %75 {approx = true} : vector<1x8x1xf32> -> vector<1x8x1xf32>
    %77 = vector.broadcast %76 : vector<1x8x1xf32> to vector<1x8x8xf32>
    %78 = arith.mulf %73, %77 : vector<1x8x8xf32>
    %79 = vector.extract_strided_slice %28 {offsets = [0, 0, 16], sizes = [1, 8, 8], strides = [1, 1, 1]} : vector<1x8x32xf32> to vector<1x8x8xf32>
    "tpu.trace_start"() <{level = 10 : i32, message = "bqk,bkd->bqd"}> : () -> ()
    %cst_37 = arith.constant dense<0.000000e+00> : vector<1x8x8xf32>
    %80 = tpu.matmul %78, %79, %cst_37 {dimension_numbers = #tpu.dot_dimension_numbers<[2], [1], [1], [2], [0, 0, 0, 1, 1, 2], [0], [0]>} : vector<1x8x8xf32>, vector<1x8x8xf32>, vector<1x8x8xf32> -> vector<1x8x8xf32>
    "tpu.trace_stop"() : () -> ()
    %81 = vector.shape_cast %80 : vector<1x8x8xf32> to vector<8x8xf32>
    %c0_38 = arith.constant 0 : index
    %c16 = arith.constant 16 : index
    %82 = vector.load %arg22[%c0_38, %c16] : memref<8x32xf32, #tpu.memory_space<vmem>>, vector<8x8xf32>
    tpu.vector_store %arg22[%c0_38, %c16], %81 {strides = array<i32>} : memref<8x32xf32, #tpu.memory_space<vmem>>, vector<8x8xf32>,
    %83 = vector.extract_strided_slice %25 {offsets = [0, 0, 24], sizes = [1, 8, 8], strides = [1, 1, 1]} : vector<1x8x32xf32> to vector<1x8x8xf32>
    %84 = vector.extract_strided_slice %27 {offsets = [0, 0, 24], sizes = [1, 8, 8], strides = [1, 1, 1]} : vector<1x8x32xf32> to vector<1x8x8xf32>
    "tpu.trace_start"() <{level = 10 : i32, message = "bqd,bkd->bqk"}> : () -> ()
    %cst_39 = arith.constant dense<0.000000e+00> : vector<1x8x8xf32>
    %85 = tpu.matmul %83, %84, %cst_39 {dimension_numbers = #tpu.dot_dimension_numbers<[2], [2], [1], [1], [0, 0, 0, 1, 1, 1], [0], [0]>} : vector<1x8x8xf32>, vector<1x8x8xf32>, vector<1x8x8xf32> -> vector<1x8x8xf32>
    "tpu.trace_stop"() : () -> ()
    %86 = arith.addf %85, %6 : vector<1x8x8xf32>
    %cst_40 = arith.constant dense<0xFF800000> : vector<1x8xf32>
    %87 = vector.multi_reduction <maximumf>, %86, %cst_40 [2] : vector<1x8x8xf32> to vector<1x8xf32>
    %88 = vector.shape_cast %87 : vector<1x8xf32> to vector<1x8x1xf32>
    %89 = vector.broadcast %88 : vector<1x8x1xf32> to vector<1x8x8xf32>
    %90 = arith.subf %86, %89 : vector<1x8x8xf32>
    %91 = math.exp %90 : vector<1x8x8xf32>
    %cst_41 = arith.constant dense<0.000000e+00> : vector<1x8xf32>
    %92 = vector.multi_reduction <add>, %91, %cst_41 [2] : vector<1x8x8xf32> to vector<1x8xf32>
    %93 = vector.shape_cast %92 : vector<1x8xf32> to vector<1x8x1xf32>
    %94 = tpu.reciprocal %93 {approx = true} : vector<1x8x1xf32> -> vector<1x8x1xf32>
    %95 = vector.broadcast %94 : vector<1x8x1xf32> to vector<1x8x8xf32>
    %96 = arith.mulf %91, %95 : vector<1x8x8xf32>
    %97 = vector.extract_strided_slice %28 {offsets = [0, 0, 24], sizes = [1, 8, 8], strides = [1, 1, 1]} : vector<1x8x32xf32> to vector<1x8x8xf32>
    "tpu.trace_start"() <{level = 10 : i32, message = "bqk,bkd->bqd"}> : () -> ()
    %cst_42 = arith.constant dense<0.000000e+00> : vector<1x8x8xf32>
    %98 = tpu.matmul %96, %97, %cst_42 {dimension_numbers = #tpu.dot_dimension_numbers<[2], [1], [1], [2], [0, 0, 0, 1, 1, 2], [0], [0]>} : vector<1x8x8xf32>, vector<1x8x8xf32>, vector<1x8x8xf32> -> vector<1x8x8xf32>
    "tpu.trace_stop"() : () -> ()
    %99 = vector.shape_cast %98 : vector<1x8x8xf32> to vector<8x8xf32>
    %c0_43 = arith.constant 0 : index
    %c24 = arith.constant 24 : index
    %100 = vector.load %arg22[%c0_43, %c24] : memref<8x32xf32, #tpu.memory_space<vmem>>, vector<8x8xf32>
    tpu.vector_store %arg22[%c0_43, %c24], %99 {strides = array<i32>} : memref<8x32xf32, #tpu.memory_space<vmem>>, vector<8x8xf32>,
    %c0_44 = arith.constant 0 : index
    %c0_45 = arith.constant 0 : index
    %101 = vector.load %arg22[%c0_44, %c0_45] : memref<8x32xf32, #tpu.memory_space<vmem>>, vector<8x32xf32>
    %c0_46 = arith.constant 0 : index
    %c0_47 = arith.constant 0 : index
    %c0_48 = arith.constant 0 : index
    %102 = vector.load %arg9[%c0_46, %c0_47, %c0_48] : memref<2x32x32xf32, #tpu.memory_space<vmem>>, vector<1x32x32xf32>
    %103 = vector.shape_cast %102 : vector<1x32x32xf32> to vector<32x32xf32>
    %cst_49 = arith.constant dense<0.000000e+00> : vector<8x32xf32>
    %104 = tpu.matmul %101, %103, %cst_49 {dimension_numbers = #tpu.dot_dimension_numbers<[1], [0], [0], [1], [0, 0, 1, 1], [], []>} : vector<8x32xf32>, vector<32x32xf32>, vector<8x32xf32> -> vector<8x32xf32>
    %c0_50 = arith.constant 0 : index
    %c0_51 = arith.constant 0 : index
    %c0_52 = arith.constant 0 : index
    %105 = vector.load %arg10[%c0_50, %c0_51, %c0_52] : memref<2x1x32xf32, #tpu.memory_space<vmem>>, vector<1x1x32xf32>
    %106 = vector.shape_cast %105 : vector<1x1x32xf32> to vector<1x32xf32>
    %107 = vector.broadcast %106 : vector<1x32xf32> to vector<8x32xf32>
    %108 = arith.addf %104, %107 : vector<8x32xf32>
    %109 = arith.addf %8, %108 : vector<8x32xf32>
    %c0_53 = arith.constant 0 : index
    %c0_54 = arith.constant 0 : index
    %c0_55 = arith.constant 0 : index
    %110 = vector.load %arg15[%c0_53, %c0_54, %c0_55] : memref<2x1x32xf32, #tpu.memory_space<vmem>>, vector<1x1x32xf32>
    %111 = vector.shape_cast %110 : vector<1x1x32xf32> to vector<1x32xf32>
    %c0_56 = arith.constant 0 : index
    %c0_57 = arith.constant 0 : index
    %c0_58 = arith.constant 0 : index
    %112 = vector.load %arg16[%c0_56, %c0_57, %c0_58] : memref<2x1x32xf32, #tpu.memory_space<vmem>>, vector<1x1x32xf32>
    %113 = vector.shape_cast %112 : vector<1x1x32xf32> to vector<1x32xf32>
    %cst_59 = arith.constant dense<0.000000e+00> : vector<8xf32>
    %114 = vector.multi_reduction <add>, %109, %cst_59 [1] : vector<8x32xf32> to vector<8xf32>
    %115 = vector.shape_cast %114 : vector<8xf32> to vector<8x1xf32>
    %cst_60 = arith.constant 3.200000e+01 : f32
    %116 = vector.broadcast %cst_60 : f32 to vector<8x1xf32>
    %117 = arith.divf %115, %116 : vector<8x1xf32>
    %118 = vector.broadcast %117 : vector<8x1xf32> to vector<8x32xf32>
    %119 = arith.subf %109, %118 : vector<8x32xf32>
    %120 = arith.mulf %119, %119 : vector<8x32xf32>
    %cst_61 = arith.constant dense<0.000000e+00> : vector<8xf32>
    %121 = vector.multi_reduction <add>, %120, %cst_61 [1] : vector<8x32xf32> to vector<8xf32>
    %122 = vector.shape_cast %121 : vector<8xf32> to vector<8x1xf32>
    %cst_62 = arith.constant 3.200000e+01 : f32
    %123 = vector.broadcast %cst_62 : f32 to vector<8x1xf32>
    %124 = arith.divf %122, %123 : vector<8x1xf32>
    %125 = vector.broadcast %117 : vector<8x1xf32> to vector<8x32xf32>
    %126 = arith.subf %109, %125 : vector<8x32xf32>
    %cst_63 = arith.constant 9.99999974E-6 : f32
    %127 = vector.broadcast %cst_63 : f32 to vector<8x1xf32>
    %128 = arith.addf %124, %127 : vector<8x1xf32>
    %129 = math.rsqrt %128 : vector<8x1xf32>
    %130 = vector.broadcast %129 : vector<8x1xf32> to vector<8x32xf32>
    %131 = arith.mulf %126, %130 : vector<8x32xf32>
    %132 = vector.broadcast %111 : vector<1x32xf32> to vector<8x32xf32>
    %133 = arith.mulf %131, %132 : vector<8x32xf32>
    %134 = vector.broadcast %113 : vector<1x32xf32> to vector<8x32xf32>
    %135 = arith.addf %133, %134 : vector<8x32xf32>
    %c0_64 = arith.constant 0 : index
    %c0_65 = arith.constant 0 : index
    %c0_66 = arith.constant 0 : index
    %136 = vector.load %arg11[%c0_64, %c0_65, %c0_66] : memref<2x32x64xf32, #tpu.memory_space<vmem>>, vector<1x32x64xf32>
    %137 = vector.shape_cast %136 : vector<1x32x64xf32> to vector<32x64xf32>
    %cst_67 = arith.constant dense<0.000000e+00> : vector<8x64xf32>
    %138 = tpu.matmul %135, %137, %cst_67 {dimension_numbers = #tpu.dot_dimension_numbers<[1], [0], [0], [1], [0, 0, 1, 1], [], []>} : vector<8x32xf32>, vector<32x64xf32>, vector<8x64xf32> -> vector<8x64xf32>
    %c0_68 = arith.constant 0 : index
    %c0_69 = arith.constant 0 : index
    %c0_70 = arith.constant 0 : index
    %139 = vector.load %arg12[%c0_68, %c0_69, %c0_70] : memref<2x1x64xf32, #tpu.memory_space<vmem>>, vector<1x1x64xf32>
    %140 = vector.shape_cast %139 : vector<1x1x64xf32> to vector<1x64xf32>
    %141 = vector.broadcast %140 : vector<1x64xf32> to vector<8x64xf32>
    %142 = arith.addf %138, %141 : vector<8x64xf32>
    %cst_71 = arith.constant 0.000000e+00 : f32
    %143 = vector.broadcast %cst_71 : f32 to vector<8x64xf32>
    %144 = arith.maximumf %142, %143 : vector<8x64xf32>
    %c0_72 = arith.constant 0 : index
    %c0_73 = arith.constant 0 : index
    %c0_74 = arith.constant 0 : index
    %145 = vector.load %arg13[%c0_72, %c0_73, %c0_74] : memref<2x64x32xf32, #tpu.memory_space<vmem>>, vector<1x64x32xf32>
    %146 = vector.shape_cast %145 : vector<1x64x32xf32> to vector<64x32xf32>
    %cst_75 = arith.constant dense<0.000000e+00> : vector<8x32xf32>
    %147 = tpu.matmul %144, %146, %cst_75 {dimension_numbers = #tpu.dot_dimension_numbers<[1], [0], [0], [1], [0, 0, 1, 1], [], []>} : vector<8x64xf32>, vector<64x32xf32>, vector<8x32xf32> -> vector<8x32xf32>
    %c0_76 = arith.constant 0 : index
    %c0_77 = arith.constant 0 : index
    %c0_78 = arith.constant 0 : index
    %148 = vector.load %arg14[%c0_76, %c0_77, %c0_78] : memref<2x1x32xf32, #tpu.memory_space<vmem>>, vector<1x1x32xf32>
    %149 = vector.shape_cast %148 : vector<1x1x32xf32> to vector<1x32xf32>
    %150 = vector.broadcast %149 : vector<1x32xf32> to vector<8x32xf32>
    %151 = arith.addf %147, %150 : vector<8x32xf32>
    %152 = arith.addf %135, %151 : vector<8x32xf32>
    %c0_79 = arith.constant 0 : index
    %c0_80 = arith.constant 0 : index
    %c0_81 = arith.constant 0 : index
    %153 = vector.load %arg17[%c0_79, %c0_80, %c0_81] : memref<2x1x32xf32, #tpu.memory_space<vmem>>, vector<1x1x32xf32>
    %154 = vector.shape_cast %153 : vector<1x1x32xf32> to vector<1x32xf32>
    %c0_82 = arith.constant 0 : index
    %c0_83 = arith.constant 0 : index
    %c0_84 = arith.constant 0 : index
    %155 = vector.load %arg18[%c0_82, %c0_83, %c0_84] : memref<2x1x32xf32, #tpu.memory_space<vmem>>, vector<1x1x32xf32>
    %156 = vector.shape_cast %155 : vector<1x1x32xf32> to vector<1x32xf32>
    %cst_85 = arith.constant dense<0.000000e+00> : vector<8xf32>
    %157 = vector.multi_reduction <add>, %152, %cst_85 [1] : vector<8x32xf32> to vector<8xf32>
    %158 = vector.shape_cast %157 : vector<8xf32> to vector<8x1xf32>
    %cst_86 = arith.constant 3.200000e+01 : f32
    %159 = vector.broadcast %cst_86 : f32 to vector<8x1xf32>
    %160 = arith.divf %158, %159 : vector<8x1xf32>
    %161 = vector.broadcast %160 : vector<8x1xf32> to vector<8x32xf32>
    %162 = arith.subf %152, %161 : vector<8x32xf32>
    %163 = arith.mulf %162, %162 : vector<8x32xf32>
    %cst_87 = arith.constant dense<0.000000e+00> : vector<8xf32>
    %164 = vector.multi_reduction <add>, %163, %cst_87 [1] : vector<8x32xf32> to vector<8xf32>
    %165 = vector.shape_cast %164 : vector<8xf32> to vector<8x1xf32>
    %cst_88 = arith.constant 3.200000e+01 : f32
    %166 = vector.broadcast %cst_88 : f32 to vector<8x1xf32>
    %167 = arith.divf %165, %166 : vector<8x1xf32>
    %168 = vector.broadcast %160 : vector<8x1xf32> to vector<8x32xf32>
    %169 = arith.subf %152, %168 : vector<8x32xf32>
    %cst_89 = arith.constant 9.99999974E-6 : f32
    %170 = vector.broadcast %cst_89 : f32 to vector<8x1xf32>
    %171 = arith.addf %167, %170 : vector<8x1xf32>
    %172 = math.rsqrt %171 : vector<8x1xf32>
    %173 = vector.broadcast %172 : vector<8x1xf32> to vector<8x32xf32>
    %174 = arith.mulf %169, %173 : vector<8x32xf32>
    %175 = vector.broadcast %154 : vector<1x32xf32> to vector<8x32xf32>
    %176 = arith.mulf %174, %175 : vector<8x32xf32>
    %177 = vector.broadcast %156 : vector<1x32xf32> to vector<8x32xf32>
    %178 = arith.addf %176, %177 : vector<8x32xf32>
    %179 = arith.addf %178, %7 : vector<8x32xf32>
    %c1 = arith.constant 1 : index
    %c0_90 = arith.constant 0 : index
    %c0_91 = arith.constant 0 : index
    %180 = vector.load %arg5[%c1, %c0_90, %c0_91] : memref<2x32x64xf32, #tpu.memory_space<vmem>>, vector<1x32x64xf32>
    %181 = vector.shape_cast %180 : vector<1x32x64xf32> to vector<32x64xf32>
    %cst_92 = arith.constant dense<0.000000e+00> : vector<8x64xf32>
    %182 = tpu.matmul %179, %181, %cst_92 {dimension_numbers = #tpu.dot_dimension_numbers<[1], [0], [0], [1], [0, 0, 1, 1], [], []>} : vector<8x32xf32>, vector<32x64xf32>, vector<8x64xf32> -> vector<8x64xf32>
    %c1_93 = arith.constant 1 : index
    %c0_94 = arith.constant 0 : index
    %c0_95 = arith.constant 0 : index
    %183 = vector.load %arg6[%c1_93, %c0_94, %c0_95] : memref<2x1x64xf32, #tpu.memory_space<vmem>>, vector<1x1x64xf32>
    %184 = vector.shape_cast %183 : vector<1x1x64xf32> to vector<1x64xf32>
    %185 = vector.broadcast %184 : vector<1x64xf32> to vector<8x64xf32>
    %186 = arith.addf %182, %185 : vector<8x64xf32>
    %c1_96 = arith.constant 1 : index
    %c0_97 = arith.constant 0 : index
    %c0_98 = arith.constant 0 : index
    %187 = vector.load %arg7[%c1_96, %c0_97, %c0_98] : memref<2x32x32xf32, #tpu.memory_space<vmem>>, vector<1x32x32xf32>
    %188 = vector.shape_cast %187 : vector<1x32x32xf32> to vector<32x32xf32>
    %cst_99 = arith.constant dense<0.000000e+00> : vector<8x32xf32>
    %189 = tpu.matmul %178, %188, %cst_99 {dimension_numbers = #tpu.dot_dimension_numbers<[1], [0], [0], [1], [0, 0, 1, 1], [], []>} : vector<8x32xf32>, vector<32x32xf32>, vector<8x32xf32> -> vector<8x32xf32>
    %c1_100 = arith.constant 1 : index
    %c0_101 = arith.constant 0 : index
    %c0_102 = arith.constant 0 : index
    %190 = vector.load %arg8[%c1_100, %c0_101, %c0_102] : memref<2x1x32xf32, #tpu.memory_space<vmem>>, vector<1x1x32xf32>
    %191 = vector.shape_cast %190 : vector<1x1x32xf32> to vector<1x32xf32>
    %192 = vector.broadcast %191 : vector<1x32xf32> to vector<8x32xf32>
    %193 = arith.addf %189, %192 : vector<8x32xf32>
    %194 = vector.extract_strided_slice %186 {offsets = [0, 0], sizes = [8, 32], strides = [1, 1]} : vector<8x64xf32> to vector<8x32xf32>
    %195 = vector.shape_cast %194 : vector<8x32xf32> to vector<1x8x32xf32>
    %196 = vector.extract_strided_slice %186 {offsets = [0, 32], sizes = [8, 32], strides = [1, 1]} : vector<8x64xf32> to vector<8x32xf32>
    %197 = vector.shape_cast %196 : vector<8x32xf32> to vector<1x8x32xf32>
    %198 = vector.shape_cast %193 : vector<8x32xf32> to vector<1x8x32xf32>
    %199 = vector.extract_strided_slice %195 {offsets = [0, 0, 0], sizes = [1, 8, 8], strides = [1, 1, 1]} : vector<1x8x32xf32> to vector<1x8x8xf32>
    %200 = vector.extract_strided_slice %197 {offsets = [0, 0, 0], sizes = [1, 8, 8], strides = [1, 1, 1]} : vector<1x8x32xf32> to vector<1x8x8xf32>
    "tpu.trace_start"() <{level = 10 : i32, message = "bqd,bkd->bqk"}> : () -> ()
    %cst_103 = arith.constant dense<0.000000e+00> : vector<1x8x8xf32>
    %201 = tpu.matmul %199, %200, %cst_103 {dimension_numbers = #tpu.dot_dimension_numbers<[2], [2], [1], [1], [0, 0, 0, 1, 1, 1], [0], [0]>} : vector<1x8x8xf32>, vector<1x8x8xf32>, vector<1x8x8xf32> -> vector<1x8x8xf32>
    "tpu.trace_stop"() : () -> ()
    %202 = arith.addf %201, %6 : vector<1x8x8xf32>
    %cst_104 = arith.constant dense<0xFF800000> : vector<1x8xf32>
    %203 = vector.multi_reduction <maximumf>, %202, %cst_104 [2] : vector<1x8x8xf32> to vector<1x8xf32>
    %204 = vector.shape_cast %203 : vector<1x8xf32> to vector<1x8x1xf32>
    %205 = vector.broadcast %204 : vector<1x8x1xf32> to vector<1x8x8xf32>
    %206 = arith.subf %202, %205 : vector<1x8x8xf32>
    %207 = math.exp %206 : vector<1x8x8xf32>
    %cst_105 = arith.constant dense<0.000000e+00> : vector<1x8xf32>
    %208 = vector.multi_reduction <add>, %207, %cst_105 [2] : vector<1x8x8xf32> to vector<1x8xf32>
    %209 = vector.shape_cast %208 : vector<1x8xf32> to vector<1x8x1xf32>
    %210 = tpu.reciprocal %209 {approx = true} : vector<1x8x1xf32> -> vector<1x8x1xf32>
    %211 = vector.broadcast %210 : vector<1x8x1xf32> to vector<1x8x8xf32>
    %212 = arith.mulf %207, %211 : vector<1x8x8xf32>
    %213 = vector.extract_strided_slice %198 {offsets = [0, 0, 0], sizes = [1, 8, 8], strides = [1, 1, 1]} : vector<1x8x32xf32> to vector<1x8x8xf32>
    "tpu.trace_start"() <{level = 10 : i32, message = "bqk,bkd->bqd"}> : () -> ()
    %cst_106 = arith.constant dense<0.000000e+00> : vector<1x8x8xf32>
    %214 = tpu.matmul %212, %213, %cst_106 {dimension_numbers = #tpu.dot_dimension_numbers<[2], [1], [1], [2], [0, 0, 0, 1, 1, 2], [0], [0]>} : vector<1x8x8xf32>, vector<1x8x8xf32>, vector<1x8x8xf32> -> vector<1x8x8xf32>
    "tpu.trace_stop"() : () -> ()
    %215 = vector.shape_cast %214 : vector<1x8x8xf32> to vector<8x8xf32>
    %c0_107 = arith.constant 0 : index
    %c0_108 = arith.constant 0 : index
    %216 = vector.load %arg22[%c0_107, %c0_108] : memref<8x32xf32, #tpu.memory_space<vmem>>, vector<8x8xf32>
    tpu.vector_store %arg22[%c0_107, %c0_108], %215 {strides = array<i32>} : memref<8x32xf32, #tpu.memory_space<vmem>>, vector<8x8xf32>,
    %217 = vector.extract_strided_slice %195 {offsets = [0, 0, 8], sizes = [1, 8, 8], strides = [1, 1, 1]} : vector<1x8x32xf32> to vector<1x8x8xf32>
    %218 = vector.extract_strided_slice %197 {offsets = [0, 0, 8], sizes = [1, 8, 8], strides = [1, 1, 1]} : vector<1x8x32xf32> to vector<1x8x8xf32>
    "tpu.trace_start"() <{level = 10 : i32, message = "bqd,bkd->bqk"}> : () -> ()
    %cst_109 = arith.constant dense<0.000000e+00> : vector<1x8x8xf32>
    %219 = tpu.matmul %217, %218, %cst_109 {dimension_numbers = #tpu.dot_dimension_numbers<[2], [2], [1], [1], [0, 0, 0, 1, 1, 1], [0], [0]>} : vector<1x8x8xf32>, vector<1x8x8xf32>, vector<1x8x8xf32> -> vector<1x8x8xf32>
    "tpu.trace_stop"() : () -> ()
    %220 = arith.addf %219, %6 : vector<1x8x8xf32>
    %cst_110 = arith.constant dense<0xFF800000> : vector<1x8xf32>
    %221 = vector.multi_reduction <maximumf>, %220, %cst_110 [2] : vector<1x8x8xf32> to vector<1x8xf32>
    %222 = vector.shape_cast %221 : vector<1x8xf32> to vector<1x8x1xf32>
    %223 = vector.broadcast %222 : vector<1x8x1xf32> to vector<1x8x8xf32>
    %224 = arith.subf %220, %223 : vector<1x8x8xf32>
    %225 = math.exp %224 : vector<1x8x8xf32>
    %cst_111 = arith.constant dense<0.000000e+00> : vector<1x8xf32>
    %226 = vector.multi_reduction <add>, %225, %cst_111 [2] : vector<1x8x8xf32> to vector<1x8xf32>
    %227 = vector.shape_cast %226 : vector<1x8xf32> to vector<1x8x1xf32>
    %228 = tpu.reciprocal %227 {approx = true} : vector<1x8x1xf32> -> vector<1x8x1xf32>
    %229 = vector.broadcast %228 : vector<1x8x1xf32> to vector<1x8x8xf32>
    %230 = arith.mulf %225, %229 : vector<1x8x8xf32>
    %231 = vector.extract_strided_slice %198 {offsets = [0, 0, 8], sizes = [1, 8, 8], strides = [1, 1, 1]} : vector<1x8x32xf32> to vector<1x8x8xf32>
    "tpu.trace_start"() <{level = 10 : i32, message = "bqk,bkd->bqd"}> : () -> ()
    %cst_112 = arith.constant dense<0.000000e+00> : vector<1x8x8xf32>
    %232 = tpu.matmul %230, %231, %cst_112 {dimension_numbers = #tpu.dot_dimension_numbers<[2], [1], [1], [2], [0, 0, 0, 1, 1, 2], [0], [0]>} : vector<1x8x8xf32>, vector<1x8x8xf32>, vector<1x8x8xf32> -> vector<1x8x8xf32>
    "tpu.trace_stop"() : () -> ()
    %233 = vector.shape_cast %232 : vector<1x8x8xf32> to vector<8x8xf32>
    %c0_113 = arith.constant 0 : index
    %c8_114 = arith.constant 8 : index
    %234 = vector.load %arg22[%c0_113, %c8_114] : memref<8x32xf32, #tpu.memory_space<vmem>>, vector<8x8xf32>
    tpu.vector_store %arg22[%c0_113, %c8_114], %233 {strides = array<i32>} : memref<8x32xf32, #tpu.memory_space<vmem>>, vector<8x8xf32>,
    %235 = vector.extract_strided_slice %195 {offsets = [0, 0, 16], sizes = [1, 8, 8], strides = [1, 1, 1]} : vector<1x8x32xf32> to vector<1x8x8xf32>
    %236 = vector.extract_strided_slice %197 {offsets = [0, 0, 16], sizes = [1, 8, 8], strides = [1, 1, 1]} : vector<1x8x32xf32> to vector<1x8x8xf32>
    "tpu.trace_start"() <{level = 10 : i32, message = "bqd,bkd->bqk"}> : () -> ()
    %cst_115 = arith.constant dense<0.000000e+00> : vector<1x8x8xf32>
    %237 = tpu.matmul %235, %236, %cst_115 {dimension_numbers = #tpu.dot_dimension_numbers<[2], [2], [1], [1], [0, 0, 0, 1, 1, 1], [0], [0]>} : vector<1x8x8xf32>, vector<1x8x8xf32>, vector<1x8x8xf32> -> vector<1x8x8xf32>
    "tpu.trace_stop"() : () -> ()
    %238 = arith.addf %237, %6 : vector<1x8x8xf32>
    %cst_116 = arith.constant dense<0xFF800000> : vector<1x8xf32>
    %239 = vector.multi_reduction <maximumf>, %238, %cst_116 [2] : vector<1x8x8xf32> to vector<1x8xf32>
    %240 = vector.shape_cast %239 : vector<1x8xf32> to vector<1x8x1xf32>
    %241 = vector.broadcast %240 : vector<1x8x1xf32> to vector<1x8x8xf32>
    %242 = arith.subf %238, %241 : vector<1x8x8xf32>
    %243 = math.exp %242 : vector<1x8x8xf32>
    %cst_117 = arith.constant dense<0.000000e+00> : vector<1x8xf32>
    %244 = vector.multi_reduction <add>, %243, %cst_117 [2] : vector<1x8x8xf32> to vector<1x8xf32>
    %245 = vector.shape_cast %244 : vector<1x8xf32> to vector<1x8x1xf32>
    %246 = tpu.reciprocal %245 {approx = true} : vector<1x8x1xf32> -> vector<1x8x1xf32>
    %247 = vector.broadcast %246 : vector<1x8x1xf32> to vector<1x8x8xf32>
    %248 = arith.mulf %243, %247 : vector<1x8x8xf32>
    %249 = vector.extract_strided_slice %198 {offsets = [0, 0, 16], sizes = [1, 8, 8], strides = [1, 1, 1]} : vector<1x8x32xf32> to vector<1x8x8xf32>
    "tpu.trace_start"() <{level = 10 : i32, message = "bqk,bkd->bqd"}> : () -> ()
    %cst_118 = arith.constant dense<0.000000e+00> : vector<1x8x8xf32>
    %250 = tpu.matmul %248, %249, %cst_118 {dimension_numbers = #tpu.dot_dimension_numbers<[2], [1], [1], [2], [0, 0, 0, 1, 1, 2], [0], [0]>} : vector<1x8x8xf32>, vector<1x8x8xf32>, vector<1x8x8xf32> -> vector<1x8x8xf32>
    "tpu.trace_stop"() : () -> ()
    %251 = vector.shape_cast %250 : vector<1x8x8xf32> to vector<8x8xf32>
    %c0_119 = arith.constant 0 : index
    %c16_120 = arith.constant 16 : index
    %252 = vector.load %arg22[%c0_119, %c16_120] : memref<8x32xf32, #tpu.memory_space<vmem>>, vector<8x8xf32>
    tpu.vector_store %arg22[%c0_119, %c16_120], %251 {strides = array<i32>} : memref<8x32xf32, #tpu.memory_space<vmem>>, vector<8x8xf32>,
    %253 = vector.extract_strided_slice %195 {offsets = [0, 0, 24], sizes = [1, 8, 8], strides = [1, 1, 1]} : vector<1x8x32xf32> to vector<1x8x8xf32>
    %254 = vector.extract_strided_slice %197 {offsets = [0, 0, 24], sizes = [1, 8, 8], strides = [1, 1, 1]} : vector<1x8x32xf32> to vector<1x8x8xf32>
    "tpu.trace_start"() <{level = 10 : i32, message = "bqd,bkd->bqk"}> : () -> ()
    %cst_121 = arith.constant dense<0.000000e+00> : vector<1x8x8xf32>
    %255 = tpu.matmul %253, %254, %cst_121 {dimension_numbers = #tpu.dot_dimension_numbers<[2], [2], [1], [1], [0, 0, 0, 1, 1, 1], [0], [0]>} : vector<1x8x8xf32>, vector<1x8x8xf32>, vector<1x8x8xf32> -> vector<1x8x8xf32>
    "tpu.trace_stop"() : () -> ()
    %256 = arith.addf %255, %6 : vector<1x8x8xf32>
    %cst_122 = arith.constant dense<0xFF800000> : vector<1x8xf32>
    %257 = vector.multi_reduction <maximumf>, %256, %cst_122 [2] : vector<1x8x8xf32> to vector<1x8xf32>
    %258 = vector.shape_cast %257 : vector<1x8xf32> to vector<1x8x1xf32>
    %259 = vector.broadcast %258 : vector<1x8x1xf32> to vector<1x8x8xf32>
    %260 = arith.subf %256, %259 : vector<1x8x8xf32>
    %261 = math.exp %260 : vector<1x8x8xf32>
    %cst_123 = arith.constant dense<0.000000e+00> : vector<1x8xf32>
    %262 = vector.multi_reduction <add>, %261, %cst_123 [2] : vector<1x8x8xf32> to vector<1x8xf32>
    %263 = vector.shape_cast %262 : vector<1x8xf32> to vector<1x8x1xf32>
    %264 = tpu.reciprocal %263 {approx = true} : vector<1x8x1xf32> -> vector<1x8x1xf32>
    %265 = vector.broadcast %264 : vector<1x8x1xf32> to vector<1x8x8xf32>
    %266 = arith.mulf %261, %265 : vector<1x8x8xf32>
    %267 = vector.extract_strided_slice %198 {offsets = [0, 0, 24], sizes = [1, 8, 8], strides = [1, 1, 1]} : vector<1x8x32xf32> to vector<1x8x8xf32>
    "tpu.trace_start"() <{level = 10 : i32, message = "bqk,bkd->bqd"}> : () -> ()
    %cst_124 = arith.constant dense<0.000000e+00> : vector<1x8x8xf32>
    %268 = tpu.matmul %266, %267, %cst_124 {dimension_numbers = #tpu.dot_dimension_numbers<[2], [1], [1], [2], [0, 0, 0, 1, 1, 2], [0], [0]>} : vector<1x8x8xf32>, vector<1x8x8xf32>, vector<1x8x8xf32> -> vector<1x8x8xf32>
    "tpu.trace_stop"() : () -> ()
    %269 = vector.shape_cast %268 : vector<1x8x8xf32> to vector<8x8xf32>
    %c0_125 = arith.constant 0 : index
    %c24_126 = arith.constant 24 : index
    %270 = vector.load %arg22[%c0_125, %c24_126] : memref<8x32xf32, #tpu.memory_space<vmem>>, vector<8x8xf32>
    tpu.vector_store %arg22[%c0_125, %c24_126], %269 {strides = array<i32>} : memref<8x32xf32, #tpu.memory_space<vmem>>, vector<8x8xf32>,
    %c0_127 = arith.constant 0 : index
    %c0_128 = arith.constant 0 : index
    %271 = vector.load %arg22[%c0_127, %c0_128] : memref<8x32xf32, #tpu.memory_space<vmem>>, vector<8x32xf32>
    %c1_129 = arith.constant 1 : index
    %c0_130 = arith.constant 0 : index
    %c0_131 = arith.constant 0 : index
    %272 = vector.load %arg9[%c1_129, %c0_130, %c0_131] : memref<2x32x32xf32, #tpu.memory_space<vmem>>, vector<1x32x32xf32>
    %273 = vector.shape_cast %272 : vector<1x32x32xf32> to vector<32x32xf32>
    %cst_132 = arith.constant dense<0.000000e+00> : vector<8x32xf32>
    %274 = tpu.matmul %271, %273, %cst_132 {dimension_numbers = #tpu.dot_dimension_numbers<[1], [0], [0], [1], [0, 0, 1, 1], [], []>} : vector<8x32xf32>, vector<32x32xf32>, vector<8x32xf32> -> vector<8x32xf32>
    %c1_133 = arith.constant 1 : index
    %c0_134 = arith.constant 0 : index
    %c0_135 = arith.constant 0 : index
    %275 = vector.load %arg10[%c1_133, %c0_134, %c0_135] : memref<2x1x32xf32, #tpu.memory_space<vmem>>, vector<1x1x32xf32>
    %276 = vector.shape_cast %275 : vector<1x1x32xf32> to vector<1x32xf32>
    %277 = vector.broadcast %276 : vector<1x32xf32> to vector<8x32xf32>
    %278 = arith.addf %274, %277 : vector<8x32xf32>
    %279 = arith.addf %178, %278 : vector<8x32xf32>
    %c1_136 = arith.constant 1 : index
    %c0_137 = arith.constant 0 : index
    %c0_138 = arith.constant 0 : index
    %280 = vector.load %arg15[%c1_136, %c0_137, %c0_138] : memref<2x1x32xf32, #tpu.memory_space<vmem>>, vector<1x1x32xf32>
    %281 = vector.shape_cast %280 : vector<1x1x32xf32> to vector<1x32xf32>
    %c1_139 = arith.constant 1 : index
    %c0_140 = arith.constant 0 : index
    %c0_141 = arith.constant 0 : index
    %282 = vector.load %arg16[%c1_139, %c0_140, %c0_141] : memref<2x1x32xf32, #tpu.memory_space<vmem>>, vector<1x1x32xf32>
    %283 = vector.shape_cast %282 : vector<1x1x32xf32> to vector<1x32xf32>
    %cst_142 = arith.constant dense<0.000000e+00> : vector<8xf32>
    %284 = vector.multi_reduction <add>, %279, %cst_142 [1] : vector<8x32xf32> to vector<8xf32>
    %285 = vector.shape_cast %284 : vector<8xf32> to vector<8x1xf32>
    %cst_143 = arith.constant 3.200000e+01 : f32
    %286 = vector.broadcast %cst_143 : f32 to vector<8x1xf32>
    %287 = arith.divf %285, %286 : vector<8x1xf32>
    %288 = vector.broadcast %287 : vector<8x1xf32> to vector<8x32xf32>
    %289 = arith.subf %279, %288 : vector<8x32xf32>
    %290 = arith.mulf %289, %289 : vector<8x32xf32>
    %cst_144 = arith.constant dense<0.000000e+00> : vector<8xf32>
    %291 = vector.multi_reduction <add>, %290, %cst_144 [1] : vector<8x32xf32> to vector<8xf32>
    %292 = vector.shape_cast %291 : vector<8xf32> to vector<8x1xf32>
    %cst_145 = arith.constant 3.200000e+01 : f32
    %293 = vector.broadcast %cst_145 : f32 to vector<8x1xf32>
    %294 = arith.divf %292, %293 : vector<8x1xf32>
    %295 = vector.broadcast %287 : vector<8x1xf32> to vector<8x32xf32>
    %296 = arith.subf %279, %295 : vector<8x32xf32>
    %cst_146 = arith.constant 9.99999974E-6 : f32
    %297 = vector.broadcast %cst_146 : f32 to vector<8x1xf32>
    %298 = arith.addf %294, %297 : vector<8x1xf32>
    %299 = math.rsqrt %298 : vector<8x1xf32>
    %300 = vector.broadcast %299 : vector<8x1xf32> to vector<8x32xf32>
    %301 = arith.mulf %296, %300 : vector<8x32xf32>
    %302 = vector.broadcast %281 : vector<1x32xf32> to vector<8x32xf32>
    %303 = arith.mulf %301, %302 : vector<8x32xf32>
    %304 = vector.broadcast %283 : vector<1x32xf32> to vector<8x32xf32>
    %305 = arith.addf %303, %304 : vector<8x32xf32>
    %c1_147 = arith.constant 1 : index
    %c0_148 = arith.constant 0 : index
    %c0_149 = arith.constant 0 : index
    %306 = vector.load %arg11[%c1_147, %c0_148, %c0_149] : memref<2x32x64xf32, #tpu.memory_space<vmem>>, vector<1x32x64xf32>
    %307 = vector.shape_cast %306 : vector<1x32x64xf32> to vector<32x64xf32>
    %cst_150 = arith.constant dense<0.000000e+00> : vector<8x64xf32>
    %308 = tpu.matmul %305, %307, %cst_150 {dimension_numbers = #tpu.dot_dimension_numbers<[1], [0], [0], [1], [0, 0, 1, 1], [], []>} : vector<8x32xf32>, vector<32x64xf32>, vector<8x64xf32> -> vector<8x64xf32>
    %c1_151 = arith.constant 1 : index
    %c0_152 = arith.constant 0 : index
    %c0_153 = arith.constant 0 : index
    %309 = vector.load %arg12[%c1_151, %c0_152, %c0_153] : memref<2x1x64xf32, #tpu.memory_space<vmem>>, vector<1x1x64xf32>
    %310 = vector.shape_cast %309 : vector<1x1x64xf32> to vector<1x64xf32>
    %311 = vector.broadcast %310 : vector<1x64xf32> to vector<8x64xf32>
    %312 = arith.addf %308, %311 : vector<8x64xf32>
    %cst_154 = arith.constant 0.000000e+00 : f32
    %313 = vector.broadcast %cst_154 : f32 to vector<8x64xf32>
    %314 = arith.maximumf %312, %313 : vector<8x64xf32>
    %c1_155 = arith.constant 1 : index
    %c0_156 = arith.constant 0 : index
    %c0_157 = arith.constant 0 : index
    %315 = vector.load %arg13[%c1_155, %c0_156, %c0_157] : memref<2x64x32xf32, #tpu.memory_space<vmem>>, vector<1x64x32xf32>
    %316 = vector.shape_cast %315 : vector<1x64x32xf32> to vector<64x32xf32>
    %cst_158 = arith.constant dense<0.000000e+00> : vector<8x32xf32>
    %317 = tpu.matmul %314, %316, %cst_158 {dimension_numbers = #tpu.dot_dimension_numbers<[1], [0], [0], [1], [0, 0, 1, 1], [], []>} : vector<8x64xf32>, vector<64x32xf32>, vector<8x32xf32> -> vector<8x32xf32>
    %c1_159 = arith.constant 1 : index
    %c0_160 = arith.constant 0 : index
    %c0_161 = arith.constant 0 : index
    %318 = vector.load %arg14[%c1_159, %c0_160, %c0_161] : memref<2x1x32xf32, #tpu.memory_space<vmem>>, vector<1x1x32xf32>
    %319 = vector.shape_cast %318 : vector<1x1x32xf32> to vector<1x32xf32>
    %320 = vector.broadcast %319 : vector<1x32xf32> to vector<8x32xf32>
    %321 = arith.addf %317, %320 : vector<8x32xf32>
    %322 = arith.addf %305, %321 : vector<8x32xf32>
    %c1_162 = arith.constant 1 : index
    %c0_163 = arith.constant 0 : index
    %c0_164 = arith.constant 0 : index
    %323 = vector.load %arg17[%c1_162, %c0_163, %c0_164] : memref<2x1x32xf32, #tpu.memory_space<vmem>>, vector<1x1x32xf32>
    %324 = vector.shape_cast %323 : vector<1x1x32xf32> to vector<1x32xf32>
    %c1_165 = arith.constant 1 : index
    %c0_166 = arith.constant 0 : index
    %c0_167 = arith.constant 0 : index
    %325 = vector.load %arg18[%c1_165, %c0_166, %c0_167] : memref<2x1x32xf32, #tpu.memory_space<vmem>>, vector<1x1x32xf32>
    %326 = vector.shape_cast %325 : vector<1x1x32xf32> to vector<1x32xf32>
    %cst_168 = arith.constant dense<0.000000e+00> : vector<8xf32>
    %327 = vector.multi_reduction <add>, %322, %cst_168 [1] : vector<8x32xf32> to vector<8xf32>
    %328 = vector.shape_cast %327 : vector<8xf32> to vector<8x1xf32>
    %cst_169 = arith.constant 3.200000e+01 : f32
    %329 = vector.broadcast %cst_169 : f32 to vector<8x1xf32>
    %330 = arith.divf %328, %329 : vector<8x1xf32>
    %331 = vector.broadcast %330 : vector<8x1xf32> to vector<8x32xf32>
    %332 = arith.subf %322, %331 : vector<8x32xf32>
    %333 = arith.mulf %332, %332 : vector<8x32xf32>
    %cst_170 = arith.constant dense<0.000000e+00> : vector<8xf32>
    %334 = vector.multi_reduction <add>, %333, %cst_170 [1] : vector<8x32xf32> to vector<8xf32>
    %335 = vector.shape_cast %334 : vector<8xf32> to vector<8x1xf32>
    %cst_171 = arith.constant 3.200000e+01 : f32
    %336 = vector.broadcast %cst_171 : f32 to vector<8x1xf32>
    %337 = arith.divf %335, %336 : vector<8x1xf32>
    %338 = vector.broadcast %330 : vector<8x1xf32> to vector<8x32xf32>
    %339 = arith.subf %322, %338 : vector<8x32xf32>
    %cst_172 = arith.constant 9.99999974E-6 : f32
    %340 = vector.broadcast %cst_172 : f32 to vector<8x1xf32>
    %341 = arith.addf %337, %340 : vector<8x1xf32>
    %342 = math.rsqrt %341 : vector<8x1xf32>
    %343 = vector.broadcast %342 : vector<8x1xf32> to vector<8x32xf32>
    %344 = arith.mulf %339, %343 : vector<8x32xf32>
    %345 = vector.broadcast %324 : vector<1x32xf32> to vector<8x32xf32>
    %346 = arith.mulf %344, %345 : vector<8x32xf32>
    %347 = vector.broadcast %326 : vector<1x32xf32> to vector<8x32xf32>
    %348 = arith.addf %346, %347 : vector<8x32xf32>
    %c0_173 = arith.constant 0 : index
    %c0_174 = arith.constant 0 : index
    %349 = vector.load %arg19[%c0_173, %c0_174] : memref<1x32xf32, #tpu.memory_space<vmem>>, vector<1x32xf32>
    %c0_175 = arith.constant 0 : index
    %c0_176 = arith.constant 0 : index
    %350 = vector.load %arg20[%c0_175, %c0_176] : memref<1x32xf32, #tpu.memory_space<vmem>>, vector<1x32xf32>
    %cst_177 = arith.constant dense<0.000000e+00> : vector<8xf32>
    %351 = vector.multi_reduction <add>, %348, %cst_177 [1] : vector<8x32xf32> to vector<8xf32>
    %352 = vector.shape_cast %351 : vector<8xf32> to vector<8x1xf32>
    %cst_178 = arith.constant 3.200000e+01 : f32
    %353 = vector.broadcast %cst_178 : f32 to vector<8x1xf32>
    %354 = arith.divf %352, %353 : vector<8x1xf32>
    %355 = vector.broadcast %354 : vector<8x1xf32> to vector<8x32xf32>
    %356 = arith.subf %348, %355 : vector<8x32xf32>
    %357 = arith.mulf %356, %356 : vector<8x32xf32>
    %cst_179 = arith.constant dense<0.000000e+00> : vector<8xf32>
    %358 = vector.multi_reduction <add>, %357, %cst_179 [1] : vector<8x32xf32> to vector<8xf32>
    %359 = vector.shape_cast %358 : vector<8xf32> to vector<8x1xf32>
    %cst_180 = arith.constant 3.200000e+01 : f32
    %360 = vector.broadcast %cst_180 : f32 to vector<8x1xf32>
    %361 = arith.divf %359, %360 : vector<8x1xf32>
    %362 = vector.broadcast %354 : vector<8x1xf32> to vector<8x32xf32>
    %363 = arith.subf %348, %362 : vector<8x32xf32>
    %cst_181 = arith.constant 9.99999974E-6 : f32
    %364 = vector.broadcast %cst_181 : f32 to vector<8x1xf32>
    %365 = arith.addf %361, %364 : vector<8x1xf32>
    %366 = math.rsqrt %365 : vector<8x1xf32>
    %367 = vector.broadcast %366 : vector<8x1xf32> to vector<8x32xf32>
    %368 = arith.mulf %363, %367 : vector<8x32xf32>
    %369 = vector.broadcast %349 : vector<1x32xf32> to vector<8x32xf32>
    %370 = arith.mulf %368, %369 : vector<8x32xf32>
    %371 = vector.broadcast %350 : vector<1x32xf32> to vector<8x32xf32>
    %372 = arith.addf %370, %371 : vector<8x32xf32>
    %373 = vector.shape_cast %372 : vector<8x32xf32> to vector<1x8x32xf32>
    %c0_182 = arith.constant 0 : index
    %c0_183 = arith.constant 0 : index
    %c0_184 = arith.constant 0 : index
    %374 = vector.load %arg21[%c0_182, %c0_183, %c0_184] : memref<1x8x32xf32, #tpu.memory_space<vmem>>, vector<1x8x32xf32>
    tpu.vector_store %arg21[%c0_182, %c0_183, %c0_184], %373 {strides = array<i32>} : memref<1x8x32xf32, #tpu.memory_space<vmem>>, vector<1x8x32xf32>,
    return
  }
  func.func @transform_0(%arg0: i32) -> (i32, i32, i32) {
    %c0_i32 = arith.constant 0 : i32
    %c0_i32_0 = arith.constant 0 : i32
    %c0_i32_1 = arith.constant 0 : i32
    return %arg0, %c0_i32, %c0_i32_0 : i32, i32, i32
  }
  func.func @transform_1(%arg0: i32) -> (i32, i32, i32) {
    %c0_i32 = arith.constant 0 : i32
    %c0_i32_0 = arith.constant 0 : i32
    %c0_i32_1 = arith.constant 0 : i32
    return %arg0, %c0_i32, %c0_i32_0 : i32, i32, i32
  }
  func.func @transform_2(%arg0: i32) -> (i32, i32) {
    %c0_i32 = arith.constant 0 : i32
    %c0_i32_0 = arith.constant 0 : i32
    %c0_i32_1 = arith.constant 0 : i32
    return %c0_i32, %c0_i32_0 : i32, i32
  }
  func.func @transform_3(%arg0: i32) -> (i32, i32, i32) {
    %c0_i32 = arith.constant 0 : i32
    %c0_i32_0 = arith.constant 0 : i32
    %c0_i32_1 = arith.constant 0 : i32
    return %arg0, %c0_i32, %c0_i32_0 : i32, i32, i32
  }
  func.func @transform_4(%arg0: i32) -> (i32, i32, i32) {
    %c0_i32 = arith.constant 0 : i32
    %c0_i32_0 = arith.constant 0 : i32
    %c0_i32_1 = arith.constant 0 : i32
    %c0_i32_2 = arith.constant 0 : i32
    return %c0_i32, %c0_i32_0, %c0_i32_1 : i32, i32, i32
  }
  func.func @transform_5(%arg0: i32) -> (i32, i32, i32) {
    %c0_i32 = arith.constant 0 : i32
    %c0_i32_0 = arith.constant 0 : i32
    %c0_i32_1 = arith.constant 0 : i32
    %c0_i32_2 = arith.constant 0 : i32
    return %c0_i32, %c0_i32_0, %c0_i32_1 : i32, i32, i32
  }
  func.func @transform_6(%arg0: i32) -> (i32, i32, i32) {
    %c0_i32 = arith.constant 0 : i32
    %c0_i32_0 = arith.constant 0 : i32
    %c0_i32_1 = arith.constant 0 : i32
    %c0_i32_2 = arith.constant 0 : i32
    return %c0_i32, %c0_i32_0, %c0_i32_1 : i32, i32, i32
  }
  func.func @transform_7(%arg0: i32) -> (i32, i32, i32) {
    %c0_i32 = arith.constant 0 : i32
    %c0_i32_0 = arith.constant 0 : i32
    %c0_i32_1 = arith.constant 0 : i32
    %c0_i32_2 = arith.constant 0 : i32
    return %c0_i32, %c0_i32_0, %c0_i32_1 : i32, i32, i32
  }
  func.func @transform_8(%arg0: i32) -> (i32, i32, i32) {
    %c0_i32 = arith.constant 0 : i32
    %c0_i32_0 = arith.constant 0 : i32
    %c0_i32_1 = arith.constant 0 : i32
    %c0_i32_2 = arith.constant 0 : i32
    return %c0_i32, %c0_i32_0, %c0_i32_1 : i32, i32, i32
  }
  func.func @transform_9(%arg0: i32) -> (i32, i32, i32) {
    %c0_i32 = arith.constant 0 : i32
    %c0_i32_0 = arith.constant 0 : i32
    %c0_i32_1 = arith.constant 0 : i32
    %c0_i32_2 = arith.constant 0 : i32
    return %c0_i32, %c0_i32_0, %c0_i32_1 : i32, i32, i32
  }
  func.func @transform_10(%arg0: i32) -> (i32, i32, i32) {
    %c0_i32 = arith.constant 0 : i32
    %c0_i32_0 = arith.constant 0 : i32
    %c0_i32_1 = arith.constant 0 : i32
    %c0_i32_2 = arith.constant 0 : i32
    return %c0_i32, %c0_i32_0, %c0_i32_1 : i32, i32, i32
  }
  func.func @transform_11(%arg0: i32) -> (i32, i32, i32) {
    %c0_i32 = arith.constant 0 : i32
    %c0_i32_0 = arith.constant 0 : i32
    %c0_i32_1 = arith.constant 0 : i32
    %c0_i32_2 = arith.constant 0 : i32
    return %c0_i32, %c0_i32_0, %c0_i32_1 : i32, i32, i32
  }
  func.func @transform_12(%arg0: i32) -> (i32, i32, i32) {
    %c0_i32 = arith.constant 0 : i32
    %c0_i32_0 = arith.constant 0 : i32
    %c0_i32_1 = arith.constant 0 : i32
    %c0_i32_2 = arith.constant 0 : i32
    return %c0_i32, %c0_i32_0, %c0_i32_1 : i32, i32, i32
  }
  func.func @transform_13(%arg0: i32) -> (i32, i32, i32) {
    %c0_i32 = arith.constant 0 : i32
    %c0_i32_0 = arith.constant 0 : i32
    %c0_i32_1 = arith.constant 0 : i32
    %c0_i32_2 = arith.constant 0 : i32
    return %c0_i32, %c0_i32_0, %c0_i32_1 : i32, i32, i32
  }
  func.func @transform_14(%arg0: i32) -> (i32, i32, i32) {
    %c0_i32 = arith.constant 0 : i32
    %c0_i32_0 = arith.constant 0 : i32
    %c0_i32_1 = arith.constant 0 : i32
    %c0_i32_2 = arith.constant 0 : i32
    return %c0_i32, %c0_i32_0, %c0_i32_1 : i32, i32, i32
  }
  func.func @transform_15(%arg0: i32) -> (i32, i32, i32) {
    %c0_i32 = arith.constant 0 : i32
    %c0_i32_0 = arith.constant 0 : i32
    %c0_i32_1 = arith.constant 0 : i32
    %c0_i32_2 = arith.constant 0 : i32
    return %c0_i32, %c0_i32_0, %c0_i32_1 : i32, i32, i32
  }
  func.func @transform_16(%arg0: i32) -> (i32, i32, i32) {
    %c0_i32 = arith.constant 0 : i32
    %c0_i32_0 = arith.constant 0 : i32
    %c0_i32_1 = arith.constant 0 : i32
    %c0_i32_2 = arith.constant 0 : i32
    return %c0_i32, %c0_i32_0, %c0_i32_1 : i32, i32, i32
  }
  func.func @transform_17(%arg0: i32) -> (i32, i32, i32) {
    %c0_i32 = arith.constant 0 : i32
    %c0_i32_0 = arith.constant 0 : i32
    %c0_i32_1 = arith.constant 0 : i32
    %c0_i32_2 = arith.constant 0 : i32
    return %c0_i32, %c0_i32_0, %c0_i32_1 : i32, i32, i32
  }
  func.func @transform_18(%arg0: i32) -> (i32, i32) {
    %c0_i32 = arith.constant 0 : i32
    %c0_i32_0 = arith.constant 0 : i32
    %c0_i32_1 = arith.constant 0 : i32
    return %c0_i32, %c0_i32_0 : i32, i32
  }
  func.func @transform_19(%arg0: i32) -> (i32, i32) {
    %c0_i32 = arith.constant 0 : i32
    %c0_i32_0 = arith.constant 0 : i32
    %c0_i32_1 = arith.constant 0 : i32
    return %c0_i32, %c0_i32_0 : i32, i32
  }
  func.func @transform_20(%arg0: i32) -> (i32, i32, i32) {
    %c0_i32 = arith.constant 0 : i32
    %c0_i32_0 = arith.constant 0 : i32
    %c0_i32_1 = arith.constant 0 : i32
    return %arg0, %c0_i32, %c0_i32_0 : i32, i32, i32
  }
}

</mosaic_0001>

<bundles_post_ra>
// kernel: tpu_custom_call.1
= control target key start
LH: loop header
LB: loop body
LE: loop exit
PB: predicated region body
PF: predicated region fallthrough
CT: control target
= control target key end

     0   :  { %s4724_s0 = inlined_call_operand.hbm [shape: f32[2,8,32], index: 0, kind: input, shape index: {}]   ;;  %s4725_s1 = inlined_call_operand.hbm [shape: f32[2,8,32], index: 1, kind: input, shape index: {}]   ;;  %s4726_s2 = inlined_call_operand.hbm [shape: f32[8,8], index: 2, kind: input, shape index: {}]   ;;  %s4727_s3 = inlined_call_operand.vmem [shape: f32[2,1,8], index: 3, kind: input, shape index: {}]   ;;  %s4728_s4 = inlined_call_operand.vmem [shape: f32[2,32,64], index: 4, kind: input, shape index: {}]   ;;  %s4729_s5 = inlined_call_operand.vmem [shape: f32[2,1,64], index: 5, kind: input, shape index: {}]   ;;  %s4730_s6 = inlined_call_operand.vmem [shape: f32[2,32,32], index: 6, kind: input, shape index: {}]   ;;  %s4731_s7 = inlined_call_operand.vmem [shape: f32[2,1,32], index: 7, kind: input, shape index: {}]   ;;  %s4732_s8 = inlined_call_operand.vmem [shape: f32[2,32,32], index: 8, kind: input, shape index: {}]   ;;  %s4733_s9 = inlined_call_operand.vmem [shape: f32[2,1,32], index: 9, kind: input, shape index: {}]   ;;  %s4734_s10 = inlined_call_operand.hbm [shape: f32[2,32,64], index: 10, kind: input, shape index: {}]   ;;  %s4735_s11 = inlined_call_operand.vmem [shape: f32[2,1,64], index: 11, kind: input, shape index: {}]   ;;  %s4736_s12 = inlined_call_operand.vmem [shape: f32[2,64,32], index: 12, kind: input, shape index: {}]   ;;  %s4737_s13 = inlined_call_operand.vmem [shape: f32[2,1,32], index: 13, kind: input, shape index: {}]   ;;  %s4738_s14 = inlined_call_operand.vmem [shape: f32[2,1,32], index: 14, kind: input, shape index: {}]   ;;  %s4739_s15 = inlined_call_operand.vmem [shape: f32[2,1,32], index: 15, kind: input, shape index: {}]   ;;  %s4740_s16 = inlined_call_operand.vmem [shape: f32[2,1,32], index: 16, kind: input, shape index: {}]   ;;  %s4741_s17 = inlined_call_operand.vmem [shape: f32[2,1,32], index: 17, kind: input, shape index: {}]   ;;  %s4742_s18 = inlined_call_operand.vmem [shape: f32[1,32], index: 18, kind: input, shape index: {}]   ;;  %s4743_s19 = inlined_call_operand.vmem [shape: f32[1,32], index: 19, kind: input, shape index: {}]   ;;  %s4744_s20 = inlined_call_operand.hbm [shape: f32[2,8,32], index: 20, kind: output, shape index: {}]  }
   0x1   :  { %4773 = sst [smem:[#allocation23_spill]] %s4724_s0 }
   0x2   :  { %4774 = sst [smem:[#allocation24_spill]] %s4725_s1 }
   0x3   :  { %4775 = sst [smem:[#allocation25_spill]] %s4726_s2 }
   0x4   :  { %4776 = sst [smem:[#allocation26_spill]] %s4727_s3 }
   0x5   :  { %4777 = sst [smem:[#allocation27_spill]] %s4728_s4 }
   0x6   :  { %4778 = sst [smem:[#allocation28_spill]] %s4729_s5 }
   0x7   :  { %4779 = sst [smem:[#allocation29_spill]] %s4730_s6 }
   0x8   :  { %4780 = sst [smem:[#allocation30_spill]] %s4731_s7 }
   0x9   :  { %4781 = sst [smem:[#allocation31_spill]] %s4734_s10 }
   0xa   :  { %4782 = sst [smem:[#allocation32_spill]] %s4735_s11 }
   0xb   :  { %4783 = sst [smem:[#allocation33_spill]] %s4737_s13 }
   0xc   :  { %4784 = sst [smem:[#allocation34_spill]] %s4740_s16 }
   0xd   :  { %4785 = sst [smem:[#allocation35_spill]] %s4741_s17 }
   0xe   :  { %4786 = sst [smem:[#allocation36_spill]] %s4742_s18 }
   0xf   :  { %4787 = sst [smem:[#allocation37_spill]] %s4743_s19 }
  0x10   :  { %4788 = sst [smem:[#allocation38_spill]] %s4744_s20 }
  0x11   :  { %25 = vsyncpa [#allocation4], 0 }
  0x12   :  { %27 = vsyncpa [#allocation4 + $0x1], 0 }
  0x13   :  { %28 = vsyncpa [#allocation7], 0 }
  0x14   :  { %30 = vsyncpa [#allocation7 + $0x1], 0 }
  0x15   :  { %31 = vsyncpa [#allocation10], 0 }
  0x16   :  { %32 = vsyncpa [#allocation5], 0 }
  0x17   :  { %34 = vsyncpa [#allocation5 + $0x1], 0  ;;  %s4077_s1 = smov 0   ;;  %s4079_s22 = smov 0  }
  0x18   :  { %s4081_s23 = smov 0   ;;  %s4083_s24 = smov 0  }
  0x19 LB: > { %4789 = sst [smem:[#allocation17_spill]] %s3939_s1  ;;  %s4098_s2 = sadd.s32 4294967295, %s3951_s24   ;;  %s3951_s24 = sphi %s4083_s24, %s4836_s24   ;;  %s3947_s23 = sphi %s4081_s23, %s4841_s23   ;;  %s3943_s22 = sphi %s4079_s22, %s4840_s22   ;;  %s3939_s1 = sphi %s4077_s1, %s4839_s1  }
  0x1a   : > { %4790 = sst [smem:[#allocation18_spill]] %s3947_s23  ;;  %s3240_s25 = sadd.s32 4294967294, %s3951_s24  }
  0x1b   : > { %p60_p0 = scmp.ne.s32.totalorder %s3943_s22, %s3939_s1  ;;  %p4749_p1 = scmp.eq.s32.totalorder %s4098_s2, 0 }
  0x1c   : > { %p499_p3 = scmp.eq.s32.totalorder %s3240_s25, 1  ;;  %p3241_p5 = scmp.ge.s32.totalorder %s3951_s24, 1 }
  0x1d   : > { %p4107_p4 = por %p4749_p1, %p60_p0  ;;  %p506_p7 = scmp.lt.s32.totalorder %s3951_s24, 3 }
  0x1e   : > { %p4112_p6 = por %p499_p3, %p60_p0  ;;  %s3953_s28 = smov [#allocation8]  }
  0x1f   : > { %s4791_s3 = scalar_select %p4107_p4, 1, 0 }
  0x20   : > { %s4792_s26 = scalar_select %p4112_p6, 1, 0 }
  0x21   : > { %p4117_p8 = pnand %p3241_p5, %p506_p7  ;;  %s519_s4 = sshll.u32 %s3953_s28, 4  ;;  %s520_s4 = int_to_ptr.vmem [resolvable:$true] %s519_s4 }
  0x22   : > { %4793 = sst [smem:[#allocation19_spill]] %s4792_s26  ;;  %s3954_s29 = smov [#allocation9]  }
  0x23   : > { %s4794_s27 = scalar_select %p4117_p8, 1, 0 }
  0x24   : > { %p3653_p10 = pneg %p4117_p8  ;;  %s547_s30 = sshll.u32 %s3954_s29, 4  ;;  %s548_s30 = int_to_ptr.vmem [resolvable:$true] %s547_s30 }
  0x25   : > { %s3778_s21 = scalar_lea.vmem %s520_s4, 128  ;;  %p3786_p5 = scmp.lt.s32.totalorder %s520_s4, %s520_s4 }
  0x26   : > { %p4126_p11 = pnand %p3653_p10, %p4749_p1  ;;  %p3779_p13 = scmp.ne.s32.totalorder %s520_s4, %s3778_s21 }
  0x27   : > { %p3787_p7 = scmp.lt.s32.totalorder %s3778_s21, %s3778_s21 }
  0x28   : > { %p3769_p12 = pneg %p4126_p11 }
  0x29   : > { %p3788_p9 = por %p3787_p7, %p3786_p5 }
  0x2a   : > { %p3781_p0 = pnand %p3779_p13, %p3769_p12 }
  0x2c   : > { %p3782_p3 = pneg %p3781_p0 }
  0x2e   : > { %p3789_p2 = pnand %p3788_p9, %p3782_p3 }
  0x30   : > { %3792 = shalt.err (!%p3789_p2)
}
  0x31   : > { %s4796_s29 = sld [smem:[#allocation25_spill]]  ;;  %s3804_s26 = scalar_lea.vmem %s548_s30, 1024 }
  0x32   : > { %p3805_p10 = scmp.ne.s32.totalorder %s548_s30, %s3804_s26  ;;  %p3812_p13 = scmp.lt.s32.totalorder %s548_s30, %s548_s30 }
  0x33   : > { %p3813_p0 = scmp.lt.s32.totalorder %s3804_s26, %s3804_s26 }
  0x34   : > { %p3807_p1 = pnand %p3805_p10, %p3769_p12 }
  0x35   : > { %p3814_p4 = por %p3813_p0, %p3812_p13 }
  0x36   : > { %p3808_p6 = pneg %p3807_p1 }
  0x37   : > { %3656 = dma.hbm_to_vmem [thread:$0]  (!%p4126_p11), %s4796_s29, 128, %s520_s4, [#allocation7]  }
  0x38   : > { %p3815_p8 = pnand %p3814_p4, %p3808_p6 }
  0x3a   : > { %3818 = shalt.err (!%p3815_p8)
}
  0x3b   : > { %s3955_s21 = smov 128   ;;  %s3956_s4 = smov 8  }
  0x3c   : > { %s4797_s10 = sld [smem:[#allocation31_spill]]  ;;  %s4149_s28 = sadd.s32 1, %s3951_s24  }
  0x3d   : > { %4798 = sst [smem:[#allocation20_spill]] %s4149_s28  ;;  %s47_s29 = sadd.s32 1, %s3947_s23 }
  0x3e   : > { %s44_s1 = ssub.s32 %s3951_s24, %s4149_s28  ;;  %p54_p1 = scmp.ne.s32.totalorder %s3947_s23, %s3943_s22 }
  0x3f   : > { %p45_p2 = scmp.eq.s32.totalorder %s44_s1, 0  ;;  %p55_p4 = scmp.eq.s32.totalorder %s3951_s24, 0 }
  0x40   : > { %p4799_p6 = scmp.eq.s32.totalorder %s4098_s2, 1  ;;  %p3673_p9 = scmp.lt.s32.totalorder %s3951_s24, 2 }
  0x41   : > { %s4165_s0 = scalar_select %p45_p2, %s3947_s23, %s47_s29  }
  0x42   : > { %3659 = dma.hbm_to_vmem [thread:$0]  (!%p4126_p11), %s4797_s10, 1024, %s548_s30, [#allocation10], %s3955_s21, %s3955_s21, %s3956_s4  }
  0x43   : > { %p4159_p8 = por %p4799_p6, %p54_p1  ;;  %4802 = sst [smem:[#allocation22_spill]] %s4165_s0 }
  0x44   : > { %p56_p12 = por %p55_p4, %p54_p1  ;;  %s588_s25 = sand.u32 1, %s3947_s23  }
  0x45   : > { %s4800_s20 = scalar_select %p4159_p8, 1, 0 }
  0x46   : > { %s4168_s30 = sshll.u32 %s588_s25, 3  ;;  %s3246_s21 = sshll.u32 %s3951_s24, 7 }
  0x47   : > { %4801 = sst [smem:[#allocation21_spill]] %s4800_s20  ;;  %s592_s1 = scalar_lea.vmem [#allocation3], %s4168_s30 }
  0x48   : > { %s4803_s10 = sld [smem:[#allocation23_spill]]  ;;  %s599_s19 = sshll.u32 %s592_s1, 4  ;;  %s4177_s19 = int_to_ptr.vmem [resolvable:$true] %s599_s19 }
  0x49   : > { %p4179_p11 = pnand %p3673_p9, %p56_p12  ;;  %s4805_s18 = sld [smem:[#allocation24_spill]] }
  0x4a   : > { %s606_s4 = sand.u32 1, %s3951_s24   ;;  %s589_s26 = scalar_lea.sflag [#allocation4], %s588_s25 }
  0x4b   : > { %p3821_p5 = pneg %p4179_p11 }
  0x4e   : > { %s4174_s28 = scalar_lea.hbm %s4803_s10, %s3246_s21  ;;  %s3824_s13 = scalar_lea.hbm %s4803_s10, 256 }
  0x4f   : > { %s4186_s20 = scalar_lea.hbm %s4805_s18, %s3246_s21  ;;  %s3819_s17 = scalar_lea.hbm %s4174_s28, 128 }
  0x50   : > { %p3820_p3 = scmp.ne.s32.totalorder %s4174_s28, %s3819_s17  ;;  %p3825_p13 = scmp.lt.s32.totalorder %s4174_s28, %s4803_s10 }
  0x51   : > { %p3826_p0 = scmp.lt.s32.totalorder %s3824_s13, %s3819_s17 }
  0x52   : > { %p3822_p7 = pnand %p3821_p5, %p3820_p3 }
  0x53   : > { %p3827_p1 = por %p3826_p0, %p3825_p13 }
  0x54   : > { %p3823_p10 = pneg %p3822_p7 }
  0x56   : > { %p3828_p2 = pnand %p3827_p1, %p3823_p10 }
  0x58   : > { %3831 = shalt.err (!%p3828_p2)
}
  0x59   : > { %s3832_s0 = scalar_lea.vmem %s4177_s19, 128  ;;  %s3957_s16 = smov [#allocation3]  }
  0x5a   : > { %p3833_p4 = scmp.ne.s32.totalorder %s4177_s19, %s3832_s0  ;;  %s3837_s25 = sshll.u32 %s3957_s16, 4  ;;  %s3838_s25 = int_to_ptr.vmem [resolvable:$false] %s3837_s25 }
  0x5b   : > { %s3839_s21 = scalar_lea.vmem %s3838_s25, 256  ;;  %p3840_p12 = scmp.lt.s32.totalorder %s4177_s19, %s3838_s25 }
  0x5c   : > { %p3835_p6 = pnand %p3833_p4, %p3821_p5  ;;  %p3841_p3 = scmp.lt.s32.totalorder %s3839_s21, %s3832_s0 }
  0x5e   : > { %p3836_p9 = pneg %p3835_p6  ;;  %p3842_p7 = por %p3841_p3, %p3840_p12 }
  0x60   : > { %p3843_p13 = pnand %p3842_p7, %p3836_p9 }
  0x62   : > { %3846 = shalt.err (!%p3843_p13)
}
  0x63   : > { %3663 = dma.hbm_to_vmem [thread:$0]  (!%p4179_p11), %s4174_s28, 128, %s4177_s19, %s589_s26  }
  0x64   : > { %s610_s11 = scalar_lea.vmem [#allocation6], %s4168_s30  ;;  %s607_s17 = scalar_lea.sflag [#allocation7], %s606_s4 }
  0x65   : > { %s617_s13 = sshll.u32 %s610_s11, 4  ;;  %s3847_s1 = scalar_lea.hbm %s4186_s20, 128  ;;  %s618_s13 = int_to_ptr.vmem [resolvable:$true] %s617_s13 }
  0x66   : > { %p3848_p10 = scmp.ne.s32.totalorder %s4186_s20, %s3847_s1  ;;  %s3852_s16 = scalar_lea.hbm %s4805_s18, 256 }
  0x67   : > { %p3853_p2 = scmp.lt.s32.totalorder %s4186_s20, %s4805_s18  ;;  %p3854_p4 = scmp.lt.s32.totalorder %s3852_s16, %s3847_s1 }
  0x68   : > { %p3850_p0 = pnand %p3848_p10, %p3821_p5 }
  0x69   : > { %p3855_p6 = por %p3854_p4, %p3853_p2 }
  0x6a   : > { %p3851_p1 = pneg %p3850_p0 }
  0x6c   : > { %p3856_p9 = pnand %p3855_p6, %p3851_p1 }
  0x6e   : > { %3859 = shalt.err (!%p3856_p9)
}
  0x6f   : > { %s3860_s19 = scalar_lea.vmem %s618_s13, 128  ;;  %s3958_s28 = smov [#allocation6]  }
  0x70   : > { %p3861_p12 = scmp.ne.s32.totalorder %s618_s13, %s3860_s19  ;;  %s3865_s30 = sshll.u32 %s3958_s28, 4  ;;  %s3866_s30 = int_to_ptr.vmem [resolvable:$false] %s3865_s30 }
  0x71   : > { %s3867_s4 = scalar_lea.vmem %s3866_s30, 256  ;;  %p3868_p13 = scmp.lt.s32.totalorder %s618_s13, %s3866_s30 }
  0x72   : > { %p3863_p3 = pnand %p3861_p12, %p3821_p5  ;;  %p3869_p10 = scmp.lt.s32.totalorder %s3867_s4, %s3860_s19 }
  0x74   : > { %p3864_p7 = pneg %p3863_p3  ;;  %p3870_p0 = por %p3869_p10, %p3868_p13 }
  0x76   : > { %p3871_p8 = pnand %p3870_p0, %p3864_p7 }
  0x78   : > { %3874 = shalt.err (!%p3871_p8)
}
  0x79   : > { %3666 = dma.hbm_to_vmem [thread:$0]  (!%p4179_p11), %s4186_s20, 128, %s618_s13, %s607_s17  }
  0x7a   : > { %p4806_p1 = scmp.ne.s32.totalorder %s4794_s27, 0 }
  0x7b   : > { %s4237_s26 = sand.u32 (!%p4806_p1), 1, %s3943_s22   ;;  %p4807_p5 = scmp.ne.s32.totalorder (!%p4806_p1), %s4791_s3, 0 }
  0x7c   : > { %632 = sbr.rel (%p4806_p1) target bundleno = 5231 (0x146f), region = 100  ;;  %s4240_s11 = sshll.u32 (!%p4806_p1), %s4237_s26, 3 }
  0x7d   : > { %s635_s1 = scalar_lea.sflag (!%p4806_p1), [#allocation4], %s4237_s26  ;;  %s638_s23 = scalar_lea.vmem (!%p4806_p1), [#allocation3], %s4240_s11 }
  0x81   : > { %3918 = dma.done.wait (%p4807_p5), %s635_s1, 128  }
  0x82   : > { %3920 = vsyncadd (%p4807_p5), %s635_s1, 4294967168  ;;  %s643_s20 = sand.u32 1, %s4098_s2   ;;  %s647_s29 = scalar_lea.vmem [#allocation6], %s4240_s11 }
  0x83   : > { %s644_s27 = scalar_lea.sflag [#allocation7], %s643_s20 }
  0x84   : > { %3922 = dma.done.wait (%p4807_p5), %s644_s27, 128  }
  0x85   : > { %3924 = vsyncadd (%p4807_p5), %s644_s27, 4294967168  ;;  %p4808_p8 = scmp.eq.s32.totalorder %s4098_s2, 0 }
  0x87   : > { %3926 = dma.done.wait (%p4808_p8), [#allocation7], 128   ;;  %p4809_p11 = pmov %p4808_p8 }
  0x88   : > { %p4810_p2 = pmov %p4808_p8 }
  0x89   : > { %3928 = vsyncadd (%p4809_p11), [#allocation7], 4294967168 }
  0x8a   : > { %3930 = dma.done.wait (%p4810_p2), [#allocation10], 1024   ;;  %p4811_p4 = pmov %p4810_p2 }
  0x8b   : > { %v3959_v0 = vmov 0.0   ;;  %vm3960_vm0 = vmmov 0   ;;  %s4812_s17 = sld [smem:[#allocation27_spill]]  ;;  %v4274_v3 = vld [vmem:[%s638_s23] sm:$0xff]  ;;  %v4276_v4 = vld [vmem:[%s647_s29] sm:$0xff]  ;;  %vm746_vm1 = vcmask 261120  }
  0x8c   : > { %3932 = vsyncadd (%p4811_p4), [#allocation10], 4294966272  ;;  %3433 = vmatprep.subr.mxu1 %v3959_v0  ;;  %3441 = vmatprep.mubr.msk.f32.mxu1 %vm3960_vm0, %v3959_v0  ;;  %v734_v7 = vadd.f32 %v4276_v4, %v4274_v3  ;;  %s4813_s5 = sld [smem:[#allocation28_spill]]  ;;  %s3961_s1 = smov 120   ;;  %vm907_vm2 = vcmask 64512   ;;  %v725_v23 = vld [vmem:[#allocation8] sm:$0xff] }
  0x8d   : > { %3455 = vmatprep.subr.mxu0 %v3959_v0  ;;  %3457 = vmatprep.mubr.msk.f32.mxu0 %vm3960_vm0, %v3959_v0  ;;  %s3962_s23 = smov 96   ;;  %s4814_s6 = sld [smem:[#allocation29_spill]]  ;;  %vm1237_vm3 = vcmask 130112   ;;  %vm1408_vm4 = vcmask 195712   ;;  %vm1579_vm5 = vcmask 261312   ;;  %vm1797_vm6 = vcmask 523264  }
  0x8e   : > { %s3963_s13 = smov 80   ;;  %s3964_s0 = smov 88  }
  0x8f   : > { %s4769_s21 = smov 72   ;;  %s4770_s19 = smov 112  }
  0x90   : > { %s4767_s4 = smov 104   ;;  %p720_p6 = scmp.lt.s32.totalorder %s4098_s2, 1 }
  0x91   : > { %v738_v1 = vld [vmem:[%s4812_s17 + $0x18] sm:$0xff]  ;;  %v737_v2 = vld [vmem:[%s4812_s17 + $0x10] sm:$0xff]  ;;  %v736_v5 = vld [vmem:[%s4812_s17 + $0x8] sm:$0xff]  ;;  %s4815_s3 = sld [smem:[#allocation26_spill]]  ;;  %s4765_s30 = smov 8  }
  0x92   : > { %3434 = vmatpush3.msra.mxu1 %v738_v1  ;;  %v735_v6 = vld [vmem:[%s4812_s17] sm:$0xff]  ;;  %s721_s20 = scalar_select %p720_p6, %s4098_s2, 1 }
  0x93   : > { %3435 = vmatprep.subr.mxu1 %v3959_v0  ;;  %v3256_v8 = vld [vmem:[%s4813_s5] ss:$0 sm:$0xff]  ;;  %v823_v12 = vld [vmem:[%s4814_s6 + $0x18] sm:$0xff]  ;;  %v822_v13 = vld [vmem:[%s4814_s6 + $0x10] sm:$0xff]  ;;  %s4816_s7 = sld [smem:[#allocation30_spill]]  ;;  %s4766_s27 = smov 24  }
  0x94   : > { %3436 = vmatpush3.msra.mxu1 %v737_v2  ;;  %v821_v14 = vld [vmem:[%s4814_s6 + $0x8] sm:$0xff]  ;;  %v820_v15 = vld [vmem:[%s4814_s6] sm:$0xff]  ;;  %s4819_s25 = sld [smem:[#allocation34_spill]]  ;;  %s4821_s28 = smov 112  }
  0x95   : > { %3437 = vmatprep.subr.mxu1 %v3959_v0  ;;  %s719_s29 = scalar_lea.vmem [#allocation11], %s4240_s11 }
  0x96   : > { %3438 = vmatpush3.msra.mxu1 %v736_v5 }
  0x97   : > { %3439 = vmatprep.subr.mxu1 %v3959_v0  ;;  %s722_s16 = scalar_lea.vmem %s4815_s3, %s721_s20  ;;  %s4764_s20 = smov 16  }
  0x98   : > { %3440 = vmatpush3.msra.mxu1 %v735_v6  ;;  %v3255_v24 = vld [vmem:[%s722_s16] ss:$0 sm:$0xff]  ;;  %s4818_s3 = sld [smem:[#allocation33_spill]] }
  0x99   : > { %3442 = vmatmul.mubr.msk.f32.vlgmr.msra.gmra.mxu1 %vm746_vm1, %v734_v7  ;;  %3444 = vmatprep.subr.mxu1 %v3959_v0  ;;  %v4348_v25 = vadd.f32 %v3255_v24, %v725_v23  ;;  %v3258_v42 = vld [vmem:[%s4816_s7] ss:$0 sm:$0xff] }
  0x9a   : > { %3452 = vmatprep.mubr.msk.f32.mxu1 %vm3960_vm0, %v3959_v0  ;;  %3445 = vmatpush3.msra.mxu1 %v823_v12 }
  0x9b   : > { %3446 = vmatprep.subr.mxu1 %v3959_v0 }
  0x9c   : > { %3447 = vmatpush3.msra.mxu1 %v822_v13 }
  0x9d   : > { %3448 = vmatprep.subr.mxu1 %v3959_v0 }
  0x9e   : > { %3449 = vmatpush3.msra.mxu1 %v821_v14 }
  0x9f   : > { %3450 = vmatprep.subr.mxu1 %v3959_v0 }
  0xa0   : > { %3451 = vmatpush3.msra.mxu1 %v820_v15 }
  0xa1   : > { %3453 = vmatmul.mubr.msk.f32.vlgmr.msra.gmra.mxu1 %vm746_vm1, %v4274_v3  ;;  %3460 = vmatprep.subr.mxu1 %v3959_v0 }
  0xa2   : > { %3462 = vmatprep.mubr.msk.f32.mxu1 %vm3960_vm0, %v3959_v0 }
 0x159   : > { %v816_v9 = vpop.f32.mrf.mxu1 }
 0x15a   : > { %v817_v10 = vadd.f32 %v3256_v8, %v816_v9 }
 0x15b   : > { %v3443_v11 = vpop.f32.mrf.mxu1 }
 0x15c   : > { %1067 = vrot.lane.b32.xlu1 %v817_v10, %s3961_s1  ;;  %905 = vrot.lane.b32.xlu0 %v817_v10, %s3962_s23 }
 0x160   : > { %1241 = vrot.lane.b32.xlu1 %v817_v10, %s3963_s13  ;;  %1069 = vrot.lane.b32.xlu0 %v817_v10, %s3964_s0 }
 0x161   : > { %v900_v43 = vpop.f32.mrf.mxu1 }
 0x162   : > { %v901_v44 = vadd.f32 %v3258_v42, %v900_v43 }
 0x163   : > { %v3454_v45 = vpop.f32.mrf.mxu1 }
 0x164   : > { %1412 = vrot.lane.b32.xlu1 %v817_v10, %s4769_s21  ;;  %1239 = vrot.lane.b32.xlu0 %v817_v10, %s4770_s19  ;;  %s4820_s21 = sld [smem:[#allocation35_spill]] }
 0x165   : > { %3461 = vmatpush3.msra.mxu1 %v901_v44 }
 0x166   : > { %3470 = vmatprep.subr.mxu1 %v3959_v0 }
 0x168   : > { %1410 = vrot.lane.b32.xlu0 %v817_v10, %s4767_s4 }
 0x1ce   : > { %v1068_v16 = vpop.permute.xlu1 %1067  ;;  %v906_v17 = vpop.permute.xlu0 %905 }
 0x1cf   : > { %3456 = vmatpush3.xpose.msk.msra.mxu0 %vm907_vm2, %v906_v17 }
 0x1d0   : > { %3465 = vmatprep.subr.mxu0 %v3959_v0 }
 0x1d2   : > { %3458 = vmatmul.mubr.msk.f32.vlgmr.msra.gmra.mxu0 %vm907_vm2, %v817_v10  ;;  %v1070_v18 = vpop.permute.xlu0 %1069  ;;  %v1242_v19 = vpop.permute.xlu1 %1241 }
 0x1d3   : > { %3466 = vmatpush3.xpose.msk.msra.mxu0 %vm907_vm2, %v1070_v18  ;;  %3467 = vmatprep.mubr.msk.f32.mxu0 %vm3960_vm0, %v3959_v0 }
 0x1d4   : > { %3475 = vmatprep.subr.mxu0 %v3959_v0 }
 0x1d6   : > { %3468 = vmatmul.mubr.msk.f32.vlgmr.msra.gmra.mxu0 %vm907_vm2, %v1068_v16  ;;  %v1240_v20 = vpop.permute.xlu0 %1239  ;;  %v1413_v21 = vpop.permute.xlu1 %1412 }
 0x1d7   : > { %3476 = vmatpush3.xpose.msk.msra.mxu0 %vm907_vm2, %v1242_v19  ;;  %3477 = vmatprep.mubr.msk.f32.mxu0 %vm3960_vm0, %v3959_v0 }
 0x1d8   : > { %3485 = vmatprep.subr.mxu0 %v3959_v0 }
 0x1da   : > { %3478 = vmatmul.mubr.msk.f32.vlgmr.msra.gmra.mxu0 %vm907_vm2, %v1240_v20  ;;  %v1411_v22 = vpop.permute.xlu0 %1410 }
 0x1db   : > { %3486 = vmatpush3.xpose.msk.msra.mxu0 %vm907_vm2, %v1413_v21  ;;  %3487 = vmatprep.mubr.msk.f32.mxu0 %vm3960_vm0, %v3959_v0 }
 0x1dc   : > { %3495 = vmatprep.subr.mxu0 %v3959_v0 }
 0x1de   : > { %3488 = vmatmul.mubr.msk.f32.vlgmr.msra.gmra.mxu0 %vm907_vm2, %v1411_v22 }
 0x1df   : > { %3503 = vmatprep.mubr.msk.f32.mxu0 %vm3960_vm0, %v3959_v0 }
 0x292   : > { %v978_v26 = vpop.f32.mrf.mxu0 }
 0x293   : > { %v979_v27 = vadd.f32 %v978_v26, %v4348_v25 }
 0x294   : > { %v3459_v28 = vpop.f32.mrf.mxu0 }
 0x295   : > { %v982_v29 = vsel %vm907_vm2, %v979_v27, -inf  ;;  %v1584_v28 = vld [vmem:[%s4732_s8 + $0x10] sm:$0xff] }
 0x296   : > { %983 = vmax.xlane.f32.xlu1 %v982_v29  ;;  %v1141_v30 = vpop.f32.mrf.mxu0  ;;  %v1583_v29 = vld [vmem:[%s4732_s8 + $0x8] sm:$0xff] }
 0x297   : > { %v1142_v31 = vadd.f32 %v1141_v30, %v4348_v25  ;;  %v1582_v30 = vld [vmem:[%s4732_s8] sm:$0xff] }
 0x298   : > { %v3469_v32 = vpop.f32.mrf.mxu0 }
 0x299   : > { %v1145_v33 = vsel %vm907_vm2, %v1142_v31, -inf }
 0x29a   : > { %1146 = vmax.xlane.f32.xlu0 %v1145_v33  ;;  %v1313_v34 = vpop.f32.mrf.mxu0 }
 0x29b   : > { %v1314_v35 = vadd.f32 %v1313_v34, %v4348_v25 }
 0x29c   : > { %v3479_v36 = vpop.f32.mrf.mxu0 }
 0x29d   : > { %v1317_v37 = vsel %vm907_vm2, %v1314_v35, -inf }
 0x29e   : > { %1318 = vmax.xlane.f32.xlu0 %v1317_v37  ;;  %v1484_v38 = vpop.f32.mrf.mxu0  ;;  %v3272_v37 = vld [vmem:[%s4733_s9] ss:$0 sm:$0xff] }
 0x29f   : > { %v1485_v39 = vadd.f32 %v1484_v38, %v4348_v25 }
 0x2a0   : > { %v3489_v40 = vpop.f32.mrf.mxu0 }
 0x2a1   : > { %v1488_v41 = vsel %vm907_vm2, %v1485_v39, -inf }
 0x2a2   : > { %1489 = vmax.xlane.f32.xlu1 %v1488_v41 }
 0x31f   : > { %v984_v46 = vpop.xlane.xlu1 %983 }
 0x320   : > { %v985_v47 = vsub.f32 %v979_v27, %v984_v46  ;;  %v1585_v27 = vld [vmem:[%s4732_s8 + $0x18] sm:$0xff] }
 0x321   : > { %3496 = vmatpush3.msra.mxu0 %v1585_v27  ;;  %v3282_v27 = vld [vmem:[%s4812_s17 + $0x20] sm:$0xff] }
 0x322   : > { %v986_v48 = vmul.f32 1.442695, %v985_v47  ;;  %3497 = vmatprep.subr.mxu0 %v3959_v0 }
 0x323   : > { %v1147_v49 = vpop.xlane.xlu0 %1146  ;;  %3498 = vmatpush3.msra.mxu0 %v1584_v28 }
 0x324   : > { %3725 = vpow2.f32 %v986_v48  ;;  %v1148_v50 = vsub.f32 %v1142_v31, %v1147_v49  ;;  %3499 = vmatprep.subr.mxu0 %v3959_v0  ;;  %v1700_v48 = vld [vmem:[#allocation9 + $0x18] sm:$0xff]  ;;  %v1699_v49 = vld [vmem:[#allocation9 + $0x10] sm:$0xff] }
 0x325   : > { %3500 = vmatpush3.msra.mxu0 %v1583_v29 }
 0x326   : > { %v1149_v51 = vmul.f32 1.442695, %v1148_v50  ;;  %3501 = vmatprep.subr.mxu0 %v3959_v0  ;;  %v1698_v50 = vld [vmem:[#allocation9 + $0x8] sm:$0xff] }
 0x327   : > { %v1319_v52 = vpop.xlane.xlu0 %1318  ;;  %3502 = vmatpush3.msra.mxu0 %v1582_v30 }
 0x328   : > { %3727 = vpow2.f32 %v1149_v51  ;;  %v1320_v53 = vsub.f32 %v1314_v35, %v1319_v52  ;;  %3517 = vmatprep.subr.mxu0 %v3959_v0  ;;  %v1789_v51 = vld [vmem:[%s4736_s12 + $0x38] sm:$0xff]  ;;  %v1788_v52 = vld [vmem:[%s4736_s12 + $0x30] sm:$0xff] }
 0x32a   : > { %v1321_v54 = vmul.f32 1.442695, %v1320_v53  ;;  %v1787_v53 = vld [vmem:[%s4736_s12 + $0x28] sm:$0xff] }
 0x32b   : > { %v1490_v61 = vpop.xlane.xlu1 %1489 }
 0x32c   : > { %3729 = vpow2.f32 %v1321_v54  ;;  %v1491_v62 = vsub.f32 %v1485_v39, %v1490_v61  ;;  %v1786_v54 = vld [vmem:[%s4736_s12 + $0x20] sm:$0xff] }
 0x32e   : > { %v1492_v63 = vmul.f32 1.442695, %v1491_v62  ;;  %v3275_v62 = vld [vmem:[%s4739_s15] ss:$0 sm:$0xff] }
 0x330   : > { %3731 = vpow2.f32 %v1492_v63 }
 0x331   : > { %v3726_v55 = vpop.eup %3725 }
 0x332   : > { %v988_v56 = vsel %vm907_vm2, %v3726_v55, 0.0 }
 0x333   : > { %989 = vadd.xlane.f32.xlu0 %v988_v56 }
 0x335   : > { %v3728_v57 = vpop.eup %3727 }
 0x336   : > { %v1151_v58 = vsel %vm907_vm2, %v3728_v57, 0.0 }
 0x337   : > { %1152 = vadd.xlane.f32.xlu1 %v1151_v58 }
 0x339   : > { %v3730_v59 = vpop.eup %3729 }
 0x33a   : > { %v1323_v60 = vsel %vm907_vm2, %v3730_v59, 0.0 }
 0x33b   : > { %1324 = vadd.xlane.f32.xlu0 %v1323_v60  ;;  %v3274_v60 = vld [vmem:[%s4738_s14] ss:$0 sm:$0xff] }
 0x33d   : > { %v3732_v1 = vpop.eup %3731 }
 0x33e   : > { %v1494_v2 = vsel %vm907_vm2, %v3732_v1, 0.0 }
 0x348   : > { %1328 = vrot.lane.b32.xlu1 %v901_v44, %s4770_s19  ;;  %s3340_s19 = sshll.u32 %s4098_s2, 7 }
 0x351   : > { %1157 = vrot.lane.b32.xlu0 %v901_v44, %s3961_s1 }
 0x36c   : > { %1495 = vadd.xlane.f32.xlu1 %v1494_v2  ;;  %v1784_v2 = vld [vmem:[%s4736_s12 + $0x10] sm:$0xff] }
 0x37d   : > { %1499 = vrot.lane.b32.xlu1 %v901_v44, %s4767_s4  ;;  %s4829_s4 = sld [smem:[#allocation37_spill]] }
 0x3bc   : > { %v990_v5 = vpop.xlane.xlu0 %989 }
 0x3bd   : > { %3733 = vrcp.f32 %v990_v5  ;;  %v1783_v5 = vld [vmem:[%s4736_s12 + $0x8] sm:$0xff] }
 0x3c0   : > { %v1153_v6 = vpop.xlane.xlu1 %1152 }
 0x3c1   : > { %3735 = vrcp.f32 %v1153_v6  ;;  %v1782_v6 = vld [vmem:[%s4736_s12] sm:$0xff] }
 0x3c4   : > { %v1325_v7 = vpop.xlane.xlu0 %1324  ;;  %v1329_v13 = vpop.permute.xlu1 %1328 }
 0x3c5   : > { %3737 = vrcp.f32 %v1325_v7 }
 0x3c8   : > { %v1158_v10 = vpop.permute.xlu0 %1157 }
 0x3ca   : > { %v3734_v8 = vpop.eup %3733 }
 0x3cb   : > { %v992_v9 = vmul.f32 %v3734_v8, %v3726_v55  ;;  %v1785_v55 = vld [vmem:[%s4736_s12 + $0x18] sm:$0xff] }
 0x3cd   : > { %3463 = vmatmul.mubr.msk.f32.vlgmr.msra.gmra.mxu1 %vm907_vm2, %v992_v9 }
 0x3ce   : > { %v3736_v11 = vpop.eup %3735  ;;  %3471 = vmatpush3.msra.mxu1 %v1158_v10  ;;  %3472 = vmatprep.mubr.msk.f32.mxu1 %vm3960_vm0, %v3959_v0 }
 0x3cf   : > { %3480 = vmatprep.subr.mxu1 %v3959_v0  ;;  %v1155_v12 = vmul.f32 %v3736_v11, %v3728_v57 }
 0x3d1   : > { %3473 = vmatmul.mubr.msk.f32.vlgmr.msra.gmra.mxu1 %vm907_vm2, %v1155_v12  ;;  %v3278_v12 = vld [vmem:[%s4818_s3] ss:$0 sm:$0xff] }
 0x3d2   : > { %v3738_v14 = vpop.eup %3737  ;;  %3481 = vmatpush3.msra.mxu1 %v1329_v13  ;;  %3482 = vmatprep.mubr.msk.f32.mxu1 %vm3960_vm0, %v3959_v0 }
 0x3d3   : > { %v1327_v15 = vmul.f32 %v3738_v14, %v3730_v59  ;;  %3490 = vmatprep.subr.mxu1 %v3959_v0 }
 0x3d5   : > { %3483 = vmatmul.mubr.msk.f32.vlgmr.msra.gmra.mxu1 %vm907_vm2, %v1327_v15 }
 0x3d6   : > { %3492 = vmatprep.mubr.msk.f32.mxu1 %vm3960_vm0, %v3959_v0 }
 0x3f5   : > { %v1496_v16 = vpop.xlane.xlu1 %1495 }
 0x3f6   : > { %3739 = vrcp.f32 %v1496_v16 }
 0x3f9   : > { %v1500_v17 = vpop.permute.xlu1 %1499 }
 0x3fa   : > { %3491 = vmatpush3.msra.mxu1 %v1500_v17 }
 0x3fb   : > { %3506 = vmatprep.subr.mxu1 %v3959_v0 }
 0x403   : > { %v3740_v18 = vpop.eup %3739 }
 0x404   : > { %v1498_v19 = vmul.f32 %v3740_v18, %v3732_v1 }
 0x406   : > { %3493 = vmatmul.mubr.msk.f32.vlgmr.msra.gmra.mxu1 %vm907_vm2, %v1498_v19 }
 0x407   : > { %3514 = vmatprep.mubr.msk.f32.mxu1 %vm3960_vm0, %v3959_v0  ;;  %3507 = vmatpush3.msra.mxu1 %v1700_v48 }
 0x408   : > { %3508 = vmatprep.subr.mxu1 %v3959_v0 }
 0x409   : > { %3509 = vmatpush3.msra.mxu1 %v1699_v49 }
 0x40a   : > { %3510 = vmatprep.subr.mxu1 %v3959_v0 }
 0x40b   : > { %3511 = vmatpush3.msra.mxu1 %v1698_v50 }
 0x40c   : > { %3512 = vmatprep.subr.mxu1 %v3959_v0 }
 0x48d   : > { %v1062_v20 = vpop.f32.mrf.mxu1 }
 0x48e   : > { %1066 = vst.msk [vmem:[#allocation2] sm:$0xff] %vm907_vm2, %v1062_v20 }
 0x48f   : > { %v3464_v21 = vpop.f32.mrf.mxu1 }
 0x491   : > { %v1229_v22 = vpop.f32.mrf.mxu1 }
 0x492   : > { %1234 = vrot.lane.b32.xlu0 %v1229_v22, %s4765_s30  ;;  %s4817_s30 = sld [smem:[#allocation32_spill]] }
 0x493   : > { %v3474_v23 = vpop.f32.mrf.mxu1 }
 0x494   : > { %v3285_v23 = vld [vmem:[%s4812_s17 + $0x38] sm:$0xff] }
 0x495   : > { %v1400_v24 = vpop.f32.mrf.mxu1 }
 0x496   : > { %1405 = vrot.lane.b32.xlu1 %v1400_v24, %s4764_s20  ;;  %v3284_v24 = vld [vmem:[%s4812_s17 + $0x30] sm:$0xff]  ;;  %s4822_s20 = smov 72  }
 0x497   : > { %v3484_v26 = vpop.f32.mrf.mxu1 }
 0x498   : > { %v3276_v7 = vld [vmem:[%s4817_s30] ss:$0 sm:$0xff]  ;;  %v3283_v26 = vld [vmem:[%s4812_s17 + $0x28] sm:$0xff] }
 0x4c6   : > { %v1571_v31 = vpop.f32.mrf.mxu1 }
 0x4c7   : > { %1576 = vrot.lane.b32.xlu0 %v1571_v31, %s4766_s27  ;;  %s3119_s27 = sshll.u32 %s719_s29, 4  ;;  %s3120_s27 = int_to_ptr.vmem [resolvable:$true] %s3119_s27 }
 0x4c8   : > { %v3494_v32 = vpop.f32.mrf.mxu1 }
 0x4c9   : > { %v3280_v32 = vld [vmem:[%s4819_s25] ss:$0 sm:$0xff] }
 0x504   : > { %v1235_v33 = vpop.permute.xlu0 %1234 }
 0x505   : > { %1238 = vst.msk [vmem:[#allocation2] sm:$0xff] %vm1237_vm3, %v1235_v33 }
 0x508   : > { %v1406_v34 = vpop.permute.xlu1 %1405 }
 0x509   : > { %1409 = vst.msk [vmem:[#allocation2] sm:$0xff] %vm1408_vm4, %v1406_v34  ;;  %v3281_v34 = vld [vmem:[%s4820_s21] ss:$0 sm:$0xff] }
 0x539   : > { %v1577_v35 = vpop.permute.xlu0 %1576 }
 0x53a   : > { %1580 = vst.msk [vmem:[#allocation2] sm:$0xff] %vm1579_vm5, %v1577_v35 }
 0x541   : > { %v1581_v36 = vld [vmem:[#allocation2] sm:$0xff] }
 0x542   : > { %3504 = vmatmul.mubr.msk.f32.vlgmr.msra.gmra.mxu0 %vm746_vm1, %v1581_v36 }
 0x543   : > { %3533 = vmatprep.mubr.msk.f32.mxu0 %vm3960_vm0, %v3959_v0  ;;  %3518 = vmatpush3.msra.mxu0 %v1789_v51 }
 0x544   : > { %3519 = vmatprep.subr.mxu0 %v3959_v0 }
 0x545   : > { %3520 = vmatpush3.msra.mxu0 %v1788_v52 }
 0x546   : > { %3521 = vmatprep.subr.mxu0 %v3959_v0 }
 0x547   : > { %3522 = vmatpush3.msra.mxu0 %v1787_v53 }
 0x548   : > { %3523 = vmatprep.subr.mxu0 %v3959_v0 }
 0x549   : > { %3524 = vmatpush3.msra.mxu0 %v1786_v54 }
 0x54a   : > { %3525 = vmatprep.subr.mxu0 %v3959_v0 }
 0x54b   : > { %3526 = vmatpush3.msra.mxu0 %v1785_v55 }
 0x54c   : > { %3527 = vmatprep.subr.mxu0 %v3959_v0 }
 0x54d   : > { %3528 = vmatpush3.msra.mxu0 %v1784_v2 }
 0x54e   : > { %3529 = vmatprep.subr.mxu0 %v3959_v0 }
 0x54f   : > { %3530 = vmatpush3.msra.mxu0 %v1783_v5 }
 0x550   : > { %3531 = vmatprep.subr.mxu0 %v3959_v0 }
 0x551   : > { %3532 = vmatpush3.msra.mxu0 %v1782_v6 }
 0x552   : > { %3558 = vmatprep.subr.mxu0 %v3959_v0 }
 0x602   : > { %v1662_v38 = vpop.f32.mrf.mxu0 }
 0x603   : > { %v1663_v39 = vadd.f32 %v3272_v37, %v1662_v38  ;;  %v3292_v38 = vld [vmem:[%s4814_s6 + $0x38] sm:$0xff] }
 0x604   : > { %v3505_v40 = vpop.f32.mrf.mxu0 }
 0x605   : > { %v1666_v41 = vadd.f32 %v1663_v39, %v4274_v3  ;;  %v1697_v3 = vld [vmem:[#allocation9] sm:$0xff]  ;;  %v3289_v40 = vld [vmem:[%s4814_s6 + $0x20] sm:$0xff] }
 0x606   : > { %3513 = vmatpush3.msra.mxu1 %v1697_v3  ;;  %v3291_v39 = vld [vmem:[%s4814_s6 + $0x30] sm:$0xff] }
 0x607   : > { %v1669_v42 = vsel %vm746_vm1, %v1666_v41, 0.0  ;;  %3536 = vmatprep.subr.mxu1 %v3959_v0 }
 0x608   : > { %1670 = vadd.xlane.f32.xlu1 %v1669_v42 }
 0x691   : > { %v1671_v43 = vpop.xlane.xlu1 %1670 }
 0x692   : > { %v1673_v44 = vmul.f32 0.03125, %v1671_v43 }
 0x694   : > { %v1674_v45 = vsub.f32 %v1666_v41, %v1673_v44  ;;  %v3287_v41 = vld [vmem:[%s4813_s5 + $0x1] ss:$0 sm:$0xff]  ;;  %s4830_s5 = sld [smem:[#allocation38_spill]] }
 0x696   : > { %v1675_v46 = vmul.f32 %v1674_v45, %v1674_v45 }
 0x698   : > { %v1676_v47 = vsel %vm746_vm1, %v1675_v46, 0.0 }
 0x699   : > { %1677 = vadd.xlane.f32.xlu0 %v1676_v47 }
 0x722   : > { %v1678_v56 = vpop.xlane.xlu0 %1677 }
 0x723   : > { %v1679_v57 = vmul.f32 0.03125, %v1678_v56 }
 0x725   : > { %v1680_v58 = vadd.f32 1e-05, %v1679_v57 }
 0x727   : > { %3741 = vrsqrt.f32 %v1680_v58 }
 0x734   : > { %v3742_v59 = vpop.eup %3741 }
 0x735   : > { %v1682_v61 = vmul.f32 %v3742_v59, %v1674_v45  ;;  %v3294_v45 = vld [vmem:[%s4816_s7 + $0x1] ss:$0 sm:$0xff]  ;;  %s3106_s7 = scalar_lea.sflag [#allocation5], %s4237_s26 }
 0x737   : > { %v1689_v63 = vmul.f32 %v3274_v60, %v1682_v61 }
 0x739   : > { %v1696_v1 = vadd.f32 %v3275_v62, %v1689_v63 }
 0x73b   : > { %3515 = vmatmul.mubr.msk.f32.vlgmr.msra.gmra.mxu1 %vm746_vm1, %v1696_v1 }
 0x73c   : > { %3544 = vmatprep.mubr.msk.f32.mxu1 %vm3960_vm0, %v3959_v0  ;;  %3537 = vmatpush3.msra.mxu1 %v3285_v23 }
 0x73d   : > { %3538 = vmatprep.subr.mxu1 %v3959_v0 }
 0x73e   : > { %3539 = vmatpush3.msra.mxu1 %v3284_v24 }
 0x73f   : > { %3540 = vmatprep.subr.mxu1 %v3959_v0 }
 0x740   : > { %3541 = vmatpush3.msra.mxu1 %v3283_v26 }
 0x741   : > { %3542 = vmatprep.subr.mxu1 %v3959_v0 }
 0x742   : > { %3543 = vmatpush3.msra.mxu1 %v3282_v27 }
 0x743   : > { %3547 = vmatprep.subr.mxu1 %v3959_v0 }
 0x7fb   : > { %v1777_v8 = vpop.f32.mrf.mxu1 }
 0x7fc   : > { %v1778_v9 = vadd.f32 %v3276_v7, %v1777_v8 }
 0x7fd   : > { %v3516_v10 = vpop.f32.mrf.mxu1 }
 0x7fe   : > { %v1781_v11 = vmax.f32 %v1778_v9, 0.0 }
 0x800   : > { %3534 = vmatmul.mubr.msk.f32.vlgmr.msra.gmra.mxu0 %vm1797_vm6, %v1781_v11 }
 0x801   : > { %3560 = vmatprep.mubr.msk.f32.mxu0 %vm3960_vm0, %v3959_v0 }
 0x8c0   : > { %v1867_v13 = vpop.f32.mrf.mxu0 }
 0x8c1   : > { %v1868_v14 = vadd.f32 %v3278_v12, %v1867_v13 }
 0x8c2   : > { %v3535_v15 = vpop.f32.mrf.mxu0 }
 0x8c3   : > { %v1871_v16 = vadd.f32 %v1868_v14, %v1696_v1 }
 0x8c5   : > { %v1874_v17 = vsel %vm746_vm1, %v1871_v16, 0.0 }
 0x8c6   : > { %1875 = vadd.xlane.f32.xlu0 %v1874_v17 }
 0x94f   : > { %v1876_v18 = vpop.xlane.xlu0 %1875 }
 0x950   : > { %v1877_v19 = vmul.f32 0.03125, %v1876_v18 }
 0x952   : > { %v1878_v20 = vsub.f32 %v1871_v16, %v1877_v19 }
 0x954   : > { %v1879_v21 = vmul.f32 %v1878_v20, %v1878_v20 }
 0x956   : > { %v1880_v22 = vsel %vm746_vm1, %v1879_v21, 0.0 }
 0x957   : > { %1881 = vadd.xlane.f32.xlu1 %v1880_v22 }
 0x9e0   : > { %v1882_v28 = vpop.xlane.xlu1 %1881 }
 0x9e1   : > { %v1883_v29 = vmul.f32 0.03125, %v1882_v28 }
 0x9e3   : > { %v1884_v30 = vadd.f32 1e-05, %v1883_v29 }
 0x9e5   : > { %3743 = vrsqrt.f32 %v1884_v30 }
 0x9f2   : > { %v3744_v31 = vpop.eup %3743 }
 0x9f3   : > { %v1886_v33 = vmul.f32 %v3744_v31, %v1878_v20 }
 0x9f5   : > { %v1893_v35 = vmul.f32 %v3280_v32, %v1886_v33 }
 0x9f7   : > { %v4494_v36 = vadd.f32 %v3281_v34, %v1893_v35 }
 0x9f9   : > { %v1901_v37 = vadd.f32 %v4494_v36, %v4276_v4  ;;  %v3290_v4 = vld [vmem:[%s4814_s6 + $0x28] sm:$0xff]  ;;  %s3117_s6 = scalar_lea.hbm %s4830_s5, %s3340_s19 }
 0x9fb   : > { %3545 = vmatmul.mubr.msk.f32.vlgmr.msra.gmra.mxu1 %vm746_vm1, %v1901_v37 }
 0x9fc   : > { %3548 = vmatpush3.msra.mxu1 %v3292_v38  ;;  %3555 = vmatprep.mubr.msk.f32.mxu1 %vm3960_vm0, %v3959_v0 }
 0x9fd   : > { %3549 = vmatprep.subr.mxu1 %v3959_v0 }
 0x9fe   : > { %3550 = vmatpush3.msra.mxu1 %v3291_v39 }
 0x9ff   : > { %3551 = vmatprep.subr.mxu1 %v3959_v0 }
 0xa00   : > { %3552 = vmatpush3.msra.mxu1 %v3290_v4 }
 0xa01   : > { %3553 = vmatprep.subr.mxu1 %v3959_v0 }
 0xa02   : > { %3554 = vmatpush3.msra.mxu1 %v3289_v40 }
 0xa03   : > { %3556 = vmatmul.mubr.msk.f32.vlgmr.msra.gmra.mxu1 %vm746_vm1, %v4494_v36  ;;  %3563 = vmatprep.subr.mxu1 %v3959_v0 }
 0xa04   : > { %3565 = vmatprep.mubr.msk.f32.mxu1 %vm3960_vm0, %v3959_v0 }
 0xabb   : > { %v1984_v42 = vpop.f32.mrf.mxu1 }
 0xabc   : > { %v1985_v43 = vadd.f32 %v3287_v41, %v1984_v42 }
 0xabd   : > { %v3546_v44 = vpop.f32.mrf.mxu1 }
 0xabe   : > { %2238 = vrot.lane.b32.xlu1 %v1985_v43, %s3964_s0  ;;  %2075 = vrot.lane.b32.xlu0 %v1985_v43, %s3962_s23  ;;  %s4823_s23 = smov 104  }
 0xac2   : > { %2236 = vrot.lane.b32.xlu1 %v1985_v43, %s3961_s1  ;;  %2409 = vrot.lane.b32.xlu0 %v1985_v43, %s3963_s13 }
 0xac3   : > { %v2070_v46 = vpop.f32.mrf.mxu1 }
 0xac4   : > { %v4531_v47 = vadd.f32 %v3294_v45, %v2070_v46  ;;  %v3311_v46 = vld [vmem:[%s4732_s8 + $0x38] sm:$0xff] }
 0xac5   : > { %v3557_v48 = vpop.f32.mrf.mxu1 }
 0xac6   : > { %3564 = vmatpush3.msra.mxu1 %v4531_v47  ;;  %2407 = vrot.lane.b32.xlu1 %v1985_v43, %s4821_s28 }
 0xac7   : > { %2579 = vrot.lane.b32.xlu0 %v1985_v43, %s4822_s20  ;;  %3573 = vmatprep.subr.mxu1 %v3959_v0  ;;  %s4825_s20 = smov 16  }
 0xaca   : > { %2577 = vrot.lane.b32.xlu1 %v1985_v43, %s4823_s23 }
 0xb30   : > { %v2239_v49 = vpop.permute.xlu1 %2238  ;;  %v2076_v50 = vpop.permute.xlu0 %2075 }
 0xb31   : > { %3559 = vmatpush3.xpose.msk.msra.mxu0 %vm907_vm2, %v2076_v50 }
 0xb32   : > { %3568 = vmatprep.subr.mxu0 %v3959_v0 }
 0xb34   : > { %v2237_v3 = vpop.permute.xlu1 %2236  ;;  %3561 = vmatmul.mubr.msk.f32.vlgmr.msra.gmra.mxu0 %vm907_vm2, %v1985_v43  ;;  %v2410_v51 = vpop.permute.xlu0 %2409 }
 0xb35   : > { %3569 = vmatpush3.xpose.msk.msra.mxu0 %vm907_vm2, %v2239_v49  ;;  %3570 = vmatprep.mubr.msk.f32.mxu0 %vm3960_vm0, %v3959_v0  ;;  %v3309_v49 = vld [vmem:[%s4732_s8 + $0x28] sm:$0xff] }
 0xb36   : > { %3578 = vmatprep.subr.mxu0 %v3959_v0 }
 0xb38   : > { %3571 = vmatmul.mubr.msk.f32.vlgmr.msra.gmra.mxu0 %vm907_vm2, %v2237_v3  ;;  %v2408_v52 = vpop.permute.xlu1 %2407  ;;  %v3308_v3 = vld [vmem:[%s4732_s8 + $0x20] sm:$0xff] }
 0xb39   : > { %3579 = vmatpush3.xpose.msk.msra.mxu0 %vm907_vm2, %v2410_v51  ;;  %3580 = vmatprep.mubr.msk.f32.mxu0 %vm3960_vm0, %v3959_v0  ;;  %v2580_v53 = vpop.permute.xlu0 %2579 }
 0xb3a   : > { %3588 = vmatprep.subr.mxu0 %v3959_v0 }
 0xb3c   : > { %3581 = vmatmul.mubr.msk.f32.vlgmr.msra.gmra.mxu0 %vm907_vm2, %v2408_v52  ;;  %v2578_v54 = vpop.permute.xlu1 %2577 }
 0xb3d   : > { %3589 = vmatpush3.xpose.msk.msra.mxu0 %vm907_vm2, %v2580_v53  ;;  %3590 = vmatprep.mubr.msk.f32.mxu0 %vm3960_vm0, %v3959_v0 }
 0xb3e   : > { %3598 = vmatprep.subr.mxu0 %v3959_v0 }
 0xb40   : > { %3591 = vmatmul.mubr.msk.f32.vlgmr.msra.gmra.mxu0 %vm907_vm2, %v2578_v54 }
 0xb41   : > { %3606 = vmatprep.mubr.msk.f32.mxu0 %vm3960_vm0, %v3959_v0  ;;  %3599 = vmatpush3.msra.mxu0 %v3311_v46 }
 0xb42   : > { %3600 = vmatprep.subr.mxu0 %v3959_v0 }
 0xbf4   : > { %v2147_v55 = vpop.f32.mrf.mxu0 }
 0xbf5   : > { %v2148_v56 = vadd.f32 %v2147_v55, %v4348_v25 }
 0xbf6   : > { %v3562_v57 = vpop.f32.mrf.mxu0 }
 0xbf7   : > { %v2151_v58 = vsel %vm907_vm2, %v2148_v56, -inf }
 0xbf8   : > { %2152 = vmax.xlane.f32.xlu0 %v2151_v58  ;;  %v2310_v59 = vpop.f32.mrf.mxu0 }
 0xbf9   : > { %v2311_v60 = vadd.f32 %v2310_v59, %v4348_v25 }
 0xbfa   : > { %v3572_v61 = vpop.f32.mrf.mxu0 }
 0xbfb   : > { %v2314_v62 = vsel %vm907_vm2, %v2311_v60, -inf }
 0xbfc   : > { %2315 = vmax.xlane.f32.xlu1 %v2314_v62  ;;  %v2481_v63 = vpop.f32.mrf.mxu0 }
 0xbfd   : > { %v2482_v1 = vadd.f32 %v2481_v63, %v4348_v25 }
 0xbfe   : > { %v3582_v2 = vpop.f32.mrf.mxu0 }
 0xbff   : > { %v2485_v5 = vsel %vm907_vm2, %v2482_v1, -inf }
 0xc00   : > { %2486 = vmax.xlane.f32.xlu0 %v2485_v5  ;;  %v2651_v6 = vpop.f32.mrf.mxu0 }
 0xc01   : > { %v2652_v7 = vadd.f32 %v2651_v6, %v4348_v25 }
 0xc02   : > { %v3592_v8 = vpop.f32.mrf.mxu0 }
 0xc03   : > { %v2655_v9 = vsel %vm907_vm2, %v2652_v7, -inf }
 0xc04   : > { %2656 = vmax.xlane.f32.xlu0 %v2655_v9 }
 0xc0d   : > { %2326 = vrot.lane.b32.xlu1 %v4531_v47, %s3961_s1  ;;  %s4828_s1 = sld [smem:[#allocation36_spill]] }
 0xc81   : > { %v2153_v10 = vpop.xlane.xlu0 %2152 }
 0xc82   : > { %v2154_v11 = vsub.f32 %v2148_v56, %v2153_v10  ;;  %v2870_v10 = vld [vmem:[#allocation9 + $0x38] sm:$0xff] }
 0xc84   : > { %v2155_v12 = vmul.f32 1.442695, %v2154_v11  ;;  %v2869_v11 = vld [vmem:[#allocation9 + $0x30] sm:$0xff] }
 0xc85   : > { %v2316_v13 = vpop.xlane.xlu1 %2315 }
 0xc86   : > { %3745 = vpow2.f32 %v2155_v12  ;;  %v2317_v14 = vsub.f32 %v2311_v60, %v2316_v13  ;;  %v3313_v60 = vld [vmem:[%s4733_s9 + $0x1] ss:$0 sm:$0xff]  ;;  %v2868_v12 = vld [vmem:[#allocation9 + $0x28] sm:$0xff] }
 0xc87   : > { %v3329_v13 = vld [vmem:[%s4736_s12 + $0x78] sm:$0xff] }
 0xc88   : > { %v2318_v15 = vmul.f32 1.442695, %v2317_v14  ;;  %v3328_v14 = vld [vmem:[%s4736_s12 + $0x70] sm:$0xff] }
 0xc89   : > { %v2487_v16 = vpop.xlane.xlu0 %2486  ;;  %v2327_v30 = vpop.permute.xlu1 %2326 }
 0xc8a   : > { %3747 = vpow2.f32 %v2318_v15  ;;  %v2488_v17 = vsub.f32 %v2482_v1, %v2487_v16  ;;  %v3327_v15 = vld [vmem:[%s4736_s12 + $0x68] sm:$0xff]  ;;  %v3326_v16 = vld [vmem:[%s4736_s12 + $0x60] sm:$0xff] }
 0xc8c   : > { %v2489_v18 = vmul.f32 1.442695, %v2488_v17  ;;  %v3325_v17 = vld [vmem:[%s4736_s12 + $0x58] sm:$0xff] }
 0xc8d   : > { %v2657_v19 = vpop.xlane.xlu0 %2656 }
 0xc8e   : > { %3749 = vpow2.f32 %v2489_v18  ;;  %v2658_v25 = vsub.f32 %v2652_v7, %v2657_v19 }
 0xc90   : > { %v2659_v20 = vmul.f32 1.442695, %v2658_v25 }
 0xc92   : > { %3751 = vpow2.f32 %v2659_v20 }
 0xc93   : > { %v3746_v21 = vpop.eup %3745 }
 0xc94   : > { %v2157_v22 = vsel %vm907_vm2, %v3746_v21, 0.0 }
 0xc95   : > { %2158 = vadd.xlane.f32.xlu1 %v2157_v22 }
 0xc97   : > { %v3748_v23 = vpop.eup %3747 }
 0xc98   : > { %v2320_v24 = vsel %vm907_vm2, %v3748_v23, 0.0 }
 0xc99   : > { %2321 = vadd.xlane.f32.xlu0 %v2320_v24 }
 0xc9b   : > { %v3750_v26 = vpop.eup %3749 }
 0xc9c   : > { %v2491_v27 = vsel %vm907_vm2, %v3750_v26, 0.0 }
 0xc9d   : > { %2492 = vadd.xlane.f32.xlu1 %v2491_v27  ;;  %v3324_v27 = vld [vmem:[%s4736_s12 + $0x50] sm:$0xff] }
 0xc9f   : > { %v3752_v28 = vpop.eup %3751 }
 0xca0   : > { %v2661_v29 = vsel %vm907_vm2, %v3752_v28, 0.0 }
 0xca1   : > { %2662 = vadd.xlane.f32.xlu0 %v2661_v29  ;;  %v3322_v29 = vld [vmem:[%s4736_s12 + $0x40] sm:$0xff] }
 0xcae   : > { %2666 = vrot.lane.b32.xlu1 %v4531_v47, %s4823_s23  ;;  %s4826_s23 = smov 24  }
 0xcb7   : > { %2496 = vrot.lane.b32.xlu0 %v4531_v47, %s4821_s28  ;;  %v3310_v47 = vld [vmem:[%s4732_s8 + $0x30] sm:$0xff]  ;;  %s4824_s28 = smov 8  }
 0xcb8   : > { %3601 = vmatpush3.msra.mxu0 %v3310_v47 }
 0xcb9   : > { %3602 = vmatprep.subr.mxu0 %v3959_v0 }
 0xcba   : > { %3603 = vmatpush3.msra.mxu0 %v3309_v49  ;;  %v3335_v49 = vld [vmem:[%s4819_s25 + $0x1] ss:$0 sm:$0xff] }
 0xcbb   : > { %3604 = vmatprep.subr.mxu0 %v3959_v0 }
 0xcbc   : > { %3605 = vmatpush3.msra.mxu0 %v3308_v3  ;;  %v3336_v3 = vld [vmem:[%s4820_s21 + $0x1] ss:$0 sm:$0xff] }
 0xcbd   : > { %3620 = vmatprep.subr.mxu0 %v3959_v0 }
 0xd1e   : > { %v2159_v31 = vpop.xlane.xlu1 %2158 }
 0xd1f   : > { %3753 = vrcp.f32 %v2159_v31 }
 0xd22   : > { %v2322_v32 = vpop.xlane.xlu0 %2321 }
 0xd23   : > { %3755 = vrcp.f32 %v2322_v32 }
 0xd26   : > { %v2493_v33 = vpop.xlane.xlu1 %2492 }
 0xd27   : > { %3757 = vrcp.f32 %v2493_v33 }
 0xd2a   : > { %v2663_v34 = vpop.xlane.xlu0 %2662  ;;  %v2667_v42 = vpop.permute.xlu1 %2666 }
 0xd2b   : > { %3759 = vrcp.f32 %v2663_v34 }
 0xd2c   : > { %v3754_v35 = vpop.eup %3753 }
 0xd2d   : > { %v2161_v37 = vmul.f32 %v3754_v35, %v3746_v21  ;;  %v3317_v21 = vld [vmem:[%s4738_s14 + $0x1] ss:$0 sm:$0xff] }
 0xd2e   : > { %v2497_v4 = vpop.permute.xlu0 %2496  ;;  %v3331_v35 = vld [vmem:[%s4818_s3 + $0x1] ss:$0 sm:$0xff] }
 0xd2f   : > { %3566 = vmatmul.mubr.msk.f32.vlgmr.msra.gmra.mxu1 %vm907_vm2, %v2161_v37 }
 0xd30   : > { %v3756_v38 = vpop.eup %3755  ;;  %3574 = vmatpush3.msra.mxu1 %v2327_v30  ;;  %3575 = vmatprep.mubr.msk.f32.mxu1 %vm3960_vm0, %v3959_v0  ;;  %v3320_v30 = vld [vmem:[%s4817_s30 + $0x1] ss:$0 sm:$0xff] }
 0xd31   : > { %3583 = vmatprep.subr.mxu1 %v3959_v0  ;;  %v2324_v39 = vmul.f32 %v3756_v38, %v3748_v23  ;;  %v3318_v23 = vld [vmem:[%s4739_s15 + $0x1] ss:$0 sm:$0xff] }
 0xd33   : > { %3576 = vmatmul.mubr.msk.f32.vlgmr.msra.gmra.mxu1 %vm907_vm2, %v2324_v39 }
 0xd34   : > { %v3758_v40 = vpop.eup %3757  ;;  %3584 = vmatpush3.msra.mxu1 %v2497_v4  ;;  %3585 = vmatprep.mubr.msk.f32.mxu1 %vm3960_vm0, %v3959_v0 }
 0xd35   : > { %3593 = vmatprep.subr.mxu1 %v3959_v0  ;;  %v2495_v41 = vmul.f32 %v3758_v40, %v3750_v26 }
 0xd37   : > { %3586 = vmatmul.mubr.msk.f32.vlgmr.msra.gmra.mxu1 %vm907_vm2, %v2495_v41 }
 0xd38   : > { %v3760_v43 = vpop.eup %3759  ;;  %3594 = vmatpush3.msra.mxu1 %v2667_v42  ;;  %3595 = vmatprep.mubr.msk.f32.mxu1 %vm3960_vm0, %v3959_v0 }
 0xd39   : > { %v2665_v44 = vmul.f32 %v3760_v43, %v3752_v28  ;;  %3609 = vmatprep.subr.mxu1 %v3959_v0  ;;  %v3323_v28 = vld [vmem:[%s4736_s12 + $0x48] sm:$0xff] }
 0xd3b   : > { %3596 = vmatmul.mubr.msk.f32.vlgmr.msra.gmra.mxu1 %vm907_vm2, %v2665_v44 }
 0xd3c   : > { %3617 = vmatprep.mubr.msk.f32.mxu1 %vm3960_vm0, %v3959_v0  ;;  %3610 = vmatpush3.msra.mxu1 %v2870_v10 }
 0xd3d   : > { %3611 = vmatprep.subr.mxu1 %v3959_v0 }
 0xd3e   : > { %3612 = vmatpush3.msra.mxu1 %v2869_v11 }
 0xd3f   : > { %3613 = vmatprep.subr.mxu1 %v3959_v0 }
 0xd40   : > { %3614 = vmatpush3.msra.mxu1 %v2868_v12 }
 0xd41   : > { %3615 = vmatprep.subr.mxu1 %v3959_v0 }
 0xdef   : > { %v2231_v45 = vpop.f32.mrf.mxu1 }
 0xdf0   : > { %2235 = vst.msk [vmem:[#allocation2] sm:$0xff] %vm907_vm2, %v2231_v45 }
 0xdf1   : > { %v3567_v48 = vpop.f32.mrf.mxu1 }
 0xdf3   : > { %v2398_v50 = vpop.f32.mrf.mxu1 }
 0xdf4   : > { %2403 = vrot.lane.b32.xlu1 %v2398_v50, %s4824_s28  ;;  %s4827_s28 = sld [smem:[#allocation21_spill]] }
 0xdf5   : > { %v3577_v51 = vpop.f32.mrf.mxu1 }
 0xdf7   : > { %v2568_v52 = vpop.f32.mrf.mxu1 }
 0xdf8   : > { %2573 = vrot.lane.b32.xlu0 %v2568_v52, %s4825_s20  ;;  %s3875_s20 = scalar_lea.vmem %s3120_s27, 128 }
 0xdf9   : > { %v3587_v53 = vpop.f32.mrf.mxu1  ;;  %p3876_p9 = scmp.ne.s32.totalorder %s3120_s27, %s3875_s20 }
 0xdfa   : > { %p4831_p12 = scmp.ne.s32.totalorder %s4827_s28, 0 }
 0xdfb   : > { %v2738_v54 = vpop.f32.mrf.mxu1 }
 0xdfc   : > { %2743 = vrot.lane.b32.xlu1 %v2738_v54, %s4826_s23  ;;  %p3877_p3 = pnand %p3876_p9, %p4831_p12  ;;  %s3971_s23 = smov [#allocation11]  }
 0xdfd   : > { %v3597_v55 = vpop.f32.mrf.mxu1 }
 0xdfe   : > { %p3878_p7 = pneg %p3877_p3 }
 0xe66   : > { %v2404_v56 = vpop.permute.xlu1 %2403 }
 0xe67   : > { %2406 = vst.msk [vmem:[#allocation2] sm:$0xff] %vm1237_vm3, %v2404_v56 }
 0xe6a   : > { %v2574_v57 = vpop.permute.xlu0 %2573 }
 0xe6b   : > { %2576 = vst.msk [vmem:[#allocation2] sm:$0xff] %vm1408_vm4, %v2574_v57 }
 0xe6e   : > { %v2744_v58 = vpop.permute.xlu1 %2743 }
 0xe6f   : > { %2746 = vst.msk [vmem:[#allocation2] sm:$0xff] %vm1579_vm5, %v2744_v58 }
 0xe76   : > { %v2747_v59 = vld [vmem:[#allocation2] sm:$0xff] }
 0xe77   : > { %3607 = vmatmul.mubr.msk.f32.vlgmr.msra.gmra.mxu0 %vm746_vm1, %v2747_v59 }
 0xe78   : > { %3636 = vmatprep.mubr.msk.f32.mxu0 %vm3960_vm0, %v3959_v0  ;;  %3621 = vmatpush3.msra.mxu0 %v3329_v13 }
 0xe79   : > { %3622 = vmatprep.subr.mxu0 %v3959_v0 }
 0xe7a   : > { %3623 = vmatpush3.msra.mxu0 %v3328_v14 }
 0xe7b   : > { %3624 = vmatprep.subr.mxu0 %v3959_v0 }
 0xe7c   : > { %3625 = vmatpush3.msra.mxu0 %v3327_v15 }
 0xe7d   : > { %3626 = vmatprep.subr.mxu0 %v3959_v0 }
 0xe7e   : > { %3627 = vmatpush3.msra.mxu0 %v3326_v16 }
 0xe7f   : > { %3628 = vmatprep.subr.mxu0 %v3959_v0 }
 0xe80   : > { %3629 = vmatpush3.msra.mxu0 %v3325_v17 }
 0xe81   : > { %3630 = vmatprep.subr.mxu0 %v3959_v0 }
 0xe82   : > { %3631 = vmatpush3.msra.mxu0 %v3324_v27 }
 0xe83   : > { %3632 = vmatprep.subr.mxu0 %v3959_v0 }
 0xe84   : > { %3633 = vmatpush3.msra.mxu0 %v3323_v28 }
 0xe85   : > { %3634 = vmatprep.subr.mxu0 %v3959_v0 }
 0xe86   : > { %3635 = vmatpush3.msra.mxu0 %v3322_v29 }
 0xf37   : > { %v2830_v61 = vpop.f32.mrf.mxu0 }
 0xf38   : > { %v2831_v62 = vadd.f32 %v3313_v60, %v2830_v61 }
 0xf39   : > { %v3608_v63 = vpop.f32.mrf.mxu0 }
 0xf3a   : > { %v2834_v1 = vadd.f32 %v2831_v62, %v4494_v36  ;;  %v2867_v36 = vld [vmem:[#allocation9 + $0x20] sm:$0xff]  ;;  %v3337_v63 = vld [vmem:[%s4828_s1] ss:$0 sm:$0xff]  ;;  %s3879_s1 = sshll.u32 %s3971_s23, 4  ;;  %s3880_s1 = int_to_ptr.vmem [resolvable:$false] %s3879_s1 }
 0xf3b   : > { %3616 = vmatpush3.msra.mxu1 %v2867_v36  ;;  %s3881_s2 = scalar_lea.vmem %s3880_s1, 256  ;;  %p3882_p13 = scmp.lt.s32.totalorder %s3120_s27, %s3880_s1 }
 0xf3c   : > { %v2839_v2 = vsel %vm746_vm1, %v2834_v1, 0.0  ;;  %p3883_p10 = scmp.lt.s32.totalorder %s3881_s2, %s3875_s20 }
 0xf3d   : > { %2840 = vadd.xlane.f32.xlu0 %v2839_v2  ;;  %v3338_v2 = vld [vmem:[%s4829_s4] ss:$0 sm:$0xff] }
 0xf3e   : > { %p3884_p0 = por %p3883_p10, %p3882_p13 }
 0xf40   : > { %p3885_p1 = pnand %p3884_p0, %p3878_p7 }
 0xfc6   : > { %v2841_v5 = vpop.xlane.xlu0 %2840 }
 0xfc7   : > { %v2842_v6 = vmul.f32 0.03125, %v2841_v5 }
 0xfc9   : > { %v2843_v7 = vsub.f32 %v2834_v1, %v2842_v6 }
 0xfcb   : > { %v2844_v8 = vmul.f32 %v2843_v7, %v2843_v7 }
 0xfcd   : > { %v2845_v9 = vsel %vm746_vm1, %v2844_v8, 0.0 }
 0xfce   : > { %2846 = vadd.xlane.f32.xlu1 %v2845_v9 }
0x1057   : > { %v2847_v18 = vpop.xlane.xlu1 %2846 }
0x1058   : > { %v2848_v19 = vmul.f32 0.03125, %v2847_v18 }
0x105a   : > { %v2849_v25 = vadd.f32 1e-05, %v2848_v19 }
0x105c   : > { %3761 = vrsqrt.f32 %v2849_v25 }
0x1069   : > { %v3762_v20 = vpop.eup %3761 }
0x106a   : > { %v2851_v22 = vmul.f32 %v3762_v20, %v2843_v7 }
0x106c   : > { %v2858_v24 = vmul.f32 %v3317_v21, %v2851_v22 }
0x106e   : > { %v2865_v26 = vadd.f32 %v3318_v23, %v2858_v24 }
0x1070   : > { %3618 = vmatmul.mubr.msk.f32.vlgmr.msra.gmra.mxu1 %vm746_vm1, %v2865_v26 }
0x1130   : > { %v2948_v31 = vpop.f32.mrf.mxu1 }
0x1131   : > { %v2949_v32 = vadd.f32 %v3320_v30, %v2948_v31 }
0x1132   : > { %v3619_v33 = vpop.f32.mrf.mxu1 }
0x1133   : > { %v2952_v34 = vmax.f32 %v2949_v32, 0.0 }
0x1135   : > { %3637 = vmatmul.mubr.msk.f32.vlgmr.msra.gmra.mxu0 %vm1797_vm6, %v2952_v34 }
0x11f5   : > { %v3039_v37 = vpop.f32.mrf.mxu0 }
0x11f6   : > { %v3040_v38 = vadd.f32 %v3331_v35, %v3039_v37 }
0x11f7   : > { %v3638_v39 = vpop.f32.mrf.mxu0 }
0x11f8   : > { %v3043_v4 = vadd.f32 %v3040_v38, %v2865_v26 }
0x11fa   : > { %v3048_v0 = vsel %vm746_vm1, %v3043_v4, 0.0 }
0x11fb   : > { %3049 = vadd.xlane.f32.xlu0 %v3048_v0 }
0x1284   : > { %v3050_v40 = vpop.xlane.xlu0 %3049 }
0x1285   : > { %v3051_v41 = vmul.f32 0.03125, %v3050_v40 }
0x1287   : > { %v3052_v42 = vsub.f32 %v3043_v4, %v3051_v41 }
0x1289   : > { %v3053_v43 = vmul.f32 %v3052_v42, %v3052_v42 }
0x128b   : > { %v3054_v44 = vsel %vm746_vm1, %v3053_v43, 0.0 }
0x128c   : > { %3055 = vadd.xlane.f32.xlu0 %v3054_v44 }
0x1315   : > { %v3056_v45 = vpop.xlane.xlu0 %3055 }
0x1316   : > { %v3057_v46 = vmul.f32 0.03125, %v3056_v45 }
0x1318   : > { %v3058_v47 = vadd.f32 1e-05, %v3057_v46 }
0x131a   : > { %3763 = vrsqrt.f32 %v3058_v47 }
0x1327   : > { %v3764_v48 = vpop.eup %3763 }
0x1328   : > { %v3060_v50 = vmul.f32 %v3764_v48, %v3052_v42 }
0x132a   : > { %v3067_v51 = vmul.f32 %v3335_v49, %v3060_v50 }
0x132c   : > { %v3074_v52 = vadd.f32 %v3336_v3, %v3067_v51 }
0x132e   : > { %v3077_v53 = vsel %vm746_vm1, %v3074_v52, 0.0 }
0x132f   : > { %3078 = vadd.xlane.f32.xlu1 %v3077_v53 }
0x13b8   : > { %v3079_v54 = vpop.xlane.xlu1 %3078 }
0x13b9   : > { %v3080_v55 = vmul.f32 0.03125, %v3079_v54 }
0x13bb   : > { %v3081_v56 = vsub.f32 %v3074_v52, %v3080_v55 }
0x13bd   : > { %v3082_v57 = vmul.f32 %v3081_v56, %v3081_v56 }
0x13bf   : > { %v3083_v58 = vsel %vm746_vm1, %v3082_v57, 0.0 }
0x13c0   : > { %3084 = vadd.xlane.f32.xlu0 %v3083_v58 }
0x1449   : > { %v3085_v59 = vpop.xlane.xlu0 %3084 }
0x144a   : > { %v3086_v60 = vmul.f32 0.03125, %v3085_v59 }
0x144c   : > { %v3087_v61 = vadd.f32 1e-05, %v3086_v60 }
0x144e   : > { %3765 = vrsqrt.f32 %v3087_v61 }
0x145b   : > { %v3766_v62 = vpop.eup %3765 }
0x145c   : > { %v3089_v1 = vmul.f32 %v3766_v62, %v3081_v56 }
0x145e   : > { %v3096_v5 = vmul.f32 %v3337_v63, %v3089_v1 }
0x1460   : > { %v3103_v6 = vadd.f32 %v3338_v2, %v3096_v5 }
0x1462   : > { %3104 = vst.msk [vmem:[%s719_s29] sm:$0xff] %vm746_vm1, %v3103_v6 }
0x1463   : > { %3888 = shalt.err (!%p3885_p1)
}
0x1464   : > { %s3889_s11 = scalar_lea.hbm %s3117_s6, 128  ;;  %s3893_s13 = scalar_lea.hbm %s4830_s5, 256 }
0x1465   : > { %p3890_p5 = scmp.ne.s32.totalorder %s3117_s6, %s3889_s11  ;;  %p3894_p2 = scmp.lt.s32.totalorder %s3117_s6, %s4830_s5 }
0x1466   : > { %p3895_p4 = scmp.lt.s32.totalorder %s3893_s13, %s3889_s11 }
0x1467   : > { %p3891_p8 = pnand %p3890_p5, %p4831_p12 }
0x1468   : > { %p3896_p6 = por %p3895_p4, %p3894_p2 }
0x1469   : > { %p3892_p11 = pneg %p3891_p8 }
0x146b   : > { %p3897_p9 = pnand %p3896_p6, %p3892_p11 }
0x146d   : > { %3900 = shalt.err (!%p3897_p9)
}
0x146e   : > { %3651 = dma.vmem_to_hbm [thread:$0]  (%p4831_p12), %s3120_s27, 128, %s3117_s6, %s3106_s7  }
0x146f PF: > { %s4832_s19 = sld [smem:[#allocation17_spill]]  ;;  %p4835_p7 = scmp.ge.s32.totalorder %s3951_s24, 2 }
0x1470   : > { %s4833_s29 = sld [smem:[#allocation19_spill]] }
0x1475   : > { %s3131_s16 = sand.u32 1, %s4832_s19  }
0x1476   : > { %p4834_p3 = scmp.ne.s32.totalorder %s4833_s29, 0  ;;  %s3132_s20 = scalar_lea.sflag [#allocation5], %s3131_s16 }
0x1478   : > { %p3668_p13 = pnand %p4835_p7, %p4834_p3 }
0x147a   : > { %p3669_p10 = pneg %p3668_p13 }
0x147c   : > { %3934 = dma.done.wait (%p3669_p10), %s3132_s20, 128  }
0x147d   : > { %3936 = vsyncadd (%p3669_p10), %s3132_s20, 4294967168  ;;  %s4836_s24 = sld [smem:[#allocation20_spill]]  ;;  %s4839_s1 = smov %s3943_s22 }
0x147e   : > { %s4837_s23 = sld [smem:[#allocation18_spill]] }
0x147f   : > { %s4838_s2 = sld [smem:[#allocation22_spill]] }
0x1483   : > { %p37_p0 = scmp.ge.s32.totalorder %s4836_s24, 4  }
0x1484   : > { %s4840_s22 = smov %s4837_s23 }
0x1485   : > { %s4841_s23 = smov %s4838_s2  ;;  %39 = sbr.rel (!%p37_p0) target bundleno = 25 (0x19), region = 183 }
0x148a   :  { %3137 = vsyncpa [#allocation4], 1 }
0x148b   :  { %3139 = vsyncpa [#allocation4 + $0x1], 1 }
0x148c   :  { %3140 = vsyncpa [#allocation7], 1 }
0x148d   :  { %3142 = vsyncpa [#allocation7 + $0x1], 1 }
0x148e   :  { %3143 = vsyncpa [#allocation10], 1 }
0x148f   :  { %3144 = vsyncpa [#allocation5], 1 }
0x1490   :  { %3146 = vsyncpa [#allocation5 + $0x1], 1 }

// kernel: tpu_custom_call.1
= control target key start
LH: loop header
LB: loop body
LE: loop exit
PB: predicated region body
PF: predicated region fallthrough
CT: control target
= control target key end

     0   :  { %s4724_s0 = inlined_call_operand.hbm [shape: f32[2,8,32], index: 0, kind: input, shape index: {}]   ;;  %s4725_s1 = inlined_call_operand.hbm [shape: f32[2,8,32], index: 1, kind: input, shape index: {}]   ;;  %s4726_s2 = inlined_call_operand.hbm [shape: f32[8,8], index: 2, kind: input, shape index: {}]   ;;  %s4727_s3 = inlined_call_operand.vmem [shape: f32[2,1,8], index: 3, kind: input, shape index: {}]   ;;  %s4728_s4 = inlined_call_operand.vmem [shape: f32[2,32,64], index: 4, kind: input, shape index: {}]   ;;  %s4729_s5 = inlined_call_operand.vmem [shape: f32[2,1,64], index: 5, kind: input, shape index: {}]   ;;  %s4730_s6 = inlined_call_operand.vmem [shape: f32[2,32,32], index: 6, kind: input, shape index: {}]   ;;  %s4731_s7 = inlined_call_operand.vmem [shape: f32[2,1,32], index: 7, kind: input, shape index: {}]   ;;  %s4732_s8 = inlined_call_operand.vmem [shape: f32[2,32,32], index: 8, kind: input, shape index: {}]   ;;  %s4733_s9 = inlined_call_operand.vmem [shape: f32[2,1,32], index: 9, kind: input, shape index: {}]   ;;  %s4734_s10 = inlined_call_operand.hbm [shape: f32[2,32,64], index: 10, kind: input, shape index: {}]   ;;  %s4735_s11 = inlined_call_operand.vmem [shape: f32[2,1,64], index: 11, kind: input, shape index: {}]   ;;  %s4736_s12 = inlined_call_operand.vmem [shape: f32[2,64,32], index: 12, kind: input, shape index: {}]   ;;  %s4737_s13 = inlined_call_operand.vmem [shape: f32[2,1,32], index: 13, kind: input, shape index: {}]   ;;  %s4738_s14 = inlined_call_operand.vmem [shape: f32[2,1,32], index: 14, kind: input, shape index: {}]   ;;  %s4739_s15 = inlined_call_operand.vmem [shape: f32[2,1,32], index: 15, kind: input, shape index: {}]   ;;  %s4740_s16 = inlined_call_operand.vmem [shape: f32[2,1,32], index: 16, kind: input, shape index: {}]   ;;  %s4741_s17 = inlined_call_operand.vmem [shape: f32[2,1,32], index: 17, kind: input, shape index: {}]   ;;  %s4742_s18 = inlined_call_operand.vmem [shape: f32[1,32], index: 18, kind: input, shape index: {}]   ;;  %s4743_s19 = inlined_call_operand.vmem [shape: f32[1,32], index: 19, kind: input, shape index: {}]   ;;  %s4744_s20 = inlined_call_operand.hbm [shape: f32[2,8,32], index: 20, kind: output, shape index: {}]  }
   0x1   :  { %4773 = sst [smem:[#allocation23_spill]] %s4724_s0 }
   0x2   :  { %4774 = sst [smem:[#allocation24_spill]] %s4725_s1 }
   0x3   :  { %4775 = sst [smem:[#allocation25_spill]] %s4726_s2 }
   0x4   :  { %4776 = sst [smem:[#allocation26_spill]] %s4727_s3 }
   0x5   :  { %4777 = sst [smem:[#allocation27_spill]] %s4728_s4 }
   0x6   :  { %4778 = sst [smem:[#allocation28_spill]] %s4729_s5 }
   0x7   :  { %4779 = sst [smem:[#allocation29_spill]] %s4730_s6 }
   0x8   :  { %4780 = sst [smem:[#allocation30_spill]] %s4731_s7 }
   0x9   :  { %4781 = sst [smem:[#allocation31_spill]] %s4734_s10 }
   0xa   :  { %4782 = sst [smem:[#allocation32_spill]] %s4735_s11 }
   0xb   :  { %4783 = sst [smem:[#allocation33_spill]] %s4737_s13 }
   0xc   :  { %4784 = sst [smem:[#allocation34_spill]] %s4740_s16 }
   0xd   :  { %4785 = sst [smem:[#allocation35_spill]] %s4741_s17 }
   0xe   :  { %4786 = sst [smem:[#allocation36_spill]] %s4742_s18 }
   0xf   :  { %4787 = sst [smem:[#allocation37_spill]] %s4743_s19 }
  0x10   :  { %4788 = sst [smem:[#allocation38_spill]] %s4744_s20 }
  0x11   :  { %25 = vsyncpa [#allocation4], 0 }
  0x12   :  { %27 = vsyncpa [#allocation4 + $0x1], 0 }
  0x13   :  { %28 = vsyncpa [#allocation7], 0 }
  0x14   :  { %30 = vsyncpa [#allocation7 + $0x1], 0 }
  0x15   :  { %31 = vsyncpa [#allocation10], 0 }
  0x16   :  { %32 = vsyncpa [#allocation5], 0 }
  0x17   :  { %34 = vsyncpa [#allocation5 + $0x1], 0  ;;  %s4077_s1 = smov 0   ;;  %s4079_s22 = smov 0  }
  0x18   :  { %s4081_s23 = smov 0   ;;  %s4083_s24 = smov 0  }
  0x19 LB: > { %4789 = sst [smem:[#allocation17_spill]] %s3939_s1  ;;  %s4098_s2 = sadd.s32 4294967295, %s3951_s24   ;;  %s3951_s24 = sphi %s4083_s24, %s4836_s24   ;;  %s3947_s23 = sphi %s4081_s23, %s4841_s23   ;;  %s3943_s22 = sphi %s4079_s22, %s4840_s22   ;;  %s3939_s1 = sphi %s4077_s1, %s4839_s1  }
  0x1a   : > { %4790 = sst [smem:[#allocation18_spill]] %s3947_s23  ;;  %s3240_s25 = sadd.s32 4294967294, %s3951_s24  }
  0x1b   : > { %p60_p0 = scmp.ne.s32.totalorder %s3943_s22, %s3939_s1  ;;  %p4749_p1 = scmp.eq.s32.totalorder %s4098_s2, 0 }
  0x1c   : > { %p499_p3 = scmp.eq.s32.totalorder %s3240_s25, 1  ;;  %p3241_p5 = scmp.ge.s32.totalorder %s3951_s24, 1 }
  0x1d   : > { %p4107_p4 = por %p4749_p1, %p60_p0  ;;  %p506_p7 = scmp.lt.s32.totalorder %s3951_s24, 3 }
  0x1e   : > { %p4112_p6 = por %p499_p3, %p60_p0  ;;  %s3953_s28 = smov [#allocation8]  }
  0x1f   : > { %s4791_s3 = scalar_select %p4107_p4, 1, 0 }
  0x20   : > { %s4792_s26 = scalar_select %p4112_p6, 1, 0 }
  0x21   : > { %p4117_p8 = pnand %p3241_p5, %p506_p7  ;;  %s519_s4 = sshll.u32 %s3953_s28, 4  ;;  %s520_s4 = int_to_ptr.vmem [resolvable:$true] %s519_s4 }
  0x22   : > { %4793 = sst [smem:[#allocation19_spill]] %s4792_s26  ;;  %s3954_s29 = smov [#allocation9]  }
  0x23   : > { %s4794_s27 = scalar_select %p4117_p8, 1, 0 }
  0x24   : > { %p3653_p10 = pneg %p4117_p8  ;;  %s547_s30 = sshll.u32 %s3954_s29, 4  ;;  %s548_s30 = int_to_ptr.vmem [resolvable:$true] %s547_s30 }
  0x25   : > { %s3778_s21 = scalar_lea.vmem %s520_s4, 128  ;;  %p3786_p5 = scmp.lt.s32.totalorder %s520_s4, %s520_s4 }
  0x26   : > { %p4126_p11 = pnand %p3653_p10, %p4749_p1  ;;  %p3779_p13 = scmp.ne.s32.totalorder %s520_s4, %s3778_s21 }
  0x27   : > { %p3787_p7 = scmp.lt.s32.totalorder %s3778_s21, %s3778_s21 }
  0x28   : > { %p3769_p12 = pneg %p4126_p11 }
  0x29   : > { %p3788_p9 = por %p3787_p7, %p3786_p5 }
  0x2a   : > { %p3781_p0 = pnand %p3779_p13, %p3769_p12 }
  0x2c   : > { %p3782_p3 = pneg %p3781_p0 }
  0x2e   : > { %p3789_p2 = pnand %p3788_p9, %p3782_p3 }
  0x30   : > { %3792 = shalt.err (!%p3789_p2)
}
  0x31   : > { %s4796_s29 = sld [smem:[#allocation25_spill]]  ;;  %s3804_s26 = scalar_lea.vmem %s548_s30, 1024 }
  0x32   : > { %p3805_p10 = scmp.ne.s32.totalorder %s548_s30, %s3804_s26  ;;  %p3812_p13 = scmp.lt.s32.totalorder %s548_s30, %s548_s30 }
  0x33   : > { %p3813_p0 = scmp.lt.s32.totalorder %s3804_s26, %s3804_s26 }
  0x34   : > { %p3807_p1 = pnand %p3805_p10, %p3769_p12 }
  0x35   : > { %p3814_p4 = por %p3813_p0, %p3812_p13 }
  0x36   : > { %p3808_p6 = pneg %p3807_p1 }
  0x37   : > { %3656 = dma.hbm_to_vmem [thread:$0]  (!%p4126_p11), %s4796_s29, 128, %s520_s4, [#allocation7]  }
  0x38   : > { %p3815_p8 = pnand %p3814_p4, %p3808_p6 }
  0x3a   : > { %3818 = shalt.err (!%p3815_p8)
}
  0x3b   : > { %s3955_s21 = smov 128   ;;  %s3956_s4 = smov 8  }
  0x3c   : > { %s4797_s10 = sld [smem:[#allocation31_spill]]  ;;  %s4149_s28 = sadd.s32 1, %s3951_s24  }
  0x3d   : > { %4798 = sst [smem:[#allocation20_spill]] %s4149_s28  ;;  %s47_s29 = sadd.s32 1, %s3947_s23 }
  0x3e   : > { %s44_s1 = ssub.s32 %s3951_s24, %s4149_s28  ;;  %p54_p1 = scmp.ne.s32.totalorder %s3947_s23, %s3943_s22 }
  0x3f   : > { %p45_p2 = scmp.eq.s32.totalorder %s44_s1, 0  ;;  %p55_p4 = scmp.eq.s32.totalorder %s3951_s24, 0 }
  0x40   : > { %p4799_p6 = scmp.eq.s32.totalorder %s4098_s2, 1  ;;  %p3673_p9 = scmp.lt.s32.totalorder %s3951_s24, 2 }
  0x41   : > { %s4165_s0 = scalar_select %p45_p2, %s3947_s23, %s47_s29  }
  0x42   : > { %3659 = dma.hbm_to_vmem [thread:$0]  (!%p4126_p11), %s4797_s10, 1024, %s548_s30, [#allocation10], %s3955_s21, %s3955_s21, %s3956_s4  }
  0x43   : > { %p4159_p8 = por %p4799_p6, %p54_p1  ;;  %4802 = sst [smem:[#allocation22_spill]] %s4165_s0 }
  0x44   : > { %p56_p12 = por %p55_p4, %p54_p1  ;;  %s588_s25 = sand.u32 1, %s3947_s23  }
  0x45   : > { %s4800_s20 = scalar_select %p4159_p8, 1, 0 }
  0x46   : > { %s4168_s30 = sshll.u32 %s588_s25, 3  ;;  %s3246_s21 = sshll.u32 %s3951_s24, 7 }
  0x47   : > { %4801 = sst [smem:[#allocation21_spill]] %s4800_s20  ;;  %s592_s1 = scalar_lea.vmem [#allocation3], %s4168_s30 }
  0x48   : > { %s4803_s10 = sld [smem:[#allocation23_spill]]  ;;  %s599_s19 = sshll.u32 %s592_s1, 4  ;;  %s4177_s19 = int_to_ptr.vmem [resolvable:$true] %s599_s19 }
  0x49   : > { %p4179_p11 = pnand %p3673_p9, %p56_p12  ;;  %s4805_s18 = sld [smem:[#allocation24_spill]] }
  0x4a   : > { %s606_s4 = sand.u32 1, %s3951_s24   ;;  %s589_s26 = scalar_lea.sflag [#allocation4], %s588_s25 }
  0x4b   : > { %p3821_p5 = pneg %p4179_p11 }
  0x4e   : > { %s4174_s28 = scalar_lea.hbm %s4803_s10, %s3246_s21  ;;  %s3824_s13 = scalar_lea.hbm %s4803_s10, 256 }
  0x4f   : > { %s4186_s20 = scalar_lea.hbm %s4805_s18, %s3246_s21  ;;  %s3819_s17 = scalar_lea.hbm %s4174_s28, 128 }
  0x50   : > { %p3820_p3 = scmp.ne.s32.totalorder %s4174_s28, %s3819_s17  ;;  %p3825_p13 = scmp.lt.s32.totalorder %s4174_s28, %s4803_s10 }
  0x51   : > { %p3826_p0 = scmp.lt.s32.totalorder %s3824_s13, %s3819_s17 }
  0x52   : > { %p3822_p7 = pnand %p3821_p5, %p3820_p3 }
  0x53   : > { %p3827_p1 = por %p3826_p0, %p3825_p13 }
  0x54   : > { %p3823_p10 = pneg %p3822_p7 }
  0x56   : > { %p3828_p2 = pnand %p3827_p1, %p3823_p10 }
  0x58   : > { %3831 = shalt.err (!%p3828_p2)
}
  0x59   : > { %s3832_s0 = scalar_lea.vmem %s4177_s19, 128  ;;  %s3957_s16 = smov [#allocation3]  }
  0x5a   : > { %p3833_p4 = scmp.ne.s32.totalorder %s4177_s19, %s3832_s0  ;;  %s3837_s25 = sshll.u32 %s3957_s16, 4  ;;  %s3838_s25 = int_to_ptr.vmem [resolvable:$false] %s3837_s25 }
  0x5b   : > { %s3839_s21 = scalar_lea.vmem %s3838_s25, 256  ;;  %p3840_p12 = scmp.lt.s32.totalorder %s4177_s19, %s3838_s25 }
  0x5c   : > { %p3835_p6 = pnand %p3833_p4, %p3821_p5  ;;  %p3841_p3 = scmp.lt.s32.totalorder %s3839_s21, %s3832_s0 }
  0x5e   : > { %p3836_p9 = pneg %p3835_p6  ;;  %p3842_p7 = por %p3841_p3, %p3840_p12 }
  0x60   : > { %p3843_p13 = pnand %p3842_p7, %p3836_p9 }
  0x62   : > { %3846 = shalt.err (!%p3843_p13)
}
  0x63   : > { %3663 = dma.hbm_to_vmem [thread:$0]  (!%p4179_p11), %s4174_s28, 128, %s4177_s19, %s589_s26  }
  0x64   : > { %s610_s11 = scalar_lea.vmem [#allocation6], %s4168_s30  ;;  %s607_s17 = scalar_lea.sflag [#allocation7], %s606_s4 }
  0x65   : > { %s617_s13 = sshll.u32 %s610_s11, 4  ;;  %s3847_s1 = scalar_lea.hbm %s4186_s20, 128  ;;  %s618_s13 = int_to_ptr.vmem [resolvable:$true] %s617_s13 }
  0x66   : > { %p3848_p10 = scmp.ne.s32.totalorder %s4186_s20, %s3847_s1  ;;  %s3852_s16 = scalar_lea.hbm %s4805_s18, 256 }
  0x67   : > { %p3853_p2 = scmp.lt.s32.totalorder %s4186_s20, %s4805_s18  ;;  %p3854_p4 = scmp.lt.s32.totalorder %s3852_s16, %s3847_s1 }
  0x68   : > { %p3850_p0 = pnand %p3848_p10, %p3821_p5 }
  0x69   : > { %p3855_p6 = por %p3854_p4, %p3853_p2 }
  0x6a   : > { %p3851_p1 = pneg %p3850_p0 }
  0x6c   : > { %p3856_p9 = pnand %p3855_p6, %p3851_p1 }
  0x6e   : > { %3859 = shalt.err (!%p3856_p9)
}
  0x6f   : > { %s3860_s19 = scalar_lea.vmem %s618_s13, 128  ;;  %s3958_s28 = smov [#allocation6]  }
  0x70   : > { %p3861_p12 = scmp.ne.s32.totalorder %s618_s13, %s3860_s19  ;;  %s3865_s30 = sshll.u32 %s3958_s28, 4  ;;  %s3866_s30 = int_to_ptr.vmem [resolvable:$false] %s3865_s30 }
  0x71   : > { %s3867_s4 = scalar_lea.vmem %s3866_s30, 256  ;;  %p3868_p13 = scmp.lt.s32.totalorder %s618_s13, %s3866_s30 }
  0x72   : > { %p3863_p3 = pnand %p3861_p12, %p3821_p5  ;;  %p3869_p10 = scmp.lt.s32.totalorder %s3867_s4, %s3860_s19 }
  0x74   : > { %p3864_p7 = pneg %p3863_p3  ;;  %p3870_p0 = por %p3869_p10, %p3868_p13 }
  0x76   : > { %p3871_p8 = pnand %p3870_p0, %p3864_p7 }
  0x78   : > { %3874 = shalt.err (!%p3871_p8)
}
  0x79   : > { %3666 = dma.hbm_to_vmem [thread:$0]  (!%p4179_p11), %s4186_s20, 128, %s618_s13, %s607_s17  }
  0x7a   : > { %p4806_p1 = scmp.ne.s32.totalorder %s4794_s27, 0 }
  0x7b   : > { %s4237_s26 = sand.u32 (!%p4806_p1), 1, %s3943_s22   ;;  %p4807_p5 = scmp.ne.s32.totalorder (!%p4806_p1), %s4791_s3, 0 }
  0x7c   : > { %632 = sbr.rel (%p4806_p1) target bundleno = 5231 (0x146f), region = 100  ;;  %s4240_s11 = sshll.u32 (!%p4806_p1), %s4237_s26, 3 }
  0x7d   : > { %s635_s1 = scalar_lea.sflag (!%p4806_p1), [#allocation4], %s4237_s26  ;;  %s638_s23 = scalar_lea.vmem (!%p4806_p1), [#allocation3], %s4240_s11 }
  0x81   : > { %3918 = dma.done.wait (%p4807_p5), %s635_s1, 128  }
  0x82   : > { %3920 = vsyncadd (%p4807_p5), %s635_s1, 4294967168  ;;  %s643_s20 = sand.u32 1, %s4098_s2   ;;  %s647_s29 = scalar_lea.vmem [#allocation6], %s4240_s11 }
  0x83   : > { %s644_s27 = scalar_lea.sflag [#allocation7], %s643_s20 }
  0x84   : > { %3922 = dma.done.wait (%p4807_p5), %s644_s27, 128  }
  0x85   : > { %3924 = vsyncadd (%p4807_p5), %s644_s27, 4294967168  ;;  %p4808_p8 = scmp.eq.s32.totalorder %s4098_s2, 0 }
  0x87   : > { %3926 = dma.done.wait (%p4808_p8), [#allocation7], 128   ;;  %p4809_p11 = pmov %p4808_p8 }
  0x88   : > { %p4810_p2 = pmov %p4808_p8 }
  0x89   : > { %3928 = vsyncadd (%p4809_p11), [#allocation7], 4294967168 }
  0x8a   : > { %3930 = dma.done.wait (%p4810_p2), [#allocation10], 1024   ;;  %p4811_p4 = pmov %p4810_p2 }
  0x8b   : > { %v3959_v0 = vmov 0.0   ;;  %vm3960_vm0 = vmmov 0   ;;  %s4812_s17 = sld [smem:[#allocation27_spill]]  ;;  %v4274_v3 = vld [vmem:[%s638_s23] sm:$0xff]  ;;  %v4276_v4 = vld [vmem:[%s647_s29] sm:$0xff]  ;;  %vm746_vm1 = vcmask 261120  }
  0x8c   : > { %3932 = vsyncadd (%p4811_p4), [#allocation10], 4294966272  ;;  %3433 = vmatprep.subr.mxu1 %v3959_v0  ;;  %3441 = vmatprep.mubr.msk.f32.mxu1 %vm3960_vm0, %v3959_v0  ;;  %v734_v7 = vadd.f32 %v4276_v4, %v4274_v3  ;;  %s4813_s5 = sld [smem:[#allocation28_spill]]  ;;  %s3961_s1 = smov 120   ;;  %vm907_vm2 = vcmask 64512   ;;  %v725_v23 = vld [vmem:[#allocation8] sm:$0xff] }
  0x8d   : > { %3455 = vmatprep.subr.mxu0 %v3959_v0  ;;  %3457 = vmatprep.mubr.msk.f32.mxu0 %vm3960_vm0, %v3959_v0  ;;  %s3962_s23 = smov 96   ;;  %s4814_s6 = sld [smem:[#allocation29_spill]]  ;;  %vm1237_vm3 = vcmask 130112   ;;  %vm1408_vm4 = vcmask 195712   ;;  %vm1579_vm5 = vcmask 261312   ;;  %vm1797_vm6 = vcmask 523264  }
  0x8e   : > { %s3963_s13 = smov 80   ;;  %s3964_s0 = smov 88  }
  0x8f   : > { %s4769_s21 = smov 72   ;;  %s4770_s19 = smov 112  }
  0x90   : > { %s4767_s4 = smov 104   ;;  %p720_p6 = scmp.lt.s32.totalorder %s4098_s2, 1 }
  0x91   : > { %v738_v1 = vld [vmem:[%s4812_s17 + $0x18] sm:$0xff]  ;;  %v737_v2 = vld [vmem:[%s4812_s17 + $0x10] sm:$0xff]  ;;  %v736_v5 = vld [vmem:[%s4812_s17 + $0x8] sm:$0xff]  ;;  %s4815_s3 = sld [smem:[#allocation26_spill]]  ;;  %s4765_s30 = smov 8  }
  0x92   : > { %3434 = vmatpush3.msra.mxu1 %v738_v1  ;;  %v735_v6 = vld [vmem:[%s4812_s17] sm:$0xff]  ;;  %s721_s20 = scalar_select %p720_p6, %s4098_s2, 1 }
  0x93   : > { %3435 = vmatprep.subr.mxu1 %v3959_v0  ;;  %v3256_v8 = vld [vmem:[%s4813_s5] ss:$0 sm:$0xff]  ;;  %v823_v12 = vld [vmem:[%s4814_s6 + $0x18] sm:$0xff]  ;;  %v822_v13 = vld [vmem:[%s4814_s6 + $0x10] sm:$0xff]  ;;  %s4816_s7 = sld [smem:[#allocation30_spill]]  ;;  %s4766_s27 = smov 24  }
  0x94   : > { %3436 = vmatpush3.msra.mxu1 %v737_v2  ;;  %v821_v14 = vld [vmem:[%s4814_s6 + $0x8] sm:$0xff]  ;;  %v820_v15 = vld [vmem:[%s4814_s6] sm:$0xff]  ;;  %s4819_s25 = sld [smem:[#allocation34_spill]]  ;;  %s4821_s28 = smov 112  }
  0x95   : > { %3437 = vmatprep.subr.mxu1 %v3959_v0  ;;  %s719_s29 = scalar_lea.vmem [#allocation11], %s4240_s11 }
  0x96   : > { %3438 = vmatpush3.msra.mxu1 %v736_v5 }
  0x97   : > { %3439 = vmatprep.subr.mxu1 %v3959_v0  ;;  %s722_s16 = scalar_lea.vmem %s4815_s3, %s721_s20  ;;  %s4764_s20 = smov 16  }
  0x98   : > { %3440 = vmatpush3.msra.mxu1 %v735_v6  ;;  %v3255_v24 = vld [vmem:[%s722_s16] ss:$0 sm:$0xff]  ;;  %s4818_s3 = sld [smem:[#allocation33_spill]] }
  0x99   : > { %3442 = vmatmul.mubr.msk.f32.vlgmr.msra.gmra.mxu1 %vm746_vm1, %v734_v7  ;;  %3444 = vmatprep.subr.mxu1 %v3959_v0  ;;  %v4348_v25 = vadd.f32 %v3255_v24, %v725_v23  ;;  %v3258_v42 = vld [vmem:[%s4816_s7] ss:$0 sm:$0xff] }
  0x9a   : > { %3452 = vmatprep.mubr.msk.f32.mxu1 %vm3960_vm0, %v3959_v0  ;;  %3445 = vmatpush3.msra.mxu1 %v823_v12 }
  0x9b   : > { %3446 = vmatprep.subr.mxu1 %v3959_v0 }
  0x9c   : > { %3447 = vmatpush3.msra.mxu1 %v822_v13 }
  0x9d   : > { %3448 = vmatprep.subr.mxu1 %v3959_v0 }
  0x9e   : > { %3449 = vmatpush3.msra.mxu1 %v821_v14 }
  0x9f   : > { %3450 = vmatprep.subr.mxu1 %v3959_v0 }
  0xa0   : > { %3451 = vmatpush3.msra.mxu1 %v820_v15 }
  0xa1   : > { %3453 = vmatmul.mubr.msk.f32.vlgmr.msra.gmra.mxu1 %vm746_vm1, %v4274_v3  ;;  %3460 = vmatprep.subr.mxu1 %v3959_v0 }
  0xa2   : > { %3462 = vmatprep.mubr.msk.f32.mxu1 %vm3960_vm0, %v3959_v0 }
 0x159   : > { %v816_v9 = vpop.f32.mrf.mxu1 }
 0x15a   : > { %v817_v10 = vadd.f32 %v3256_v8, %v816_v9 }
 0x15b   : > { %v3443_v11 = vpop.f32.mrf.mxu1 }
 0x15c   : > { %1067 = vrot.lane.b32.xlu1 %v817_v10, %s3961_s1  ;;  %905 = vrot.lane.b32.xlu0 %v817_v10, %s3962_s23 }
 0x160   : > { %1241 = vrot.lane.b32.xlu1 %v817_v10, %s3963_s13  ;;  %1069 = vrot.lane.b32.xlu0 %v817_v10, %s3964_s0 }
 0x161   : > { %v900_v43 = vpop.f32.mrf.mxu1 }
 0x162   : > { %v901_v44 = vadd.f32 %v3258_v42, %v900_v43 }
 0x163   : > { %v3454_v45 = vpop.f32.mrf.mxu1 }
 0x164   : > { %1412 = vrot.lane.b32.xlu1 %v817_v10, %s4769_s21  ;;  %1239 = vrot.lane.b32.xlu0 %v817_v10, %s4770_s19  ;;  %s4820_s21 = sld [smem:[#allocation35_spill]] }
 0x165   : > { %3461 = vmatpush3.msra.mxu1 %v901_v44 }
 0x166   : > { %3470 = vmatprep.subr.mxu1 %v3959_v0 }
 0x168   : > { %1410 = vrot.lane.b32.xlu0 %v817_v10, %s4767_s4 }
 0x1ce   : > { %v1068_v16 = vpop.permute.xlu1 %1067  ;;  %v906_v17 = vpop.permute.xlu0 %905 }
 0x1cf   : > { %3456 = vmatpush3.xpose.msk.msra.mxu0 %vm907_vm2, %v906_v17 }
 0x1d0   : > { %3465 = vmatprep.subr.mxu0 %v3959_v0 }
 0x1d2   : > { %3458 = vmatmul.mubr.msk.f32.vlgmr.msra.gmra.mxu0 %vm907_vm2, %v817_v10  ;;  %v1070_v18 = vpop.permute.xlu0 %1069  ;;  %v1242_v19 = vpop.permute.xlu1 %1241 }
 0x1d3   : > { %3466 = vmatpush3.xpose.msk.msra.mxu0 %vm907_vm2, %v1070_v18  ;;  %3467 = vmatprep.mubr.msk.f32.mxu0 %vm3960_vm0, %v3959_v0 }
 0x1d4   : > { %3475 = vmatprep.subr.mxu0 %v3959_v0 }
 0x1d6   : > { %3468 = vmatmul.mubr.msk.f32.vlgmr.msra.gmra.mxu0 %vm907_vm2, %v1068_v16  ;;  %v1240_v20 = vpop.permute.xlu0 %1239  ;;  %v1413_v21 = vpop.permute.xlu1 %1412 }
 0x1d7   : > { %3476 = vmatpush3.xpose.msk.msra.mxu0 %vm907_vm2, %v1242_v19  ;;  %3477 = vmatprep.mubr.msk.f32.mxu0 %vm3960_vm0, %v3959_v0 }
 0x1d8   : > { %3485 = vmatprep.subr.mxu0 %v3959_v0 }
 0x1da   : > { %3478 = vmatmul.mubr.msk.f32.vlgmr.msra.gmra.mxu0 %vm907_vm2, %v1240_v20  ;;  %v1411_v22 = vpop.permute.xlu0 %1410 }
 0x1db   : > { %3486 = vmatpush3.xpose.msk.msra.mxu0 %vm907_vm2, %v1413_v21  ;;  %3487 = vmatprep.mubr.msk.f32.mxu0 %vm3960_vm0, %v3959_v0 }
 0x1dc   : > { %3495 = vmatprep.subr.mxu0 %v3959_v0 }
 0x1de   : > { %3488 = vmatmul.mubr.msk.f32.vlgmr.msra.gmra.mxu0 %vm907_vm2, %v1411_v22 }
 0x1df   : > { %3503 = vmatprep.mubr.msk.f32.mxu0 %vm3960_vm0, %v3959_v0 }
 0x292   : > { %v978_v26 = vpop.f32.mrf.mxu0 }
 0x293   : > { %v979_v27 = vadd.f32 %v978_v26, %v4348_v25 }
 0x294   : > { %v3459_v28 = vpop.f32.mrf.mxu0 }
 0x295   : > { %v982_v29 = vsel %vm907_vm2, %v979_v27, -inf  ;;  %v1584_v28 = vld [vmem:[%s4732_s8 + $0x10] sm:$0xff] }
 0x296   : > { %983 = vmax.xlane.f32.xlu1 %v982_v29  ;;  %v1141_v30 = vpop.f32.mrf.mxu0  ;;  %v1583_v29 = vld [vmem:[%s4732_s8 + $0x8] sm:$0xff] }
 0x297   : > { %v1142_v31 = vadd.f32 %v1141_v30, %v4348_v25  ;;  %v1582_v30 = vld [vmem:[%s4732_s8] sm:$0xff] }
 0x298   : > { %v3469_v32 = vpop.f32.mrf.mxu0 }
 0x299   : > { %v1145_v33 = vsel %vm907_vm2, %v1142_v31, -inf }
 0x29a   : > { %1146 = vmax.xlane.f32.xlu0 %v1145_v33  ;;  %v1313_v34 = vpop.f32.mrf.mxu0 }
 0x29b   : > { %v1314_v35 = vadd.f32 %v1313_v34, %v4348_v25 }
 0x29c   : > { %v3479_v36 = vpop.f32.mrf.mxu0 }
 0x29d   : > { %v1317_v37 = vsel %vm907_vm2, %v1314_v35, -inf }
 0x29e   : > { %1318 = vmax.xlane.f32.xlu0 %v1317_v37  ;;  %v1484_v38 = vpop.f32.mrf.mxu0  ;;  %v3272_v37 = vld [vmem:[%s4733_s9] ss:$0 sm:$0xff] }
 0x29f   : > { %v1485_v39 = vadd.f32 %v1484_v38, %v4348_v25 }
 0x2a0   : > { %v3489_v40 = vpop.f32.mrf.mxu0 }
 0x2a1   : > { %v1488_v41 = vsel %vm907_vm2, %v1485_v39, -inf }
 0x2a2   : > { %1489 = vmax.xlane.f32.xlu1 %v1488_v41 }
 0x31f   : > { %v984_v46 = vpop.xlane.xlu1 %983 }
 0x320   : > { %v985_v47 = vsub.f32 %v979_v27, %v984_v46  ;;  %v1585_v27 = vld [vmem:[%s4732_s8 + $0x18] sm:$0xff] }
 0x321   : > { %3496 = vmatpush3.msra.mxu0 %v1585_v27  ;;  %v3282_v27 = vld [vmem:[%s4812_s17 + $0x20] sm:$0xff] }
 0x322   : > { %v986_v48 = vmul.f32 1.442695, %v985_v47  ;;  %3497 = vmatprep.subr.mxu0 %v3959_v0 }
 0x323   : > { %v1147_v49 = vpop.xlane.xlu0 %1146  ;;  %3498 = vmatpush3.msra.mxu0 %v1584_v28 }
 0x324   : > { %3725 = vpow2.f32 %v986_v48  ;;  %v1148_v50 = vsub.f32 %v1142_v31, %v1147_v49  ;;  %3499 = vmatprep.subr.mxu0 %v3959_v0  ;;  %v1700_v48 = vld [vmem:[#allocation9 + $0x18] sm:$0xff]  ;;  %v1699_v49 = vld [vmem:[#allocation9 + $0x10] sm:$0xff] }
 0x325   : > { %3500 = vmatpush3.msra.mxu0 %v1583_v29 }
 0x326   : > { %v1149_v51 = vmul.f32 1.442695, %v1148_v50  ;;  %3501 = vmatprep.subr.mxu0 %v3959_v0  ;;  %v1698_v50 = vld [vmem:[#allocation9 + $0x8] sm:$0xff] }
 0x327   : > { %v1319_v52 = vpop.xlane.xlu0 %1318  ;;  %3502 = vmatpush3.msra.mxu0 %v1582_v30 }
 0x328   : > { %3727 = vpow2.f32 %v1149_v51  ;;  %v1320_v53 = vsub.f32 %v1314_v35, %v1319_v52  ;;  %3517 = vmatprep.subr.mxu0 %v3959_v0  ;;  %v1789_v51 = vld [vmem:[%s4736_s12 + $0x38] sm:$0xff]  ;;  %v1788_v52 = vld [vmem:[%s4736_s12 + $0x30] sm:$0xff] }
 0x32a   : > { %v1321_v54 = vmul.f32 1.442695, %v1320_v53  ;;  %v1787_v53 = vld [vmem:[%s4736_s12 + $0x28] sm:$0xff] }
 0x32b   : > { %v1490_v61 = vpop.xlane.xlu1 %1489 }
 0x32c   : > { %3729 = vpow2.f32 %v1321_v54  ;;  %v1491_v62 = vsub.f32 %v1485_v39, %v1490_v61  ;;  %v1786_v54 = vld [vmem:[%s4736_s12 + $0x20] sm:$0xff] }
 0x32e   : > { %v1492_v63 = vmul.f32 1.442695, %v1491_v62  ;;  %v3275_v62 = vld [vmem:[%s4739_s15] ss:$0 sm:$0xff] }
 0x330   : > { %3731 = vpow2.f32 %v1492_v63 }
 0x331   : > { %v3726_v55 = vpop.eup %3725 }
 0x332   : > { %v988_v56 = vsel %vm907_vm2, %v3726_v55, 0.0 }
 0x333   : > { %989 = vadd.xlane.f32.xlu0 %v988_v56 }
 0x335   : > { %v3728_v57 = vpop.eup %3727 }
 0x336   : > { %v1151_v58 = vsel %vm907_vm2, %v3728_v57, 0.0 }
 0x337   : > { %1152 = vadd.xlane.f32.xlu1 %v1151_v58 }
 0x339   : > { %v3730_v59 = vpop.eup %3729 }
 0x33a   : > { %v1323_v60 = vsel %vm907_vm2, %v3730_v59, 0.0 }
 0x33b   : > { %1324 = vadd.xlane.f32.xlu0 %v1323_v60  ;;  %v3274_v60 = vld [vmem:[%s4738_s14] ss:$0 sm:$0xff] }
 0x33d   : > { %v3732_v1 = vpop.eup %3731 }
 0x33e   : > { %v1494_v2 = vsel %vm907_vm2, %v3732_v1, 0.0 }
 0x348   : > { %1328 = vrot.lane.b32.xlu1 %v901_v44, %s4770_s19  ;;  %s3340_s19 = sshll.u32 %s4098_s2, 7 }
 0x351   : > { %1157 = vrot.lane.b32.xlu0 %v901_v44, %s3961_s1 }
 0x36c   : > { %1495 = vadd.xlane.f32.xlu1 %v1494_v2  ;;  %v1784_v2 = vld [vmem:[%s4736_s12 + $0x10] sm:$0xff] }
 0x37d   : > { %1499 = vrot.lane.b32.xlu1 %v901_v44, %s4767_s4  ;;  %s4829_s4 = sld [smem:[#allocation37_spill]] }
 0x3bc   : > { %v990_v5 = vpop.xlane.xlu0 %989 }
 0x3bd   : > { %3733 = vrcp.f32 %v990_v5  ;;  %v1783_v5 = vld [vmem:[%s4736_s12 + $0x8] sm:$0xff] }
 0x3c0   : > { %v1153_v6 = vpop.xlane.xlu1 %1152 }
 0x3c1   : > { %3735 = vrcp.f32 %v1153_v6  ;;  %v1782_v6 = vld [vmem:[%s4736_s12] sm:$0xff] }
 0x3c4   : > { %v1325_v7 = vpop.xlane.xlu0 %1324  ;;  %v1329_v13 = vpop.permute.xlu1 %1328 }
 0x3c5   : > { %3737 = vrcp.f32 %v1325_v7 }
 0x3c8   : > { %v1158_v10 = vpop.permute.xlu0 %1157 }
 0x3ca   : > { %v3734_v8 = vpop.eup %3733 }
 0x3cb   : > { %v992_v9 = vmul.f32 %v3734_v8, %v3726_v55  ;;  %v1785_v55 = vld [vmem:[%s4736_s12 + $0x18] sm:$0xff] }
 0x3cd   : > { %3463 = vmatmul.mubr.msk.f32.vlgmr.msra.gmra.mxu1 %vm907_vm2, %v992_v9 }
 0x3ce   : > { %v3736_v11 = vpop.eup %3735  ;;  %3471 = vmatpush3.msra.mxu1 %v1158_v10  ;;  %3472 = vmatprep.mubr.msk.f32.mxu1 %vm3960_vm0, %v3959_v0 }
 0x3cf   : > { %3480 = vmatprep.subr.mxu1 %v3959_v0  ;;  %v1155_v12 = vmul.f32 %v3736_v11, %v3728_v57 }
 0x3d1   : > { %3473 = vmatmul.mubr.msk.f32.vlgmr.msra.gmra.mxu1 %vm907_vm2, %v1155_v12  ;;  %v3278_v12 = vld [vmem:[%s4818_s3] ss:$0 sm:$0xff] }
 0x3d2   : > { %v3738_v14 = vpop.eup %3737  ;;  %3481 = vmatpush3.msra.mxu1 %v1329_v13  ;;  %3482 = vmatprep.mubr.msk.f32.mxu1 %vm3960_vm0, %v3959_v0 }
 0x3d3   : > { %v1327_v15 = vmul.f32 %v3738_v14, %v3730_v59  ;;  %3490 = vmatprep.subr.mxu1 %v3959_v0 }
 0x3d5   : > { %3483 = vmatmul.mubr.msk.f32.vlgmr.msra.gmra.mxu1 %vm907_vm2, %v1327_v15 }
 0x3d6   : > { %3492 = vmatprep.mubr.msk.f32.mxu1 %vm3960_vm0, %v3959_v0 }
 0x3f5   : > { %v1496_v16 = vpop.xlane.xlu1 %1495 }
 0x3f6   : > { %3739 = vrcp.f32 %v1496_v16 }
 0x3f9   : > { %v1500_v17 = vpop.permute.xlu1 %1499 }
 0x3fa   : > { %3491 = vmatpush3.msra.mxu1 %v1500_v17 }
 0x3fb   : > { %3506 = vmatprep.subr.mxu1 %v3959_v0 }
 0x403   : > { %v3740_v18 = vpop.eup %3739 }
 0x404   : > { %v1498_v19 = vmul.f32 %v3740_v18, %v3732_v1 }
 0x406   : > { %3493 = vmatmul.mubr.msk.f32.vlgmr.msra.gmra.mxu1 %vm907_vm2, %v1498_v19 }
 0x407   : > { %3514 = vmatprep.mubr.msk.f32.mxu1 %vm3960_vm0, %v3959_v0  ;;  %3507 = vmatpush3.msra.mxu1 %v1700_v48 }
 0x408   : > { %3508 = vmatprep.subr.mxu1 %v3959_v0 }
 0x409   : > { %3509 = vmatpush3.msra.mxu1 %v1699_v49 }
 0x40a   : > { %3510 = vmatprep.subr.mxu1 %v3959_v0 }
 0x40b   : > { %3511 = vmatpush3.msra.mxu1 %v1698_v50 }
 0x40c   : > { %3512 = vmatprep.subr.mxu1 %v3959_v0 }
 0x48d   : > { %v1062_v20 = vpop.f32.mrf.mxu1 }
 0x48e   : > { %1066 = vst.msk [vmem:[#allocation2] sm:$0xff] %vm907_vm2, %v1062_v20 }
 0x48f   : > { %v3464_v21 = vpop.f32.mrf.mxu1 }
 0x491   : > { %v1229_v22 = vpop.f32.mrf.mxu1 }
 0x492   : > { %1234 = vrot.lane.b32.xlu0 %v1229_v22, %s4765_s30  ;;  %s4817_s30 = sld [smem:[#allocation32_spill]] }
 0x493   : > { %v3474_v23 = vpop.f32.mrf.mxu1 }
 0x494   : > { %v3285_v23 = vld [vmem:[%s4812_s17 + $0x38] sm:$0xff] }
 0x495   : > { %v1400_v24 = vpop.f32.mrf.mxu1 }
 0x496   : > { %1405 = vrot.lane.b32.xlu1 %v1400_v24, %s4764_s20  ;;  %v3284_v24 = vld [vmem:[%s4812_s17 + $0x30] sm:$0xff]  ;;  %s4822_s20 = smov 72  }
 0x497   : > { %v3484_v26 = vpop.f32.mrf.mxu1 }
 0x498   : > { %v3276_v7 = vld [vmem:[%s4817_s30] ss:$0 sm:$0xff]  ;;  %v3283_v26 = vld [vmem:[%s4812_s17 + $0x28] sm:$0xff] }
 0x4c6   : > { %v1571_v31 = vpop.f32.mrf.mxu1 }
 0x4c7   : > { %1576 = vrot.lane.b32.xlu0 %v1571_v31, %s4766_s27  ;;  %s3119_s27 = sshll.u32 %s719_s29, 4  ;;  %s3120_s27 = int_to_ptr.vmem [resolvable:$true] %s3119_s27 }
 0x4c8   : > { %v3494_v32 = vpop.f32.mrf.mxu1 }
 0x4c9   : > { %v3280_v32 = vld [vmem:[%s4819_s25] ss:$0 sm:$0xff] }
 0x504   : > { %v1235_v33 = vpop.permute.xlu0 %1234 }
 0x505   : > { %1238 = vst.msk [vmem:[#allocation2] sm:$0xff] %vm1237_vm3, %v1235_v33 }
 0x508   : > { %v1406_v34 = vpop.permute.xlu1 %1405 }
 0x509   : > { %1409 = vst.msk [vmem:[#allocation2] sm:$0xff] %vm1408_vm4, %v1406_v34  ;;  %v3281_v34 = vld [vmem:[%s4820_s21] ss:$0 sm:$0xff] }
 0x539   : > { %v1577_v35 = vpop.permute.xlu0 %1576 }
 0x53a   : > { %1580 = vst.msk [vmem:[#allocation2] sm:$0xff] %vm1579_vm5, %v1577_v35 }
 0x541   : > { %v1581_v36 = vld [vmem:[#allocation2] sm:$0xff] }
 0x542   : > { %3504 = vmatmul.mubr.msk.f32.vlgmr.msra.gmra.mxu0 %vm746_vm1, %v1581_v36 }
 0x543   : > { %3533 = vmatprep.mubr.msk.f32.mxu0 %vm3960_vm0, %v3959_v0  ;;  %3518 = vmatpush3.msra.mxu0 %v1789_v51 }
 0x544   : > { %3519 = vmatprep.subr.mxu0 %v3959_v0 }
 0x545   : > { %3520 = vmatpush3.msra.mxu0 %v1788_v52 }
 0x546   : > { %3521 = vmatprep.subr.mxu0 %v3959_v0 }
 0x547   : > { %3522 = vmatpush3.msra.mxu0 %v1787_v53 }
 0x548   : > { %3523 = vmatprep.subr.mxu0 %v3959_v0 }
 0x549   : > { %3524 = vmatpush3.msra.mxu0 %v1786_v54 }
 0x54a   : > { %3525 = vmatprep.subr.mxu0 %v3959_v0 }
 0x54b   : > { %3526 = vmatpush3.msra.mxu0 %v1785_v55 }
 0x54c   : > { %3527 = vmatprep.subr.mxu0 %v3959_v0 }
 0x54d   : > { %3528 = vmatpush3.msra.mxu0 %v1784_v2 }
 0x54e   : > { %3529 = vmatprep.subr.mxu0 %v3959_v0 }
 0x54f   : > { %3530 = vmatpush3.msra.mxu0 %v1783_v5 }
 0x550   : > { %3531 = vmatprep.subr.mxu0 %v3959_v0 }
 0x551   : > { %3532 = vmatpush3.msra.mxu0 %v1782_v6 }
 0x552   : > { %3558 = vmatprep.subr.mxu0 %v3959_v0 }
 0x602   : > { %v1662_v38 = vpop.f32.mrf.mxu0 }
 0x603   : > { %v1663_v39 = vadd.f32 %v3272_v37, %v1662_v38  ;;  %v3292_v38 = vld [vmem:[%s4814_s6 + $0x38] sm:$0xff] }
 0x604   : > { %v3505_v40 = vpop.f32.mrf.mxu0 }
 0x605   : > { %v1666_v41 = vadd.f32 %v1663_v39, %v4274_v3  ;;  %v1697_v3 = vld [vmem:[#allocation9] sm:$0xff]  ;;  %v3289_v40 = vld [vmem:[%s4814_s6 + $0x20] sm:$0xff] }
 0x606   : > { %3513 = vmatpush3.msra.mxu1 %v1697_v3  ;;  %v3291_v39 = vld [vmem:[%s4814_s6 + $0x30] sm:$0xff] }
 0x607   : > { %v1669_v42 = vsel %vm746_vm1, %v1666_v41, 0.0  ;;  %3536 = vmatprep.subr.mxu1 %v3959_v0 }
 0x608   : > { %1670 = vadd.xlane.f32.xlu1 %v1669_v42 }
 0x691   : > { %v1671_v43 = vpop.xlane.xlu1 %1670 }
 0x692   : > { %v1673_v44 = vmul.f32 0.03125, %v1671_v43 }
 0x694   : > { %v1674_v45 = vsub.f32 %v1666_v41, %v1673_v44  ;;  %v3287_v41 = vld [vmem:[%s4813_s5 + $0x1] ss:$0 sm:$0xff]  ;;  %s4830_s5 = sld [smem:[#allocation38_spill]] }
 0x696   : > { %v1675_v46 = vmul.f32 %v1674_v45, %v1674_v45 }
 0x698   : > { %v1676_v47 = vsel %vm746_vm1, %v1675_v46, 0.0 }
 0x699   : > { %1677 = vadd.xlane.f32.xlu0 %v1676_v47 }
 0x722   : > { %v1678_v56 = vpop.xlane.xlu0 %1677 }
 0x723   : > { %v1679_v57 = vmul.f32 0.03125, %v1678_v56 }
 0x725   : > { %v1680_v58 = vadd.f32 1e-05, %v1679_v57 }
 0x727   : > { %3741 = vrsqrt.f32 %v1680_v58 }
 0x734   : > { %v3742_v59 = vpop.eup %3741 }
 0x735   : > { %v1682_v61 = vmul.f32 %v3742_v59, %v1674_v45  ;;  %v3294_v45 = vld [vmem:[%s4816_s7 + $0x1] ss:$0 sm:$0xff]  ;;  %s3106_s7 = scalar_lea.sflag [#allocation5], %s4237_s26 }
 0x737   : > { %v1689_v63 = vmul.f32 %v3274_v60, %v1682_v61 }
 0x739   : > { %v1696_v1 = vadd.f32 %v3275_v62, %v1689_v63 }
 0x73b   : > { %3515 = vmatmul.mubr.msk.f32.vlgmr.msra.gmra.mxu1 %vm746_vm1, %v1696_v1 }
 0x73c   : > { %3544 = vmatprep.mubr.msk.f32.mxu1 %vm3960_vm0, %v3959_v0  ;;  %3537 = vmatpush3.msra.mxu1 %v3285_v23 }
 0x73d   : > { %3538 = vmatprep.subr.mxu1 %v3959_v0 }
 0x73e   : > { %3539 = vmatpush3.msra.mxu1 %v3284_v24 }
 0x73f   : > { %3540 = vmatprep.subr.mxu1 %v3959_v0 }
 0x740   : > { %3541 = vmatpush3.msra.mxu1 %v3283_v26 }
 0x741   : > { %3542 = vmatprep.subr.mxu1 %v3959_v0 }
 0x742   : > { %3543 = vmatpush3.msra.mxu1 %v3282_v27 }
 0x743   : > { %3547 = vmatprep.subr.mxu1 %v3959_v0 }
 0x7fb   : > { %v1777_v8 = vpop.f32.mrf.mxu1 }
 0x7fc   : > { %v1778_v9 = vadd.f32 %v3276_v7, %v1777_v8 }
 0x7fd   : > { %v3516_v10 = vpop.f32.mrf.mxu1 }
 0x7fe   : > { %v1781_v11 = vmax.f32 %v1778_v9, 0.0 }
 0x800   : > { %3534 = vmatmul.mubr.msk.f32.vlgmr.msra.gmra.mxu0 %vm1797_vm6, %v1781_v11 }
 0x801   : > { %3560 = vmatprep.mubr.msk.f32.mxu0 %vm3960_vm0, %v3959_v0 }
 0x8c0   : > { %v1867_v13 = vpop.f32.mrf.mxu0 }
 0x8c1   : > { %v1868_v14 = vadd.f32 %v3278_v12, %v1867_v13 }
 0x8c2   : > { %v3535_v15 = vpop.f32.mrf.mxu0 }
 0x8c3   : > { %v1871_v16 = vadd.f32 %v1868_v14, %v1696_v1 }
 0x8c5   : > { %v1874_v17 = vsel %vm746_vm1, %v1871_v16, 0.0 }
 0x8c6   : > { %1875 = vadd.xlane.f32.xlu0 %v1874_v17 }
 0x94f   : > { %v1876_v18 = vpop.xlane.xlu0 %1875 }
 0x950   : > { %v1877_v19 = vmul.f32 0.03125, %v1876_v18 }
 0x952   : > { %v1878_v20 = vsub.f32 %v1871_v16, %v1877_v19 }
 0x954   : > { %v1879_v21 = vmul.f32 %v1878_v20, %v1878_v20 }
 0x956   : > { %v1880_v22 = vsel %vm746_vm1, %v1879_v21, 0.0 }
 0x957   : > { %1881 = vadd.xlane.f32.xlu1 %v1880_v22 }
 0x9e0   : > { %v1882_v28 = vpop.xlane.xlu1 %1881 }
 0x9e1   : > { %v1883_v29 = vmul.f32 0.03125, %v1882_v28 }
 0x9e3   : > { %v1884_v30 = vadd.f32 1e-05, %v1883_v29 }
 0x9e5   : > { %3743 = vrsqrt.f32 %v1884_v30 }
 0x9f2   : > { %v3744_v31 = vpop.eup %3743 }
 0x9f3   : > { %v1886_v33 = vmul.f32 %v3744_v31, %v1878_v20 }
 0x9f5   : > { %v1893_v35 = vmul.f32 %v3280_v32, %v1886_v33 }
 0x9f7   : > { %v4494_v36 = vadd.f32 %v3281_v34, %v1893_v35 }
 0x9f9   : > { %v1901_v37 = vadd.f32 %v4494_v36, %v4276_v4  ;;  %v3290_v4 = vld [vmem:[%s4814_s6 + $0x28] sm:$0xff]  ;;  %s3117_s6 = scalar_lea.hbm %s4830_s5, %s3340_s19 }
 0x9fb   : > { %3545 = vmatmul.mubr.msk.f32.vlgmr.msra.gmra.mxu1 %vm746_vm1, %v1901_v37 }
 0x9fc   : > { %3548 = vmatpush3.msra.mxu1 %v3292_v38  ;;  %3555 = vmatprep.mubr.msk.f32.mxu1 %vm3960_vm0, %v3959_v0 }
 0x9fd   : > { %3549 = vmatprep.subr.mxu1 %v3959_v0 }
 0x9fe   : > { %3550 = vmatpush3.msra.mxu1 %v3291_v39 }
 0x9ff   : > { %3551 = vmatprep.subr.mxu1 %v3959_v0 }
 0xa00   : > { %3552 = vmatpush3.msra.mxu1 %v3290_v4 }
 0xa01   : > { %3553 = vmatprep.subr.mxu1 %v3959_v0 }
 0xa02   : > { %3554 = vmatpush3.msra.mxu1 %v3289_v40 }
 0xa03   : > { %3556 = vmatmul.mubr.msk.f32.vlgmr.msra.gmra.mxu1 %vm746_vm1, %v4494_v36  ;;  %3563 = vmatprep.subr.mxu1 %v3959_v0 }
 0xa04   : > { %3565 = vmatprep.mubr.msk.f32.mxu1 %vm3960_vm0, %v3959_v0 }
 0xabb   : > { %v1984_v42 = vpop.f32.mrf.mxu1 }
 0xabc   : > { %v1985_v43 = vadd.f32 %v3287_v41, %v1984_v42 }
 0xabd   : > { %v3546_v44 = vpop.f32.mrf.mxu1 }
 0xabe   : > { %2238 = vrot.lane.b32.xlu1 %v1985_v43, %s3964_s0  ;;  %2075 = vrot.lane.b32.xlu0 %v1985_v43, %s3962_s23  ;;  %s4823_s23 = smov 104  }
 0xac2   : > { %2236 = vrot.lane.b32.xlu1 %v1985_v43, %s3961_s1  ;;  %2409 = vrot.lane.b32.xlu0 %v1985_v43, %s3963_s13 }
 0xac3   : > { %v2070_v46 = vpop.f32.mrf.mxu1 }
 0xac4   : > { %v4531_v47 = vadd.f32 %v3294_v45, %v2070_v46  ;;  %v3311_v46 = vld [vmem:[%s4732_s8 + $0x38] sm:$0xff] }
 0xac5   : > { %v3557_v48 = vpop.f32.mrf.mxu1 }
 0xac6   : > { %3564 = vmatpush3.msra.mxu1 %v4531_v47  ;;  %2407 = vrot.lane.b32.xlu1 %v1985_v43, %s4821_s28 }
 0xac7   : > { %2579 = vrot.lane.b32.xlu0 %v1985_v43, %s4822_s20  ;;  %3573 = vmatprep.subr.mxu1 %v3959_v0  ;;  %s4825_s20 = smov 16  }
 0xaca   : > { %2577 = vrot.lane.b32.xlu1 %v1985_v43, %s4823_s23 }
 0xb30   : > { %v2239_v49 = vpop.permute.xlu1 %2238  ;;  %v2076_v50 = vpop.permute.xlu0 %2075 }
 0xb31   : > { %3559 = vmatpush3.xpose.msk.msra.mxu0 %vm907_vm2, %v2076_v50 }
 0xb32   : > { %3568 = vmatprep.subr.mxu0 %v3959_v0 }
 0xb34   : > { %v2237_v3 = vpop.permute.xlu1 %2236  ;;  %3561 = vmatmul.mubr.msk.f32.vlgmr.msra.gmra.mxu0 %vm907_vm2, %v1985_v43  ;;  %v2410_v51 = vpop.permute.xlu0 %2409 }
 0xb35   : > { %3569 = vmatpush3.xpose.msk.msra.mxu0 %vm907_vm2, %v2239_v49  ;;  %3570 = vmatprep.mubr.msk.f32.mxu0 %vm3960_vm0, %v3959_v0  ;;  %v3309_v49 = vld [vmem:[%s4732_s8 + $0x28] sm:$0xff] }
 0xb36   : > { %3578 = vmatprep.subr.mxu0 %v3959_v0 }
 0xb38   : > { %3571 = vmatmul.mubr.msk.f32.vlgmr.msra.gmra.mxu0 %vm907_vm2, %v2237_v3  ;;  %v2408_v52 = vpop.permute.xlu1 %2407  ;;  %v3308_v3 = vld [vmem:[%s4732_s8 + $0x20] sm:$0xff] }
 0xb39   : > { %3579 = vmatpush3.xpose.msk.msra.mxu0 %vm907_vm2, %v2410_v51  ;;  %3580 = vmatprep.mubr.msk.f32.mxu0 %vm3960_vm0, %v3959_v0  ;;  %v2580_v53 = vpop.permute.xlu0 %2579 }
 0xb3a   : > { %3588 = vmatprep.subr.mxu0 %v3959_v0 }
 0xb3c   : > { %3581 = vmatmul.mubr.msk.f32.vlgmr.msra.gmra.mxu0 %vm907_vm2, %v2408_v52  ;;  %v2578_v54 = vpop.permute.xlu1 %2577 }
 0xb3d   : > { %3589 = vmatpush3.xpose.msk.msra.mxu0 %vm907_vm2, %v2580_v53  ;;  %3590 = vmatprep.mubr.msk.f32.mxu0 %vm3960_vm0, %v3959_v0 }
 0xb3e   : > { %3598 = vmatprep.subr.mxu0 %v3959_v0 }
 0xb40   : > { %3591 = vmatmul.mubr.msk.f32.vlgmr.msra.gmra.mxu0 %vm907_vm2, %v2578_v54 }
 0xb41   : > { %3606 = vmatprep.mubr.msk.f32.mxu0 %vm3960_vm0, %v3959_v0  ;;  %3599 = vmatpush3.msra.mxu0 %v3311_v46 }
 0xb42   : > { %3600 = vmatprep.subr.mxu0 %v3959_v0 }
 0xbf4   : > { %v2147_v55 = vpop.f32.mrf.mxu0 }
 0xbf5   : > { %v2148_v56 = vadd.f32 %v2147_v55, %v4348_v25 }
 0xbf6   : > { %v3562_v57 = vpop.f32.mrf.mxu0 }
 0xbf7   : > { %v2151_v58 = vsel %vm907_vm2, %v2148_v56, -inf }
 0xbf8   : > { %2152 = vmax.xlane.f32.xlu0 %v2151_v58  ;;  %v2310_v59 = vpop.f32.mrf.mxu0 }
 0xbf9   : > { %v2311_v60 = vadd.f32 %v2310_v59, %v4348_v25 }
 0xbfa   : > { %v3572_v61 = vpop.f32.mrf.mxu0 }
 0xbfb   : > { %v2314_v62 = vsel %vm907_vm2, %v2311_v60, -inf }
 0xbfc   : > { %2315 = vmax.xlane.f32.xlu1 %v2314_v62  ;;  %v2481_v63 = vpop.f32.mrf.mxu0 }
 0xbfd   : > { %v2482_v1 = vadd.f32 %v2481_v63, %v4348_v25 }
 0xbfe   : > { %v3582_v2 = vpop.f32.mrf.mxu0 }
 0xbff   : > { %v2485_v5 = vsel %vm907_vm2, %v2482_v1, -inf }
 0xc00   : > { %2486 = vmax.xlane.f32.xlu0 %v2485_v5  ;;  %v2651_v6 = vpop.f32.mrf.mxu0 }
 0xc01   : > { %v2652_v7 = vadd.f32 %v2651_v6, %v4348_v25 }
 0xc02   : > { %v3592_v8 = vpop.f32.mrf.mxu0 }
 0xc03   : > { %v2655_v9 = vsel %vm907_vm2, %v2652_v7, -inf }
 0xc04   : > { %2656 = vmax.xlane.f32.xlu0 %v2655_v9 }
 0xc0d   : > { %2326 = vrot.lane.b32.xlu1 %v4531_v47, %s3961_s1  ;;  %s4828_s1 = sld [smem:[#allocation36_spill]] }
 0xc81   : > { %v2153_v10 = vpop.xlane.xlu0 %2152 }
 0xc82   : > { %v2154_v11 = vsub.f32 %v2148_v56, %v2153_v10  ;;  %v2870_v10 = vld [vmem:[#allocation9 + $0x38] sm:$0xff] }
 0xc84   : > { %v2155_v12 = vmul.f32 1.442695, %v2154_v11  ;;  %v2869_v11 = vld [vmem:[#allocation9 + $0x30] sm:$0xff] }
 0xc85   : > { %v2316_v13 = vpop.xlane.xlu1 %2315 }
 0xc86   : > { %3745 = vpow2.f32 %v2155_v12  ;;  %v2317_v14 = vsub.f32 %v2311_v60, %v2316_v13  ;;  %v3313_v60 = vld [vmem:[%s4733_s9 + $0x1] ss:$0 sm:$0xff]  ;;  %v2868_v12 = vld [vmem:[#allocation9 + $0x28] sm:$0xff] }
 0xc87   : > { %v3329_v13 = vld [vmem:[%s4736_s12 + $0x78] sm:$0xff] }
 0xc88   : > { %v2318_v15 = vmul.f32 1.442695, %v2317_v14  ;;  %v3328_v14 = vld [vmem:[%s4736_s12 + $0x70] sm:$0xff] }
 0xc89   : > { %v2487_v16 = vpop.xlane.xlu0 %2486  ;;  %v2327_v30 = vpop.permute.xlu1 %2326 }
 0xc8a   : > { %3747 = vpow2.f32 %v2318_v15  ;;  %v2488_v17 = vsub.f32 %v2482_v1, %v2487_v16  ;;  %v3327_v15 = vld [vmem:[%s4736_s12 + $0x68] sm:$0xff]  ;;  %v3326_v16 = vld [vmem:[%s4736_s12 + $0x60] sm:$0xff] }
 0xc8c   : > { %v2489_v18 = vmul.f32 1.442695, %v2488_v17  ;;  %v3325_v17 = vld [vmem:[%s4736_s12 + $0x58] sm:$0xff] }
 0xc8d   : > { %v2657_v19 = vpop.xlane.xlu0 %2656 }
 0xc8e   : > { %3749 = vpow2.f32 %v2489_v18  ;;  %v2658_v25 = vsub.f32 %v2652_v7, %v2657_v19 }
 0xc90   : > { %v2659_v20 = vmul.f32 1.442695, %v2658_v25 }
 0xc92   : > { %3751 = vpow2.f32 %v2659_v20 }
 0xc93   : > { %v3746_v21 = vpop.eup %3745 }
 0xc94   : > { %v2157_v22 = vsel %vm907_vm2, %v3746_v21, 0.0 }
 0xc95   : > { %2158 = vadd.xlane.f32.xlu1 %v2157_v22 }
 0xc97   : > { %v3748_v23 = vpop.eup %3747 }
 0xc98   : > { %v2320_v24 = vsel %vm907_vm2, %v3748_v23, 0.0 }
 0xc99   : > { %2321 = vadd.xlane.f32.xlu0 %v2320_v24 }
 0xc9b   : > { %v3750_v26 = vpop.eup %3749 }
 0xc9c   : > { %v2491_v27 = vsel %vm907_vm2, %v3750_v26, 0.0 }
 0xc9d   : > { %2492 = vadd.xlane.f32.xlu1 %v2491_v27  ;;  %v3324_v27 = vld [vmem:[%s4736_s12 + $0x50] sm:$0xff] }
 0xc9f   : > { %v3752_v28 = vpop.eup %3751 }
 0xca0   : > { %v2661_v29 = vsel %vm907_vm2, %v3752_v28, 0.0 }
 0xca1   : > { %2662 = vadd.xlane.f32.xlu0 %v2661_v29  ;;  %v3322_v29 = vld [vmem:[%s4736_s12 + $0x40] sm:$0xff] }
 0xcae   : > { %2666 = vrot.lane.b32.xlu1 %v4531_v47, %s4823_s23  ;;  %s4826_s23 = smov 24  }
 0xcb7   : > { %2496 = vrot.lane.b32.xlu0 %v4531_v47, %s4821_s28  ;;  %v3310_v47 = vld [vmem:[%s4732_s8 + $0x30] sm:$0xff]  ;;  %s4824_s28 = smov 8  }
 0xcb8   : > { %3601 = vmatpush3.msra.mxu0 %v3310_v47 }
 0xcb9   : > { %3602 = vmatprep.subr.mxu0 %v3959_v0 }
 0xcba   : > { %3603 = vmatpush3.msra.mxu0 %v3309_v49  ;;  %v3335_v49 = vld [vmem:[%s4819_s25 + $0x1] ss:$0 sm:$0xff] }
 0xcbb   : > { %3604 = vmatprep.subr.mxu0 %v3959_v0 }
 0xcbc   : > { %3605 = vmatpush3.msra.mxu0 %v3308_v3  ;;  %v3336_v3 = vld [vmem:[%s4820_s21 + $0x1] ss:$0 sm:$0xff] }
 0xcbd   : > { %3620 = vmatprep.subr.mxu0 %v3959_v0 }
 0xd1e   : > { %v2159_v31 = vpop.xlane.xlu1 %2158 }
 0xd1f   : > { %3753 = vrcp.f32 %v2159_v31 }
 0xd22   : > { %v2322_v32 = vpop.xlane.xlu0 %2321 }
 0xd23   : > { %3755 = vrcp.f32 %v2322_v32 }
 0xd26   : > { %v2493_v33 = vpop.xlane.xlu1 %2492 }
 0xd27   : > { %3757 = vrcp.f32 %v2493_v33 }
 0xd2a   : > { %v2663_v34 = vpop.xlane.xlu0 %2662  ;;  %v2667_v42 = vpop.permute.xlu1 %2666 }
 0xd2b   : > { %3759 = vrcp.f32 %v2663_v34 }
 0xd2c   : > { %v3754_v35 = vpop.eup %3753 }
 0xd2d   : > { %v2161_v37 = vmul.f32 %v3754_v35, %v3746_v21  ;;  %v3317_v21 = vld [vmem:[%s4738_s14 + $0x1] ss:$0 sm:$0xff] }
 0xd2e   : > { %v2497_v4 = vpop.permute.xlu0 %2496  ;;  %v3331_v35 = vld [vmem:[%s4818_s3 + $0x1] ss:$0 sm:$0xff] }
 0xd2f   : > { %3566 = vmatmul.mubr.msk.f32.vlgmr.msra.gmra.mxu1 %vm907_vm2, %v2161_v37 }
 0xd30   : > { %v3756_v38 = vpop.eup %3755  ;;  %3574 = vmatpush3.msra.mxu1 %v2327_v30  ;;  %3575 = vmatprep.mubr.msk.f32.mxu1 %vm3960_vm0, %v3959_v0  ;;  %v3320_v30 = vld [vmem:[%s4817_s30 + $0x1] ss:$0 sm:$0xff] }
 0xd31   : > { %3583 = vmatprep.subr.mxu1 %v3959_v0  ;;  %v2324_v39 = vmul.f32 %v3756_v38, %v3748_v23  ;;  %v3318_v23 = vld [vmem:[%s4739_s15 + $0x1] ss:$0 sm:$0xff] }
 0xd33   : > { %3576 = vmatmul.mubr.msk.f32.vlgmr.msra.gmra.mxu1 %vm907_vm2, %v2324_v39 }
 0xd34   : > { %v3758_v40 = vpop.eup %3757  ;;  %3584 = vmatpush3.msra.mxu1 %v2497_v4  ;;  %3585 = vmatprep.mubr.msk.f32.mxu1 %vm3960_vm0, %v3959_v0 }
 0xd35   : > { %3593 = vmatprep.subr.mxu1 %v3959_v0  ;;  %v2495_v41 = vmul.f32 %v3758_v40, %v3750_v26 }
 0xd37   : > { %3586 = vmatmul.mubr.msk.f32.vlgmr.msra.gmra.mxu1 %vm907_vm2, %v2495_v41 }
 0xd38   : > { %v3760_v43 = vpop.eup %3759  ;;  %3594 = vmatpush3.msra.mxu1 %v2667_v42  ;;  %3595 = vmatprep.mubr.msk.f32.mxu1 %vm3960_vm0, %v3959_v0 }
 0xd39   : > { %v2665_v44 = vmul.f32 %v3760_v43, %v3752_v28  ;;  %3609 = vmatprep.subr.mxu1 %v3959_v0  ;;  %v3323_v28 = vld [vmem:[%s4736_s12 + $0x48] sm:$0xff] }
 0xd3b   : > { %3596 = vmatmul.mubr.msk.f32.vlgmr.msra.gmra.mxu1 %vm907_vm2, %v2665_v44 }
 0xd3c   : > { %3617 = vmatprep.mubr.msk.f32.mxu1 %vm3960_vm0, %v3959_v0  ;;  %3610 = vmatpush3.msra.mxu1 %v2870_v10 }
 0xd3d   : > { %3611 = vmatprep.subr.mxu1 %v3959_v0 }
 0xd3e   : > { %3612 = vmatpush3.msra.mxu1 %v2869_v11 }
 0xd3f   : > { %3613 = vmatprep.subr.mxu1 %v3959_v0 }
 0xd40   : > { %3614 = vmatpush3.msra.mxu1 %v2868_v12 }
 0xd41   : > { %3615 = vmatprep.subr.mxu1 %v3959_v0 }
 0xdef   : > { %v2231_v45 = vpop.f32.mrf.mxu1 }
 0xdf0   : > { %2235 = vst.msk [vmem:[#allocation2] sm:$0xff] %vm907_vm2, %v2231_v45 }
 0xdf1   : > { %v3567_v48 = vpop.f32.mrf.mxu1 }
 0xdf3   : > { %v2398_v50 = vpop.f32.mrf.mxu1 }
 0xdf4   : > { %2403 = vrot.lane.b32.xlu1 %v2398_v50, %s4824_s28  ;;  %s4827_s28 = sld [smem:[#allocation21_spill]] }
 0xdf5   : > { %v3577_v51 = vpop.f32.mrf.mxu1 }
 0xdf7   : > { %v2568_v52 = vpop.f32.mrf.mxu1 }
 0xdf8   : > { %2573 = vrot.lane.b32.xlu0 %v2568_v52, %s4825_s20  ;;  %s3875_s20 = scalar_lea.vmem %s3120_s27, 128 }
 0xdf9   : > { %v3587_v53 = vpop.f32.mrf.mxu1  ;;  %p3876_p9 = scmp.ne.s32.totalorder %s3120_s27, %s3875_s20 }
 0xdfa   : > { %p4831_p12 = scmp.ne.s32.totalorder %s4827_s28, 0 }
 0xdfb   : > { %v2738_v54 = vpop.f32.mrf.mxu1 }
 0xdfc   : > { %2743 = vrot.lane.b32.xlu1 %v2738_v54, %s4826_s23  ;;  %p3877_p3 = pnand %p3876_p9, %p4831_p12  ;;  %s3971_s23 = smov [#allocation11]  }
 0xdfd   : > { %v3597_v55 = vpop.f32.mrf.mxu1 }
 0xdfe   : > { %p3878_p7 = pneg %p3877_p3 }
 0xe66   : > { %v2404_v56 = vpop.permute.xlu1 %2403 }
 0xe67   : > { %2406 = vst.msk [vmem:[#allocation2] sm:$0xff] %vm1237_vm3, %v2404_v56 }
 0xe6a   : > { %v2574_v57 = vpop.permute.xlu0 %2573 }
 0xe6b   : > { %2576 = vst.msk [vmem:[#allocation2] sm:$0xff] %vm1408_vm4, %v2574_v57 }
 0xe6e   : > { %v2744_v58 = vpop.permute.xlu1 %2743 }
 0xe6f   : > { %2746 = vst.msk [vmem:[#allocation2] sm:$0xff] %vm1579_vm5, %v2744_v58 }
 0xe76   : > { %v2747_v59 = vld [vmem:[#allocation2] sm:$0xff] }
 0xe77   : > { %3607 = vmatmul.mubr.msk.f32.vlgmr.msra.gmra.mxu0 %vm746_vm1, %v2747_v59 }
 0xe78   : > { %3636 = vmatprep.mubr.msk.f32.mxu0 %vm3960_vm0, %v3959_v0  ;;  %3621 = vmatpush3.msra.mxu0 %v3329_v13 }
 0xe79   : > { %3622 = vmatprep.subr.mxu0 %v3959_v0 }
 0xe7a   : > { %3623 = vmatpush3.msra.mxu0 %v3328_v14 }
 0xe7b   : > { %3624 = vmatprep.subr.mxu0 %v3959_v0 }
 0xe7c   : > { %3625 = vmatpush3.msra.mxu0 %v3327_v15 }
 0xe7d   : > { %3626 = vmatprep.subr.mxu0 %v3959_v0 }
 0xe7e   : > { %3627 = vmatpush3.msra.mxu0 %v3326_v16 }
 0xe7f   : > { %3628 = vmatprep.subr.mxu0 %v3959_v0 }
 0xe80   : > { %3629 = vmatpush3.msra.mxu0 %v3325_v17 }
 0xe81   : > { %3630 = vmatprep.subr.mxu0 %v3959_v0 }
 0xe82   : > { %3631 = vmatpush3.msra.mxu0 %v3324_v27 }
 0xe83   : > { %3632 = vmatprep.subr.mxu0 %v3959_v0 }
 0xe84   : > { %3633 = vmatpush3.msra.mxu0 %v3323_v28 }
 0xe85   : > { %3634 = vmatprep.subr.mxu0 %v3959_v0 }
 0xe86   : > { %3635 = vmatpush3.msra.mxu0 %v3322_v29 }
 0xf37   : > { %v2830_v61 = vpop.f32.mrf.mxu0 }
 0xf38   : > { %v2831_v62 = vadd.f32 %v3313_v60, %v2830_v61 }
 0xf39   : > { %v3608_v63 = vpop.f32.mrf.mxu0 }
 0xf3a   : > { %v2834_v1 = vadd.f32 %v2831_v62, %v4494_v36  ;;  %v2867_v36 = vld [vmem:[#allocation9 + $0x20] sm:$0xff]  ;;  %v3337_v63 = vld [vmem:[%s4828_s1] ss:$0 sm:$0xff]  ;;  %s3879_s1 = sshll.u32 %s3971_s23, 4  ;;  %s3880_s1 = int_to_ptr.vmem [resolvable:$false] %s3879_s1 }
 0xf3b   : > { %3616 = vmatpush3.msra.mxu1 %v2867_v36  ;;  %s3881_s2 = scalar_lea.vmem %s3880_s1, 256  ;;  %p3882_p13 = scmp.lt.s32.totalorder %s3120_s27, %s3880_s1 }
 0xf3c   : > { %v2839_v2 = vsel %vm746_vm1, %v2834_v1, 0.0  ;;  %p3883_p10 = scmp.lt.s32.totalorder %s3881_s2, %s3875_s20 }
 0xf3d   : > { %2840 = vadd.xlane.f32.xlu0 %v2839_v2  ;;  %v3338_v2 = vld [vmem:[%s4829_s4] ss:$0 sm:$0xff] }
 0xf3e   : > { %p3884_p0 = por %p3883_p10, %p3882_p13 }
 0xf40   : > { %p3885_p1 = pnand %p3884_p0, %p3878_p7 }
 0xfc6   : > { %v2841_v5 = vpop.xlane.xlu0 %2840 }
 0xfc7   : > { %v2842_v6 = vmul.f32 0.03125, %v2841_v5 }
 0xfc9   : > { %v2843_v7 = vsub.f32 %v2834_v1, %v2842_v6 }
 0xfcb   : > { %v2844_v8 = vmul.f32 %v2843_v7, %v2843_v7 }
 0xfcd   : > { %v2845_v9 = vsel %vm746_vm1, %v2844_v8, 0.0 }
 0xfce   : > { %2846 = vadd.xlane.f32.xlu1 %v2845_v9 }
0x1057   : > { %v2847_v18 = vpop.xlane.xlu1 %2846 }
0x1058   : > { %v2848_v19 = vmul.f32 0.03125, %v2847_v18 }
0x105a   : > { %v2849_v25 = vadd.f32 1e-05, %v2848_v19 }
0x105c   : > { %3761 = vrsqrt.f32 %v2849_v25 }
0x1069   : > { %v3762_v20 = vpop.eup %3761 }
0x106a   : > { %v2851_v22 = vmul.f32 %v3762_v20, %v2843_v7 }
0x106c   : > { %v2858_v24 = vmul.f32 %v3317_v21, %v2851_v22 }
0x106e   : > { %v2865_v26 = vadd.f32 %v3318_v23, %v2858_v24 }
0x1070   : > { %3618 = vmatmul.mubr.msk.f32.vlgmr.msra.gmra.mxu1 %vm746_vm1, %v2865_v26 }
0x1130   : > { %v2948_v31 = vpop.f32.mrf.mxu1 }
0x1131   : > { %v2949_v32 = vadd.f32 %v3320_v30, %v2948_v31 }
0x1132   : > { %v3619_v33 = vpop.f32.mrf.mxu1 }
0x1133   : > { %v2952_v34 = vmax.f32 %v2949_v32, 0.0 }
0x1135   : > { %3637 = vmatmul.mubr.msk.f32.vlgmr.msra.gmra.mxu0 %vm1797_vm6, %v2952_v34 }
0x11f5   : > { %v3039_v37 = vpop.f32.mrf.mxu0 }
0x11f6   : > { %v3040_v38 = vadd.f32 %v3331_v35, %v3039_v37 }
0x11f7   : > { %v3638_v39 = vpop.f32.mrf.mxu0 }
0x11f8   : > { %v3043_v4 = vadd.f32 %v3040_v38, %v2865_v26 }
0x11fa   : > { %v3048_v0 = vsel %vm746_vm1, %v3043_v4, 0.0 }
0x11fb   : > { %3049 = vadd.xlane.f32.xlu0 %v3048_v0 }
0x1284   : > { %v3050_v40 = vpop.xlane.xlu0 %3049 }
0x1285   : > { %v3051_v41 = vmul.f32 0.03125, %v3050_v40 }
0x1287   : > { %v3052_v42 = vsub.f32 %v3043_v4, %v3051_v41 }
0x1289   : > { %v3053_v43 = vmul.f32 %v3052_v42, %v3052_v42 }
0x128b   : > { %v3054_v44 = vsel %vm746_vm1, %v3053_v43, 0.0 }
0x128c   : > { %3055 = vadd.xlane.f32.xlu0 %v3054_v44 }
0x1315   : > { %v3056_v45 = vpop.xlane.xlu0 %3055 }
0x1316   : > { %v3057_v46 = vmul.f32 0.03125, %v3056_v45 }
0x1318   : > { %v3058_v47 = vadd.f32 1e-05, %v3057_v46 }
0x131a   : > { %3763 = vrsqrt.f32 %v3058_v47 }
0x1327   : > { %v3764_v48 = vpop.eup %3763 }
0x1328   : > { %v3060_v50 = vmul.f32 %v3764_v48, %v3052_v42 }
0x132a   : > { %v3067_v51 = vmul.f32 %v3335_v49, %v3060_v50 }
0x132c   : > { %v3074_v52 = vadd.f32 %v3336_v3, %v3067_v51 }
0x132e   : > { %v3077_v53 = vsel %vm746_vm1, %v3074_v52, 0.0 }
0x132f   : > { %3078 = vadd.xlane.f32.xlu1 %v3077_v53 }
0x13b8   : > { %v3079_v54 = vpop.xlane.xlu1 %3078 }
0x13b9   : > { %v3080_v55 = vmul.f32 0.03125, %v3079_v54 }
0x13bb   : > { %v3081_v56 = vsub.f32 %v3074_v52, %v3080_v55 }
0x13bd   : > { %v3082_v57 = vmul.f32 %v3081_v56, %v3081_v56 }
0x13bf   : > { %v3083_v58 = vsel %vm746_vm1, %v3082_v57, 0.0 }
0x13c0   : > { %3084 = vadd.xlane.f32.xlu0 %v3083_v58 }
0x1449   : > { %v3085_v59 = vpop.xlane.xlu0 %3084 }
0x144a   : > { %v3086_v60 = vmul.f32 0.03125, %v3085_v59 }
0x144c   : > { %v3087_v61 = vadd.f32 1e-05, %v3086_v60 }
0x144e   : > { %3765 = vrsqrt.f32 %v3087_v61 }
0x145b   : > { %v3766_v62 = vpop.eup %3765 }
0x145c   : > { %v3089_v1 = vmul.f32 %v3766_v62, %v3081_v56 }
0x145e   : > { %v3096_v5 = vmul.f32 %v3337_v63, %v3089_v1 }
0x1460   : > { %v3103_v6 = vadd.f32 %v3338_v2, %v3096_v5 }
0x1462   : > { %3104 = vst.msk [vmem:[%s719_s29] sm:$0xff] %vm746_vm1, %v3103_v6 }
0x1463   : > { %3888 = shalt.err (!%p3885_p1)
}
0x1464   : > { %s3889_s11 = scalar_lea.hbm %s3117_s6, 128  ;;  %s3893_s13 = scalar_lea.hbm %s4830_s5, 256 }
0x1465   : > { %p3890_p5 = scmp.ne.s32.totalorder %s3117_s6, %s3889_s11  ;;  %p3894_p2 = scmp.lt.s32.totalorder %s3117_s6, %s4830_s5 }
0x1466   : > { %p3895_p4 = scmp.lt.s32.totalorder %s3893_s13, %s3889_s11 }
0x1467   : > { %p3891_p8 = pnand %p3890_p5, %p4831_p12 }
0x1468   : > { %p3896_p6 = por %p3895_p4, %p3894_p2 }
0x1469   : > { %p3892_p11 = pneg %p3891_p8 }
0x146b   : > { %p3897_p9 = pnand %p3896_p6, %p3892_p11 }
0x146d   : > { %3900 = shalt.err (!%p3897_p9)
}
0x146e   : > { %3651 = dma.vmem_to_hbm [thread:$0]  (%p4831_p12), %s3120_s27, 128, %s3117_s6, %s3106_s7  }
0x146f PF: > { %s4832_s19 = sld [smem:[#allocation17_spill]]  ;;  %p4835_p7 = scmp.ge.s32.totalorder %s3951_s24, 2 }
0x1470   : > { %s4833_s29 = sld [smem:[#allocation19_spill]] }
0x1475   : > { %s3131_s16 = sand.u32 1, %s4832_s19  }
0x1476   : > { %p4834_p3 = scmp.ne.s32.totalorder %s4833_s29, 0  ;;  %s3132_s20 = scalar_lea.sflag [#allocation5], %s3131_s16 }
0x1478   : > { %p3668_p13 = pnand %p4835_p7, %p4834_p3 }
0x147a   : > { %p3669_p10 = pneg %p3668_p13 }
0x147c   : > { %3934 = dma.done.wait (%p3669_p10), %s3132_s20, 128  }
0x147d   : > { %3936 = vsyncadd (%p3669_p10), %s3132_s20, 4294967168  ;;  %s4836_s24 = sld [smem:[#allocation20_spill]]  ;;  %s4839_s1 = smov %s3943_s22 }
0x147e   : > { %s4837_s23 = sld [smem:[#allocation18_spill]] }
0x147f   : > { %s4838_s2 = sld [smem:[#allocation22_spill]] }
0x1483   : > { %p37_p0 = scmp.ge.s32.totalorder %s4836_s24, 4  }
0x1484   : > { %s4840_s22 = smov %s4837_s23 }
0x1485   : > { %s4841_s23 = smov %s4838_s2  ;;  %39 = sbr.rel (!%p37_p0) target bundleno = 25 (0x19), region = 183 }
0x148a   :  { %3137 = vsyncpa [#allocation4], 1 }
0x148b   :  { %3139 = vsyncpa [#allocation4 + $0x1], 1 }
0x148c   :  { %3140 = vsyncpa [#allocation7], 1 }
0x148d   :  { %3142 = vsyncpa [#allocation7 + $0x1], 1 }
0x148e   :  { %3143 = vsyncpa [#allocation10], 1 }
0x148f   :  { %3144 = vsyncpa [#allocation5], 1 }
0x1490   :  { %3146 = vsyncpa [#allocation5 + $0x1], 1 }

</bundles_post_ra>
